<compile_context>
chip_gen: v5e
topology: v5e:2x2
jax: 0.10.0
libtpu: 0.0.40
codegen_flags: <defaults>
</compile_context>

<pallas_src>
import functools

import jax
import jax.numpy as jnp
import numpy as np
from jax.experimental import pallas as pl
from jax.experimental.pallas import tpu as pltpu


# ----------------------------------------------------------------------------
# In-kernel helpers
# ----------------------------------------------------------------------------
def _gelu_tanh(x):
    # tanh-approx GELU: the transcendental lands on the EUP instead of a
    # ~12-op VALU erf polynomial.  |tanh-approx - exact erf GELU| < 1e-3,
    # well inside the validation tolerance.
    c = 0.7978845608028654  # sqrt(2/pi)
    return 0.5 * x * (1.0 + jnp.tanh(c * (x + 0.044715 * x * x * x)))


# ----------------------------------------------------------------------------
# Fused block kernel (one grid step == Bt (large, small) batch pairs)
# ----------------------------------------------------------------------------
def _block_kernel(xl_ref, xs_ref,
                  ln1lg, ln1lb, ln1sg, ln1sb,
                  wqkv, wp, wp_eff, bp, bp_s,
                  ln2lg, ln2lb, ln2sg, ln2sb,
                  w1, b1, w2, b2,
                  cmask12, gcmask, gsum_ref,
                  ol_ref, os_ref,
                  *, Bt, N, C, H, hd, scale, cdt):
    f32 = jnp.float32
    BtN = Bt * N

    xl = xl_ref[...].reshape(BtN, C)       # (Bt*N, C) large-half tokens
    xs = xs_ref[...].reshape(BtN, C)       # (Bt*N, C) small-half tokens
    gsum = gsum_ref[0]                     # scalar g0+g1+g2 (DAN rescale)

    def layernorm(z, g_r, b_r):
        mu = jnp.mean(z, axis=-1, keepdims=True)
        var = jnp.mean(jnp.square(z - mu), axis=-1, keepdims=True)
        return (z - mu) * jax.lax.rsqrt(var + 1e-5) * g_r[...] + b_r[...]

    # ---------------- attention stage ----------------
    # cscale (the g-weighted alpha channel mix) is folded into the small-path
    # LayerNorm gamma/beta in the wrapper, so n1s already includes it.
    n1l = layernorm(xl, ln1lg, ln1lb)
    n1s = layernorm(xs, ln1sg, ln1sb)

    # One QKV matmul for both halves: M = 2*Bt*N.
    n1 = jnp.concatenate([n1l, n1s], axis=0).astype(cdt)             # (2BtN, C)
    qkv = jnp.dot(n1, wqkv[...], preferred_element_type=f32)         # (2BtN, 3C)
    qkv3 = qkv.reshape(2 * Bt, N, 3 * C)

    # Multi-head attention, batched over the 2*Bt (large+small) rows.
    # No per-variant head masking needed here: a head whose q/k/v are zeroed
    # yields a zero context, so the head mask acts on the context and is
    # folded (together with the output channel mask and g-weights) into
    # wp_eff below.  Only scores/softmax/context live in this short loop.
    ctx_heads = []
    for h in range(H):
        q = qkv3[:, :, h * hd:(h + 1) * hd].astype(cdt)
        k = qkv3[:, :, C + h * hd:C + (h + 1) * hd].astype(cdt)
        v = qkv3[:, :, 2 * C + h * hd:2 * C + (h + 1) * hd].astype(cdt)
        s = jnp.einsum('bnd,bmd->bnm', q, k,
                       preferred_element_type=f32) * scale           # (2Bt,N,N)
        p = jax.nn.softmax(s, axis=-1).astype(cdt)
        ctx_heads.append(jnp.einsum('bnm,bmd->bnd', p, v,
                                    preferred_element_type=f32))     # (2Bt,N,hd)
    ctx = jnp.concatenate(ctx_heads, axis=-1).reshape(2 * BtN, C).astype(cdt)

    # One full-K projection per half.  wp_eff = wp * sum_i g_i*hmask_i*cmask_i
    # collapses the three alpha-masked small projections into a single matmul;
    # bp_s = cscale * bp is the matching bias fold.
    attn_l = jnp.dot(ctx[:BtN], wp[...], preferred_element_type=f32) + bp[...]
    attn_s = jnp.dot(ctx[BtN:], wp_eff[...],
                     preferred_element_type=f32) + bp_s[...]

    xl1 = xl + attn_l
    xs1 = (xs + attn_s) * gsum             # DAN_1 rescale of the small half

    # ---------------- MLP stage ----------------
    n2l = layernorm(xl1, ln2lg, ln2lb)
    n2s = layernorm(xs1, ln2sg, ln2sb)     # cscale folded into gamma/beta

    # Stack the 4 MLP variants (large + 3 alpha-masked small; alpha[0] mask is
    # all-ones) into one slab so fc1 / gelu / fc2 each run once with M=4*Bt*N.
    cm1 = cmask12[0:1, :]
    cm2 = cmask12[1:2, :]
    m_in = jnp.concatenate([n2l, n2s, n2s * cm1, n2s * cm2],
                           axis=0).astype(cdt)                       # (4BtN, C)
    h1 = jnp.dot(m_in, w1[...], preferred_element_type=f32) + b1[...]
    h1 = _gelu_tanh(h1).astype(cdt)
    y = jnp.dot(h1, w2[...], preferred_element_type=f32) + b2[...]   # (4BtN, C)

    mlp_l = y[:BtN]
    mlp_s = (gcmask[0:1, :] * y[BtN:2 * BtN]
             + gcmask[1:2, :] * y[2 * BtN:3 * BtN]
             + gcmask[2:3, :] * y[3 * BtN:4 * BtN])

    ol_ref[...] = (xl1 + mlp_l).reshape(Bt, N, C)
    os_ref[...] = ((xs1 + mlp_s) * gsum).reshape(Bt, N, C)   # DAN_2 rescale


# ----------------------------------------------------------------------------
# Wrapper (gumbel softmax, mask/weight folding, latency, pallas_call plumbing)
# ----------------------------------------------------------------------------
def block_forward(x, params, gumbel_weight, gumbel_noise, epoch,
                  *, num_heads, alpha, mlp_hidden,
                  depth, block_depth, total_depth,
                  pairs_per_step=None, compute_dtype=jnp.float32):
    B, N, C = x.shape
    B2 = B // 2
    H = num_heads
    hd = C // H
    scale = hd ** -0.5

    nas_active = (depth >= block_depth) and (depth <= (total_depth - 1) - block_depth)
    if not nas_active:
        # TODO(synk): non-NAS depths duplicate the large path into the small
        # half; only the NAS-active configuration is implemented here.
        raise NotImplementedError("only the NAS-active depth range is implemented")

    temperature = 15.0 * 0.956 ** epoch
    g = jax.nn.softmax((gumbel_weight + gumbel_noise) / temperature)   # (3,)

    # Masks / folded weights (plain-JAX glue, done once in the wrapper).
    cidx = jnp.arange(C)
    cmask = jnp.stack([(cidx < C // a) for a in alpha]).astype(jnp.float32)     # (3,C)
    hmaskC = jnp.stack([((cidx // hd) < (H // a)) for a in alpha]).astype(jnp.float32)
    gcmask = g[:, None] * cmask                                                 # (3,C)
    cscale = jnp.sum(gcmask, axis=0, keepdims=True)                             # (1,C)
    gsum = jnp.sum(g).reshape(1).astype(jnp.float32)                            # (1,)

    # Fold the per-variant (head-mask in, channel-mask out, g-weight) small
    # projection into a single effective weight, and cscale into the
    # small-path LayerNorm affine params and the proj bias.
    proj_mask = sum(g[i] * hmaskC[i][:, None] * cmask[i][None, :]
                    for i in range(len(alpha)))                                 # (C,C)
    wp_eff = params['wp_t'] * proj_mask
    bp_s = cscale * params['bp']
    ln1s_g = params['ln1s_g'] * cscale
    ln1s_b = params['ln1s_b'] * cscale
    ln2s_g = params['ln2s_g'] * cscale
    ln2s_b = params['ln2s_b'] * cscale
    cmask12 = cmask[1:]                                                         # (2,C)

    # bf16 matmul operands (v6e/v7x MXU peak); f32 accumulation in-kernel.
    cdt = compute_dtype
    wqkv_c = params['wqkv_t'].astype(cdt)
    wp_c = params['wp_t'].astype(cdt)
    wp_eff_c = wp_eff.astype(cdt)
    w1_c = params['w1_t'].astype(cdt)
    w2_c = params['w2_t'].astype(cdt)

    # Latency (FLOPs * gumbel weight), reproducing the integer-division order.
    latency = jnp.float32(0.0)
    for i, a in enumerate(alpha):
        f_attn = (4 * N * N * C // H) * H // a + ((2 * N * C // a) * C) // a
        latency = latency + f_attn * g[i]
    latency = latency + ((2 * N * C // alpha[0]) * mlp_hidden) * g[0]
    latency = latency + ((4 * N * C // alpha[1]) * mlp_hidden) * g[1]
    latency = latency + ((4 * N * C // alpha[2]) * mlp_hidden) * g[2]

    # Batch blocking: Bt pairs per grid step (amortizes per-step overhead),
    # while keeping >= 2 grid steps where possible so v7x's two TensorCores
    # both get work.  N should be a multiple of 8 for clean sublane reshapes.
    if pairs_per_step is None:
        target = min(8, max(1, B2 // 2))
        Bt = max(d for d in range(1, target + 1) if B2 % d == 0)
    else:
        Bt = pairs_per_step
    assert B2 % Bt == 0, "pairs_per_step must divide B//2"

    xl = x[:B2]
    xs = x[B2:]

    def vspec(shape):
        zeros = (0,) * len(shape)
        return pl.BlockSpec(shape, lambda b: zeros)

    row_spec = pl.BlockSpec((Bt, N, C), lambda b: (b, 0, 0))

    kernel = functools.partial(_block_kernel, Bt=Bt, N=N, C=C, H=H, hd=hd,
                               scale=scale, cdt=cdt)

    out_l, out_s = pl.pallas_call(
        kernel,
        out_shape=(jax.ShapeDtypeStruct((B2, N, C), jnp.float32),
                   jax.ShapeDtypeStruct((B2, N, C), jnp.float32)),
        grid=(B2 // Bt,),
        in_specs=[
            row_spec, row_spec,                                        # xl, xs
            vspec((1, C)), vspec((1, C)), vspec((1, C)), vspec((1, C)),  # ln1 l/s
            vspec((C, 3 * C)), vspec((C, C)), vspec((C, C)),             # qkv, proj
            vspec((1, C)), vspec((1, C)),                                # bp, bp_s
            vspec((1, C)), vspec((1, C)), vspec((1, C)), vspec((1, C)),  # ln2 l/s
            vspec((C, mlp_hidden)), vspec((1, mlp_hidden)),              # fc1
            vspec((mlp_hidden, C)), vspec((1, C)),                       # fc2
            vspec((2, C)), vspec((3, C)),                                # masks
            pl.BlockSpec(memory_space=pltpu.MemorySpace.SMEM),           # gsum
        ],
        out_specs=(row_spec, row_spec),
        compiler_params=pltpu.CompilerParams(
            dimension_semantics=("parallel",)),
    )(xl, xs,
      params['ln1l_g'], params['ln1l_b'], ln1s_g, ln1s_b,
      wqkv_c, wp_c, wp_eff_c, params['bp'], bp_s,
      params['ln2l_g'], params['ln2l_b'], ln2s_g, ln2s_b,
      w1_c, params['b1'], w2_c, params['b2'],
      cmask12, gcmask, gsum)

    return jnp.concatenate([out_l, out_s], axis=0), latency, g


# ----------------------------------------------------------------------------
# Pure-JAX reference (mirrors the PyTorch forward, used for validation)
# ----------------------------------------------------------------------------
def block_reference(x, params, g, *, num_heads, alpha, mlp_hidden):
    B, N, C = x.shape
    B2 = B // 2
    H = num_heads
    hd = C // H
    scale = hd ** -0.5
    hp = 'highest'

    def ln(z, gamma, beta):
        mu = z.mean(-1, keepdims=True)
        var = jnp.square(z - mu).mean(-1, keepdims=True)
        return (z - mu) / jnp.sqrt(var + 1e-5) * gamma[0] + beta[0]

    def linear(z, wt, b=None):
        y = jnp.einsum('bnc,cd->bnd', z, wt, precision=hp)
        return y if b is None else y + b[0]

    def make_qkv(z):
        qkv = linear(z, params['wqkv_t'])
        return qkv.reshape(B2, N, 3, H, hd).transpose(2, 0, 3, 1, 4)

    def mha(qkv):
        q, k, v = qkv[0], qkv[1], qkv[2]
        s = jnp.einsum('bhnd,bhmd->bhnm', q, k, precision=hp) * scale
        p = jax.nn.softmax(s, -1)
        o = jnp.einsum('bhnm,bhmd->bhnd', p, v, precision=hp)
        return o.transpose(0, 2, 1, 3).reshape(B2, N, C)

    def mlp_fn(z):
        h = linear(z, params['w1_t'], params['b1'])
        h = jax.nn.gelu(h, approximate=False)
        return linear(h, params['w2_t'], params['b2'])

    cmasks = [(jnp.arange(C) < C // a).astype(jnp.float32) for a in alpha]
    hmasks = [(jnp.arange(H) < H // a).astype(jnp.float32).reshape(1, 1, H, 1, 1)
              for a in alpha]
    gsum = jnp.sum(g)

    xl, xs = x[:B2], x[B2:]

    n1l = ln(xl, params['ln1l_g'], params['ln1l_b'])
    n1s = ln(xs, params['ln1s_g'], params['ln1s_b'])
    n1s_c = sum(g[i] * (n1s * cmasks[i]) for i in range(len(alpha)))

    al = linear(mha(make_qkv(n1l)), params['wp_t'], params['bp'])
    qkv_s = make_qkv(n1s_c)
    as_sum = 0.0
    for i in range(len(alpha)):
        o = linear(mha(qkv_s * hmasks[i]), params['wp_t'], params['bp'])
        as_sum = as_sum + g[i] * (o * cmasks[i])

    xl1 = xl + al
    xs1 = (xs + as_sum) * gsum

    n2l = ln(xl1, params['ln2l_g'], params['ln2l_b'])
    n2s = ln(xs1, params['ln2s_g'], params['ln2s_b'])
    n2s_c = sum(g[i] * (n2s * cmasks[i]) for i in range(len(alpha)))

    ml = mlp_fn(n2l)
    ms = 0.0
    for i in range(len(alpha)):
        o = mlp_fn(n2s_c * cmasks[i])
        ms = ms + g[i] * (o * cmasks[i])

    xl2 = xl1 + ml
    xs2 = (xs1 + ms) * gsum
    return jnp.concatenate([xl2, xs2], axis=0)


# ----------------------------------------------------------------------------
# Main
# ----------------------------------------------------------------------------
if __name__ == "__main__":
    B, N, C, H = 16, 8, 32, 4          # batch (8 large + 8 small), tokens, dim, heads
    mlp_ratio = 4.0
    hidden = int(C * mlp_ratio)
    depth, block_depth, total_depth = 5, 3, 14   # NAS-active depth range
    alpha = (1, 2, 3)
    epoch = 3

    key = jax.random.PRNGKey(0)
    ks = jax.random.split(key, 20)
    w = 0.1

    def nrm(k, shape, s):
        return (s * jax.random.normal(k, shape)).astype(jnp.float32)

    params = {
        'ln1l_g': (1.0 + nrm(ks[0], (1, C), 0.1)), 'ln1l_b': nrm(ks[1], (1, C), 0.05),
        'ln1s_g': (1.0 + nrm(ks[2], (1, C), 0.1)), 'ln1s_b': nrm(ks[3], (1, C), 0.05),
        'wqkv_t': nrm(ks[4], (C, 3 * C), w),
        'wp_t':   nrm(ks[5], (C, C), w),     'bp': nrm(ks[6], (1, C), 0.02),
        'ln2l_g': (1.0 + nrm(ks[7], (1, C), 0.1)), 'ln2l_b': nrm(ks[8], (1, C), 0.05),
        'ln2s_g': (1.0 + nrm(ks[9], (1, C), 0.1)), 'ln2s_b': nrm(ks[10], (1, C), 0.05),
        'w1_t':   nrm(ks[11], (C, hidden), w), 'b1': nrm(ks[12], (1, hidden), 0.02),
        'w2_t':   nrm(ks[13], (hidden, C), w), 'b2': nrm(ks[14], (1, C), 0.02),
    }
    gumbel_weight = jax.random.uniform(ks[15], (3,), jnp.float32)
    U = jax.random.uniform(ks[16], (3,), jnp.float32)
    eps = 1e-20
    gumbel_noise = -jnp.log(-jnp.log(U + eps) + eps)

    x = jax.random.normal(ks[17], (B, N, C), jnp.float32)

    common = dict(num_heads=H, alpha=alpha, mlp_hidden=hidden,
                  depth=depth, block_depth=block_depth, total_depth=total_depth)

    # f32 matmul path: tight check against the exact reference.
    out32, latency, g = block_forward(x, params, gumbel_weight, gumbel_noise,
                                      epoch, compute_dtype=jnp.float32, **common)
    out32 = jax.block_until_ready(out32)
    latency = jax.block_until_ready(latency)

    ref = block_reference(x, params, g, num_heads=H, alpha=alpha, mlp_hidden=hidden)
    np.testing.assert_allclose(np.asarray(out32), np.asarray(ref),
                               rtol=1e-2, atol=1e-2)

    # bf16 matmul path (recommended perf config for v6e/v7x): looser check.
    out16, _, _ = block_forward(x, params, gumbel_weight, gumbel_noise,
                                epoch, compute_dtype=jnp.bfloat16, **common)
    out16 = jax.block_until_ready(out16)
    np.testing.assert_allclose(np.asarray(out16), np.asarray(ref),
                               rtol=5e-2, atol=5e-2)

    print("KERNEL_OK")
</pallas_src>

<mosaic_0001>
module attributes {stable_mosaic.version = 11 : i64} {
  func.func @_block_kernel(%arg0: i32, %arg1: memref<4x8x32xf32, #tpu.memory_space<vmem>>, %arg2: memref<4x8x32xf32, #tpu.memory_space<vmem>>, %arg3: memref<1x32xf32, #tpu.memory_space<vmem>>, %arg4: memref<1x32xf32, #tpu.memory_space<vmem>>, %arg5: memref<1x32xf32, #tpu.memory_space<vmem>>, %arg6: memref<1x32xf32, #tpu.memory_space<vmem>>, %arg7: memref<32x96xf32, #tpu.memory_space<vmem>>, %arg8: memref<32x32xf32, #tpu.memory_space<vmem>>, %arg9: memref<32x32xf32, #tpu.memory_space<vmem>>, %arg10: memref<1x32xf32, #tpu.memory_space<vmem>>, %arg11: memref<1x32xf32, #tpu.memory_space<vmem>>, %arg12: memref<1x32xf32, #tpu.memory_space<vmem>>, %arg13: memref<1x32xf32, #tpu.memory_space<vmem>>, %arg14: memref<1x32xf32, #tpu.memory_space<vmem>>, %arg15: memref<1x32xf32, #tpu.memory_space<vmem>>, %arg16: memref<32x128xf32, #tpu.memory_space<vmem>>, %arg17: memref<1x128xf32, #tpu.memory_space<vmem>>, %arg18: memref<128x32xf32, #tpu.memory_space<vmem>>, %arg19: memref<1x32xf32, #tpu.memory_space<vmem>>, %arg20: memref<2x32xf32, #tpu.memory_space<vmem>>, %arg21: memref<3x32xf32, #tpu.memory_space<vmem>>, %arg22: memref<1xf32, #tpu.memory_space<smem>>, %arg23: memref<4x8x32xf32, #tpu.memory_space<vmem>>, %arg24: memref<4x8x32xf32, #tpu.memory_space<vmem>>) attributes {dimension_semantics = [#tpu.dimension_semantics<parallel>], iteration_bounds = array<i64: 2>, scalar_prefetch = 0 : i64, scratch_operands = 0 : i64, tpu.core_type = #tpu.core_type<tc>, window_params = [{transform_indices = @transform_0, window_bounds = array<i64: 4, 8, 32>}, {transform_indices = @transform_1, window_bounds = array<i64: 4, 8, 32>}, {pipeline_mode = #tpu.pipeline_mode<synchronous>, transform_indices = @transform_2, window_bounds = array<i64: 1, 32>}, {pipeline_mode = #tpu.pipeline_mode<synchronous>, transform_indices = @transform_3, window_bounds = array<i64: 1, 32>}, {pipeline_mode = #tpu.pipeline_mode<synchronous>, transform_indices = @transform_4, window_bounds = array<i64: 1, 32>}, {pipeline_mode = #tpu.pipeline_mode<synchronous>, transform_indices = @transform_5, window_bounds = array<i64: 1, 32>}, {pipeline_mode = #tpu.pipeline_mode<synchronous>, transform_indices = @transform_6, window_bounds = array<i64: 32, 96>}, {pipeline_mode = #tpu.pipeline_mode<synchronous>, transform_indices = @transform_7, window_bounds = array<i64: 32, 32>}, {pipeline_mode = #tpu.pipeline_mode<synchronous>, transform_indices = @transform_8, window_bounds = array<i64: 32, 32>}, {pipeline_mode = #tpu.pipeline_mode<synchronous>, transform_indices = @transform_9, window_bounds = array<i64: 1, 32>}, {pipeline_mode = #tpu.pipeline_mode<synchronous>, transform_indices = @transform_10, window_bounds = array<i64: 1, 32>}, {pipeline_mode = #tpu.pipeline_mode<synchronous>, transform_indices = @transform_11, window_bounds = array<i64: 1, 32>}, {pipeline_mode = #tpu.pipeline_mode<synchronous>, transform_indices = @transform_12, window_bounds = array<i64: 1, 32>}, {pipeline_mode = #tpu.pipeline_mode<synchronous>, transform_indices = @transform_13, window_bounds = array<i64: 1, 32>}, {pipeline_mode = #tpu.pipeline_mode<synchronous>, transform_indices = @transform_14, window_bounds = array<i64: 1, 32>}, {pipeline_mode = #tpu.pipeline_mode<synchronous>, transform_indices = @transform_15, window_bounds = array<i64: 32, 128>}, {pipeline_mode = #tpu.pipeline_mode<synchronous>, transform_indices = @transform_16, window_bounds = array<i64: 1, 128>}, {pipeline_mode = #tpu.pipeline_mode<synchronous>, transform_indices = @transform_17, window_bounds = array<i64: 128, 32>}, {pipeline_mode = #tpu.pipeline_mode<synchronous>, transform_indices = @transform_18, window_bounds = array<i64: 1, 32>}, {pipeline_mode = #tpu.pipeline_mode<synchronous>, transform_indices = @transform_19, window_bounds = array<i64: 2, 32>}, {pipeline_mode = #tpu.pipeline_mode<synchronous>, transform_indices = @transform_20, window_bounds = array<i64: 3, 32>}, {transform_indices = @transform_21, window_bounds = array<i64: 1>}, {transform_indices = @transform_22, window_bounds = array<i64: 4, 8, 32>}, {transform_indices = @transform_23, window_bounds = array<i64: 4, 8, 32>}]} {
    %c0 = arith.constant 0 : index
    %c0_0 = arith.constant 0 : index
    %c0_1 = arith.constant 0 : index
    %0 = vector.load %arg1[%c0, %c0_0, %c0_1] : memref<4x8x32xf32, #tpu.memory_space<vmem>>, vector<4x8x32xf32>
    %1 = vector.shape_cast %0 : vector<4x8x32xf32> to vector<32x32xf32>
    %c0_2 = arith.constant 0 : index
    %c0_3 = arith.constant 0 : index
    %c0_4 = arith.constant 0 : index
    %2 = vector.load %arg2[%c0_2, %c0_3, %c0_4] : memref<4x8x32xf32, #tpu.memory_space<vmem>>, vector<4x8x32xf32>
    %3 = vector.shape_cast %2 : vector<4x8x32xf32> to vector<32x32xf32>
    %c0_5 = arith.constant 0 : index
    %4 = memref.load %arg22[%c0_5] : memref<1xf32, #tpu.memory_space<smem>>
    %cst = arith.constant dense<0.000000e+00> : vector<32xf32>
    %5 = vector.multi_reduction <add>, %1, %cst [1] : vector<32x32xf32> to vector<32xf32>
    %6 = vector.shape_cast %5 : vector<32xf32> to vector<32x1xf32>
    %cst_6 = arith.constant 3.200000e+01 : f32
    %7 = vector.broadcast %cst_6 : f32 to vector<32x1xf32>
    %8 = arith.divf %6, %7 : vector<32x1xf32>
    %9 = vector.broadcast %8 : vector<32x1xf32> to vector<32x32xf32>
    %10 = arith.subf %1, %9 : vector<32x32xf32>
    %11 = arith.mulf %10, %10 : vector<32x32xf32>
    %cst_7 = arith.constant dense<0.000000e+00> : vector<32xf32>
    %12 = vector.multi_reduction <add>, %11, %cst_7 [1] : vector<32x32xf32> to vector<32xf32>
    %13 = vector.shape_cast %12 : vector<32xf32> to vector<32x1xf32>
    %cst_8 = arith.constant 3.200000e+01 : f32
    %14 = vector.broadcast %cst_8 : f32 to vector<32x1xf32>
    %15 = arith.divf %13, %14 : vector<32x1xf32>
    %16 = vector.broadcast %8 : vector<32x1xf32> to vector<32x32xf32>
    %17 = arith.subf %1, %16 : vector<32x32xf32>
    %cst_9 = arith.constant 9.99999974E-6 : f32
    %18 = vector.broadcast %cst_9 : f32 to vector<32x1xf32>
    %19 = arith.addf %15, %18 : vector<32x1xf32>
    %20 = math.rsqrt %19 : vector<32x1xf32>
    %21 = vector.broadcast %20 : vector<32x1xf32> to vector<32x32xf32>
    %22 = arith.mulf %17, %21 : vector<32x32xf32>
    %c0_10 = arith.constant 0 : index
    %c0_11 = arith.constant 0 : index
    %23 = vector.load %arg3[%c0_10, %c0_11] : memref<1x32xf32, #tpu.memory_space<vmem>>, vector<1x32xf32>
    %24 = vector.broadcast %23 : vector<1x32xf32> to vector<32x32xf32>
    %25 = arith.mulf %22, %24 : vector<32x32xf32>
    %c0_12 = arith.constant 0 : index
    %c0_13 = arith.constant 0 : index
    %26 = vector.load %arg4[%c0_12, %c0_13] : memref<1x32xf32, #tpu.memory_space<vmem>>, vector<1x32xf32>
    %27 = vector.broadcast %26 : vector<1x32xf32> to vector<32x32xf32>
    %28 = arith.addf %25, %27 : vector<32x32xf32>
    %cst_14 = arith.constant dense<0.000000e+00> : vector<32xf32>
    %29 = vector.multi_reduction <add>, %3, %cst_14 [1] : vector<32x32xf32> to vector<32xf32>
    %30 = vector.shape_cast %29 : vector<32xf32> to vector<32x1xf32>
    %cst_15 = arith.constant 3.200000e+01 : f32
    %31 = vector.broadcast %cst_15 : f32 to vector<32x1xf32>
    %32 = arith.divf %30, %31 : vector<32x1xf32>
    %33 = vector.broadcast %32 : vector<32x1xf32> to vector<32x32xf32>
    %34 = arith.subf %3, %33 : vector<32x32xf32>
    %35 = arith.mulf %34, %34 : vector<32x32xf32>
    %cst_16 = arith.constant dense<0.000000e+00> : vector<32xf32>
    %36 = vector.multi_reduction <add>, %35, %cst_16 [1] : vector<32x32xf32> to vector<32xf32>
    %37 = vector.shape_cast %36 : vector<32xf32> to vector<32x1xf32>
    %cst_17 = arith.constant 3.200000e+01 : f32
    %38 = vector.broadcast %cst_17 : f32 to vector<32x1xf32>
    %39 = arith.divf %37, %38 : vector<32x1xf32>
    %40 = vector.broadcast %32 : vector<32x1xf32> to vector<32x32xf32>
    %41 = arith.subf %3, %40 : vector<32x32xf32>
    %cst_18 = arith.constant 9.99999974E-6 : f32
    %42 = vector.broadcast %cst_18 : f32 to vector<32x1xf32>
    %43 = arith.addf %39, %42 : vector<32x1xf32>
    %44 = math.rsqrt %43 : vector<32x1xf32>
    %45 = vector.broadcast %44 : vector<32x1xf32> to vector<32x32xf32>
    %46 = arith.mulf %41, %45 : vector<32x32xf32>
    %c0_19 = arith.constant 0 : index
    %c0_20 = arith.constant 0 : index
    %47 = vector.load %arg5[%c0_19, %c0_20] : memref<1x32xf32, #tpu.memory_space<vmem>>, vector<1x32xf32>
    %48 = vector.broadcast %47 : vector<1x32xf32> to vector<32x32xf32>
    %49 = arith.mulf %46, %48 : vector<32x32xf32>
    %c0_21 = arith.constant 0 : index
    %c0_22 = arith.constant 0 : index
    %50 = vector.load %arg6[%c0_21, %c0_22] : memref<1x32xf32, #tpu.memory_space<vmem>>, vector<1x32xf32>
    %51 = vector.broadcast %50 : vector<1x32xf32> to vector<32x32xf32>
    %52 = arith.addf %49, %51 : vector<32x32xf32>
    %53 = tpu.concatenate %28, %52 in 0 : vector<32x32xf32>, vector<32x32xf32> -> vector<64x32xf32>
    %c0_23 = arith.constant 0 : index
    %c0_24 = arith.constant 0 : index
    %54 = vector.load %arg7[%c0_23, %c0_24] : memref<32x96xf32, #tpu.memory_space<vmem>>, vector<32x96xf32>
    %cst_25 = arith.constant dense<0.000000e+00> : vector<64x96xf32>
    %55 = tpu.matmul %53, %54, %cst_25 {dimension_numbers = #tpu.dot_dimension_numbers<[1], [0], [0], [1], [0, 0, 1, 1], [], []>} : vector<64x32xf32>, vector<32x96xf32>, vector<64x96xf32> -> vector<64x96xf32>
    %56 = vector.shape_cast %55 : vector<64x96xf32> to vector<8x8x96xf32>
    %57 = vector.extract_strided_slice %56 {offsets = [0, 0, 0], sizes = [8, 8, 8], strides = [1, 1, 1]} : vector<8x8x96xf32> to vector<8x8x8xf32>
    %58 = vector.extract_strided_slice %56 {offsets = [0, 0, 32], sizes = [8, 8, 8], strides = [1, 1, 1]} : vector<8x8x96xf32> to vector<8x8x8xf32>
    %59 = vector.extract_strided_slice %56 {offsets = [0, 0, 64], sizes = [8, 8, 8], strides = [1, 1, 1]} : vector<8x8x96xf32> to vector<8x8x8xf32>
    "tpu.trace_start"() <{level = 10 : i32, message = "bnd,bmd->bnm"}> : () -> ()
    %cst_26 = arith.constant dense<0.000000e+00> : vector<8x8x8xf32>
    %60 = tpu.matmul %57, %58, %cst_26 {dimension_numbers = #tpu.dot_dimension_numbers<[2], [2], [1], [1], [0, 0, 0, 1, 1, 1], [0], [0]>} : vector<8x8x8xf32>, vector<8x8x8xf32>, vector<8x8x8xf32> -> vector<8x8x8xf32>
    "tpu.trace_stop"() : () -> ()
    %cst_27 = arith.constant 0.353553385 : f32
    %61 = vector.broadcast %cst_27 : f32 to vector<8x8x8xf32>
    %62 = arith.mulf %60, %61 : vector<8x8x8xf32>
    %cst_28 = arith.constant dense<0xFF800000> : vector<8x8xf32>
    %63 = vector.multi_reduction <maximumf>, %62, %cst_28 [2] : vector<8x8x8xf32> to vector<8x8xf32>
    %cst_29 = arith.constant 0xFF800000 : f32
    %64 = vector.broadcast %cst_29 : f32 to vector<8x8xf32>
    %65 = arith.maximumf %64, %63 : vector<8x8xf32>
    %66 = vector.shape_cast %65 : vector<8x8xf32> to vector<8x8x1xf32>
    %67 = vector.broadcast %66 : vector<8x8x1xf32> to vector<8x8x8xf32>
    %68 = arith.subf %62, %67 : vector<8x8x8xf32>
    %69 = math.exp %68 : vector<8x8x8xf32>
    %cst_30 = arith.constant dense<0.000000e+00> : vector<8x8xf32>
    %70 = vector.multi_reduction <add>, %69, %cst_30 [2] : vector<8x8x8xf32> to vector<8x8xf32>
    %71 = vector.shape_cast %70 : vector<8x8xf32> to vector<8x8x1xf32>
    %72 = vector.broadcast %71 : vector<8x8x1xf32> to vector<8x8x8xf32>
    %73 = arith.divf %69, %72 : vector<8x8x8xf32>
    "tpu.trace_start"() <{level = 10 : i32, message = "bnm,bmd->bnd"}> : () -> ()
    %cst_31 = arith.constant dense<0.000000e+00> : vector<8x8x8xf32>
    %74 = tpu.matmul %73, %59, %cst_31 {dimension_numbers = #tpu.dot_dimension_numbers<[2], [1], [1], [2], [0, 0, 0, 1, 1, 2], [0], [0]>} : vector<8x8x8xf32>, vector<8x8x8xf32>, vector<8x8x8xf32> -> vector<8x8x8xf32>
    "tpu.trace_stop"() : () -> ()
    %75 = vector.extract_strided_slice %56 {offsets = [0, 0, 8], sizes = [8, 8, 8], strides = [1, 1, 1]} : vector<8x8x96xf32> to vector<8x8x8xf32>
    %76 = vector.extract_strided_slice %56 {offsets = [0, 0, 40], sizes = [8, 8, 8], strides = [1, 1, 1]} : vector<8x8x96xf32> to vector<8x8x8xf32>
    %77 = vector.extract_strided_slice %56 {offsets = [0, 0, 72], sizes = [8, 8, 8], strides = [1, 1, 1]} : vector<8x8x96xf32> to vector<8x8x8xf32>
    "tpu.trace_start"() <{level = 10 : i32, message = "bnd,bmd->bnm"}> : () -> ()
    %cst_32 = arith.constant dense<0.000000e+00> : vector<8x8x8xf32>
    %78 = tpu.matmul %75, %76, %cst_32 {dimension_numbers = #tpu.dot_dimension_numbers<[2], [2], [1], [1], [0, 0, 0, 1, 1, 1], [0], [0]>} : vector<8x8x8xf32>, vector<8x8x8xf32>, vector<8x8x8xf32> -> vector<8x8x8xf32>
    "tpu.trace_stop"() : () -> ()
    %cst_33 = arith.constant 0.353553385 : f32
    %79 = vector.broadcast %cst_33 : f32 to vector<8x8x8xf32>
    %80 = arith.mulf %78, %79 : vector<8x8x8xf32>
    %cst_34 = arith.constant dense<0xFF800000> : vector<8x8xf32>
    %81 = vector.multi_reduction <maximumf>, %80, %cst_34 [2] : vector<8x8x8xf32> to vector<8x8xf32>
    %cst_35 = arith.constant 0xFF800000 : f32
    %82 = vector.broadcast %cst_35 : f32 to vector<8x8xf32>
    %83 = arith.maximumf %82, %81 : vector<8x8xf32>
    %84 = vector.shape_cast %83 : vector<8x8xf32> to vector<8x8x1xf32>
    %85 = vector.broadcast %84 : vector<8x8x1xf32> to vector<8x8x8xf32>
    %86 = arith.subf %80, %85 : vector<8x8x8xf32>
    %87 = math.exp %86 : vector<8x8x8xf32>
    %cst_36 = arith.constant dense<0.000000e+00> : vector<8x8xf32>
    %88 = vector.multi_reduction <add>, %87, %cst_36 [2] : vector<8x8x8xf32> to vector<8x8xf32>
    %89 = vector.shape_cast %88 : vector<8x8xf32> to vector<8x8x1xf32>
    %90 = vector.broadcast %89 : vector<8x8x1xf32> to vector<8x8x8xf32>
    %91 = arith.divf %87, %90 : vector<8x8x8xf32>
    "tpu.trace_start"() <{level = 10 : i32, message = "bnm,bmd->bnd"}> : () -> ()
    %cst_37 = arith.constant dense<0.000000e+00> : vector<8x8x8xf32>
    %92 = tpu.matmul %91, %77, %cst_37 {dimension_numbers = #tpu.dot_dimension_numbers<[2], [1], [1], [2], [0, 0, 0, 1, 1, 2], [0], [0]>} : vector<8x8x8xf32>, vector<8x8x8xf32>, vector<8x8x8xf32> -> vector<8x8x8xf32>
    "tpu.trace_stop"() : () -> ()
    %93 = vector.extract_strided_slice %56 {offsets = [0, 0, 16], sizes = [8, 8, 8], strides = [1, 1, 1]} : vector<8x8x96xf32> to vector<8x8x8xf32>
    %94 = vector.extract_strided_slice %56 {offsets = [0, 0, 48], sizes = [8, 8, 8], strides = [1, 1, 1]} : vector<8x8x96xf32> to vector<8x8x8xf32>
    %95 = vector.extract_strided_slice %56 {offsets = [0, 0, 80], sizes = [8, 8, 8], strides = [1, 1, 1]} : vector<8x8x96xf32> to vector<8x8x8xf32>
    "tpu.trace_start"() <{level = 10 : i32, message = "bnd,bmd->bnm"}> : () -> ()
    %cst_38 = arith.constant dense<0.000000e+00> : vector<8x8x8xf32>
    %96 = tpu.matmul %93, %94, %cst_38 {dimension_numbers = #tpu.dot_dimension_numbers<[2], [2], [1], [1], [0, 0, 0, 1, 1, 1], [0], [0]>} : vector<8x8x8xf32>, vector<8x8x8xf32>, vector<8x8x8xf32> -> vector<8x8x8xf32>
    "tpu.trace_stop"() : () -> ()
    %cst_39 = arith.constant 0.353553385 : f32
    %97 = vector.broadcast %cst_39 : f32 to vector<8x8x8xf32>
    %98 = arith.mulf %96, %97 : vector<8x8x8xf32>
    %cst_40 = arith.constant dense<0xFF800000> : vector<8x8xf32>
    %99 = vector.multi_reduction <maximumf>, %98, %cst_40 [2] : vector<8x8x8xf32> to vector<8x8xf32>
    %cst_41 = arith.constant 0xFF800000 : f32
    %100 = vector.broadcast %cst_41 : f32 to vector<8x8xf32>
    %101 = arith.maximumf %100, %99 : vector<8x8xf32>
    %102 = vector.shape_cast %101 : vector<8x8xf32> to vector<8x8x1xf32>
    %103 = vector.broadcast %102 : vector<8x8x1xf32> to vector<8x8x8xf32>
    %104 = arith.subf %98, %103 : vector<8x8x8xf32>
    %105 = math.exp %104 : vector<8x8x8xf32>
    %cst_42 = arith.constant dense<0.000000e+00> : vector<8x8xf32>
    %106 = vector.multi_reduction <add>, %105, %cst_42 [2] : vector<8x8x8xf32> to vector<8x8xf32>
    %107 = vector.shape_cast %106 : vector<8x8xf32> to vector<8x8x1xf32>
    %108 = vector.broadcast %107 : vector<8x8x1xf32> to vector<8x8x8xf32>
    %109 = arith.divf %105, %108 : vector<8x8x8xf32>
    "tpu.trace_start"() <{level = 10 : i32, message = "bnm,bmd->bnd"}> : () -> ()
    %cst_43 = arith.constant dense<0.000000e+00> : vector<8x8x8xf32>
    %110 = tpu.matmul %109, %95, %cst_43 {dimension_numbers = #tpu.dot_dimension_numbers<[2], [1], [1], [2], [0, 0, 0, 1, 1, 2], [0], [0]>} : vector<8x8x8xf32>, vector<8x8x8xf32>, vector<8x8x8xf32> -> vector<8x8x8xf32>
    "tpu.trace_stop"() : () -> ()
    %111 = vector.extract_strided_slice %56 {offsets = [0, 0, 24], sizes = [8, 8, 8], strides = [1, 1, 1]} : vector<8x8x96xf32> to vector<8x8x8xf32>
    %112 = vector.extract_strided_slice %56 {offsets = [0, 0, 56], sizes = [8, 8, 8], strides = [1, 1, 1]} : vector<8x8x96xf32> to vector<8x8x8xf32>
    %113 = vector.extract_strided_slice %56 {offsets = [0, 0, 88], sizes = [8, 8, 8], strides = [1, 1, 1]} : vector<8x8x96xf32> to vector<8x8x8xf32>
    "tpu.trace_start"() <{level = 10 : i32, message = "bnd,bmd->bnm"}> : () -> ()
    %cst_44 = arith.constant dense<0.000000e+00> : vector<8x8x8xf32>
    %114 = tpu.matmul %111, %112, %cst_44 {dimension_numbers = #tpu.dot_dimension_numbers<[2], [2], [1], [1], [0, 0, 0, 1, 1, 1], [0], [0]>} : vector<8x8x8xf32>, vector<8x8x8xf32>, vector<8x8x8xf32> -> vector<8x8x8xf32>
    "tpu.trace_stop"() : () -> ()
    %cst_45 = arith.constant 0.353553385 : f32
    %115 = vector.broadcast %cst_45 : f32 to vector<8x8x8xf32>
    %116 = arith.mulf %114, %115 : vector<8x8x8xf32>
    %cst_46 = arith.constant dense<0xFF800000> : vector<8x8xf32>
    %117 = vector.multi_reduction <maximumf>, %116, %cst_46 [2] : vector<8x8x8xf32> to vector<8x8xf32>
    %cst_47 = arith.constant 0xFF800000 : f32
    %118 = vector.broadcast %cst_47 : f32 to vector<8x8xf32>
    %119 = arith.maximumf %118, %117 : vector<8x8xf32>
    %120 = vector.shape_cast %119 : vector<8x8xf32> to vector<8x8x1xf32>
    %121 = vector.broadcast %120 : vector<8x8x1xf32> to vector<8x8x8xf32>
    %122 = arith.subf %116, %121 : vector<8x8x8xf32>
    %123 = math.exp %122 : vector<8x8x8xf32>
    %cst_48 = arith.constant dense<0.000000e+00> : vector<8x8xf32>
    %124 = vector.multi_reduction <add>, %123, %cst_48 [2] : vector<8x8x8xf32> to vector<8x8xf32>
    %125 = vector.shape_cast %124 : vector<8x8xf32> to vector<8x8x1xf32>
    %126 = vector.broadcast %125 : vector<8x8x1xf32> to vector<8x8x8xf32>
    %127 = arith.divf %123, %126 : vector<8x8x8xf32>
    "tpu.trace_start"() <{level = 10 : i32, message = "bnm,bmd->bnd"}> : () -> ()
    %cst_49 = arith.constant dense<0.000000e+00> : vector<8x8x8xf32>
    %128 = tpu.matmul %127, %113, %cst_49 {dimension_numbers = #tpu.dot_dimension_numbers<[2], [1], [1], [2], [0, 0, 0, 1, 1, 2], [0], [0]>} : vector<8x8x8xf32>, vector<8x8x8xf32>, vector<8x8x8xf32> -> vector<8x8x8xf32>
    "tpu.trace_stop"() : () -> ()
    %129 = tpu.concatenate %74, %92, %110, %128 in 2 : vector<8x8x8xf32>, vector<8x8x8xf32>, vector<8x8x8xf32>, vector<8x8x8xf32> -> vector<8x8x32xf32>
    %130 = vector.shape_cast %129 : vector<8x8x32xf32> to vector<64x32xf32>
    %131 = vector.extract_strided_slice %130 {offsets = [0, 0], sizes = [32, 32], strides = [1, 1]} : vector<64x32xf32> to vector<32x32xf32>
    %c0_50 = arith.constant 0 : index
    %c0_51 = arith.constant 0 : index
    %132 = vector.load %arg8[%c0_50, %c0_51] : memref<32x32xf32, #tpu.memory_space<vmem>>, vector<32x32xf32>
    %cst_52 = arith.constant dense<0.000000e+00> : vector<32x32xf32>
    %133 = tpu.matmul %131, %132, %cst_52 {dimension_numbers = #tpu.dot_dimension_numbers<[1], [0], [0], [1], [0, 0, 1, 1], [], []>} : vector<32x32xf32>, vector<32x32xf32>, vector<32x32xf32> -> vector<32x32xf32>
    %c0_53 = arith.constant 0 : index
    %c0_54 = arith.constant 0 : index
    %134 = vector.load %arg10[%c0_53, %c0_54] : memref<1x32xf32, #tpu.memory_space<vmem>>, vector<1x32xf32>
    %135 = vector.broadcast %134 : vector<1x32xf32> to vector<32x32xf32>
    %136 = arith.addf %133, %135 : vector<32x32xf32>
    %137 = vector.extract_strided_slice %130 {offsets = [32, 0], sizes = [32, 32], strides = [1, 1]} : vector<64x32xf32> to vector<32x32xf32>
    %c0_55 = arith.constant 0 : index
    %c0_56 = arith.constant 0 : index
    %138 = vector.load %arg9[%c0_55, %c0_56] : memref<32x32xf32, #tpu.memory_space<vmem>>, vector<32x32xf32>
    %cst_57 = arith.constant dense<0.000000e+00> : vector<32x32xf32>
    %139 = tpu.matmul %137, %138, %cst_57 {dimension_numbers = #tpu.dot_dimension_numbers<[1], [0], [0], [1], [0, 0, 1, 1], [], []>} : vector<32x32xf32>, vector<32x32xf32>, vector<32x32xf32> -> vector<32x32xf32>
    %c0_58 = arith.constant 0 : index
    %c0_59 = arith.constant 0 : index
    %140 = vector.load %arg11[%c0_58, %c0_59] : memref<1x32xf32, #tpu.memory_space<vmem>>, vector<1x32xf32>
    %141 = vector.broadcast %140 : vector<1x32xf32> to vector<32x32xf32>
    %142 = arith.addf %139, %141 : vector<32x32xf32>
    %143 = arith.addf %1, %136 : vector<32x32xf32>
    %144 = arith.addf %3, %142 : vector<32x32xf32>
    %145 = vector.broadcast %4 : f32 to vector<32x32xf32>
    %146 = arith.mulf %144, %145 : vector<32x32xf32>
    %cst_60 = arith.constant dense<0.000000e+00> : vector<32xf32>
    %147 = vector.multi_reduction <add>, %143, %cst_60 [1] : vector<32x32xf32> to vector<32xf32>
    %148 = vector.shape_cast %147 : vector<32xf32> to vector<32x1xf32>
    %cst_61 = arith.constant 3.200000e+01 : f32
    %149 = vector.broadcast %cst_61 : f32 to vector<32x1xf32>
    %150 = arith.divf %148, %149 : vector<32x1xf32>
    %151 = vector.broadcast %150 : vector<32x1xf32> to vector<32x32xf32>
    %152 = arith.subf %143, %151 : vector<32x32xf32>
    %153 = arith.mulf %152, %152 : vector<32x32xf32>
    %cst_62 = arith.constant dense<0.000000e+00> : vector<32xf32>
    %154 = vector.multi_reduction <add>, %153, %cst_62 [1] : vector<32x32xf32> to vector<32xf32>
    %155 = vector.shape_cast %154 : vector<32xf32> to vector<32x1xf32>
    %cst_63 = arith.constant 3.200000e+01 : f32
    %156 = vector.broadcast %cst_63 : f32 to vector<32x1xf32>
    %157 = arith.divf %155, %156 : vector<32x1xf32>
    %158 = vector.broadcast %150 : vector<32x1xf32> to vector<32x32xf32>
    %159 = arith.subf %143, %158 : vector<32x32xf32>
    %cst_64 = arith.constant 9.99999974E-6 : f32
    %160 = vector.broadcast %cst_64 : f32 to vector<32x1xf32>
    %161 = arith.addf %157, %160 : vector<32x1xf32>
    %162 = math.rsqrt %161 : vector<32x1xf32>
    %163 = vector.broadcast %162 : vector<32x1xf32> to vector<32x32xf32>
    %164 = arith.mulf %159, %163 : vector<32x32xf32>
    %c0_65 = arith.constant 0 : index
    %c0_66 = arith.constant 0 : index
    %165 = vector.load %arg12[%c0_65, %c0_66] : memref<1x32xf32, #tpu.memory_space<vmem>>, vector<1x32xf32>
    %166 = vector.broadcast %165 : vector<1x32xf32> to vector<32x32xf32>
    %167 = arith.mulf %164, %166 : vector<32x32xf32>
    %c0_67 = arith.constant 0 : index
    %c0_68 = arith.constant 0 : index
    %168 = vector.load %arg13[%c0_67, %c0_68] : memref<1x32xf32, #tpu.memory_space<vmem>>, vector<1x32xf32>
    %169 = vector.broadcast %168 : vector<1x32xf32> to vector<32x32xf32>
    %170 = arith.addf %167, %169 : vector<32x32xf32>
    %cst_69 = arith.constant dense<0.000000e+00> : vector<32xf32>
    %171 = vector.multi_reduction <add>, %146, %cst_69 [1] : vector<32x32xf32> to vector<32xf32>
    %172 = vector.shape_cast %171 : vector<32xf32> to vector<32x1xf32>
    %cst_70 = arith.constant 3.200000e+01 : f32
    %173 = vector.broadcast %cst_70 : f32 to vector<32x1xf32>
    %174 = arith.divf %172, %173 : vector<32x1xf32>
    %175 = vector.broadcast %174 : vector<32x1xf32> to vector<32x32xf32>
    %176 = arith.subf %146, %175 : vector<32x32xf32>
    %177 = arith.mulf %176, %176 : vector<32x32xf32>
    %cst_71 = arith.constant dense<0.000000e+00> : vector<32xf32>
    %178 = vector.multi_reduction <add>, %177, %cst_71 [1] : vector<32x32xf32> to vector<32xf32>
    %179 = vector.shape_cast %178 : vector<32xf32> to vector<32x1xf32>
    %cst_72 = arith.constant 3.200000e+01 : f32
    %180 = vector.broadcast %cst_72 : f32 to vector<32x1xf32>
    %181 = arith.divf %179, %180 : vector<32x1xf32>
    %182 = vector.broadcast %174 : vector<32x1xf32> to vector<32x32xf32>
    %183 = arith.subf %146, %182 : vector<32x32xf32>
    %cst_73 = arith.constant 9.99999974E-6 : f32
    %184 = vector.broadcast %cst_73 : f32 to vector<32x1xf32>
    %185 = arith.addf %181, %184 : vector<32x1xf32>
    %186 = math.rsqrt %185 : vector<32x1xf32>
    %187 = vector.broadcast %186 : vector<32x1xf32> to vector<32x32xf32>
    %188 = arith.mulf %183, %187 : vector<32x32xf32>
    %c0_74 = arith.constant 0 : index
    %c0_75 = arith.constant 0 : index
    %189 = vector.load %arg14[%c0_74, %c0_75] : memref<1x32xf32, #tpu.memory_space<vmem>>, vector<1x32xf32>
    %190 = vector.broadcast %189 : vector<1x32xf32> to vector<32x32xf32>
    %191 = arith.mulf %188, %190 : vector<32x32xf32>
    %c0_76 = arith.constant 0 : index
    %c0_77 = arith.constant 0 : index
    %192 = vector.load %arg15[%c0_76, %c0_77] : memref<1x32xf32, #tpu.memory_space<vmem>>, vector<1x32xf32>
    %193 = vector.broadcast %192 : vector<1x32xf32> to vector<32x32xf32>
    %194 = arith.addf %191, %193 : vector<32x32xf32>
    %c0_78 = arith.constant 0 : index
    %c0_79 = arith.constant 0 : index
    %195 = vector.load %arg20[%c0_78, %c0_79] : memref<2x32xf32, #tpu.memory_space<vmem>>, vector<1x32xf32>
    %c1 = arith.constant 1 : index
    %c0_80 = arith.constant 0 : index
    %196 = vector.load %arg20[%c1, %c0_80] : memref<2x32xf32, #tpu.memory_space<vmem>>, vector<1x32xf32>
    %197 = vector.broadcast %195 : vector<1x32xf32> to vector<32x32xf32>
    %198 = arith.mulf %194, %197 : vector<32x32xf32>
    %199 = vector.broadcast %196 : vector<1x32xf32> to vector<32x32xf32>
    %200 = arith.mulf %194, %199 : vector<32x32xf32>
    %201 = tpu.concatenate %170, %194, %198, %200 in 0 : vector<32x32xf32>, vector<32x32xf32>, vector<32x32xf32>, vector<32x32xf32> -> vector<128x32xf32>
    %c0_81 = arith.constant 0 : index
    %c0_82 = arith.constant 0 : index
    %202 = vector.load %arg16[%c0_81, %c0_82] : memref<32x128xf32, #tpu.memory_space<vmem>>, vector<32x128xf32>
    %cst_83 = arith.constant dense<0.000000e+00> : vector<128x128xf32>
    %203 = tpu.matmul %201, %202, %cst_83 {dimension_numbers = #tpu.dot_dimension_numbers<[1], [0], [0], [1], [0, 0, 1, 1], [], []>} : vector<128x32xf32>, vector<32x128xf32>, vector<128x128xf32> -> vector<128x128xf32>
    %c0_84 = arith.constant 0 : index
    %c0_85 = arith.constant 0 : index
    %204 = vector.load %arg17[%c0_84, %c0_85] : memref<1x128xf32, #tpu.memory_space<vmem>>, vector<1x128xf32>
    %205 = vector.broadcast %204 : vector<1x128xf32> to vector<128x128xf32>
    %206 = arith.addf %203, %205 : vector<128x128xf32>
    %cst_86 = arith.constant 5.000000e-01 : f32
    %207 = vector.broadcast %cst_86 : f32 to vector<128x128xf32>
    %208 = arith.mulf %207, %206 : vector<128x128xf32>
    %cst_87 = arith.constant 4.471500e-02 : f32
    %209 = vector.broadcast %cst_87 : f32 to vector<128x128xf32>
    %210 = arith.mulf %209, %206 : vector<128x128xf32>
    %211 = arith.mulf %210, %206 : vector<128x128xf32>
    %212 = arith.mulf %211, %206 : vector<128x128xf32>
    %213 = arith.addf %206, %212 : vector<128x128xf32>
    %cst_88 = arith.constant 0.797884583 : f32
    %214 = vector.broadcast %cst_88 : f32 to vector<128x128xf32>
    %215 = arith.mulf %214, %213 : vector<128x128xf32>
    %216 = math.tanh %215 : vector<128x128xf32>
    %cst_89 = arith.constant 1.000000e+00 : f32
    %217 = vector.broadcast %cst_89 : f32 to vector<128x128xf32>
    %218 = arith.addf %217, %216 : vector<128x128xf32>
    %219 = arith.mulf %208, %218 : vector<128x128xf32>
    %c0_90 = arith.constant 0 : index
    %c0_91 = arith.constant 0 : index
    %220 = vector.load %arg18[%c0_90, %c0_91] : memref<128x32xf32, #tpu.memory_space<vmem>>, vector<128x32xf32>
    %cst_92 = arith.constant dense<0.000000e+00> : vector<128x32xf32>
    %221 = tpu.matmul %219, %220, %cst_92 {dimension_numbers = #tpu.dot_dimension_numbers<[1], [0], [0], [1], [0, 0, 1, 1], [], []>} : vector<128x128xf32>, vector<128x32xf32>, vector<128x32xf32> -> vector<128x32xf32>
    %c0_93 = arith.constant 0 : index
    %c0_94 = arith.constant 0 : index
    %222 = vector.load %arg19[%c0_93, %c0_94] : memref<1x32xf32, #tpu.memory_space<vmem>>, vector<1x32xf32>
    %223 = vector.broadcast %222 : vector<1x32xf32> to vector<128x32xf32>
    %224 = arith.addf %221, %223 : vector<128x32xf32>
    %225 = vector.extract_strided_slice %224 {offsets = [0, 0], sizes = [32, 32], strides = [1, 1]} : vector<128x32xf32> to vector<32x32xf32>
    %c0_95 = arith.constant 0 : index
    %c0_96 = arith.constant 0 : index
    %226 = vector.load %arg21[%c0_95, %c0_96] : memref<3x32xf32, #tpu.memory_space<vmem>>, vector<1x32xf32>
    %227 = vector.extract_strided_slice %224 {offsets = [32, 0], sizes = [32, 32], strides = [1, 1]} : vector<128x32xf32> to vector<32x32xf32>
    %228 = vector.broadcast %226 : vector<1x32xf32> to vector<32x32xf32>
    %229 = arith.mulf %228, %227 : vector<32x32xf32>
    %c1_97 = arith.constant 1 : index
    %c0_98 = arith.constant 0 : index
    %230 = vector.load %arg21[%c1_97, %c0_98] : memref<3x32xf32, #tpu.memory_space<vmem>>, vector<1x32xf32>
    %231 = vector.extract_strided_slice %224 {offsets = [64, 0], sizes = [32, 32], strides = [1, 1]} : vector<128x32xf32> to vector<32x32xf32>
    %232 = vector.broadcast %230 : vector<1x32xf32> to vector<32x32xf32>
    %233 = arith.mulf %232, %231 : vector<32x32xf32>
    %234 = arith.addf %229, %233 : vector<32x32xf32>
    %c2 = arith.constant 2 : index
    %c0_99 = arith.constant 0 : index
    %235 = vector.load %arg21[%c2, %c0_99] : memref<3x32xf32, #tpu.memory_space<vmem>>, vector<1x32xf32>
    %236 = vector.extract_strided_slice %224 {offsets = [96, 0], sizes = [32, 32], strides = [1, 1]} : vector<128x32xf32> to vector<32x32xf32>
    %237 = vector.broadcast %235 : vector<1x32xf32> to vector<32x32xf32>
    %238 = arith.mulf %237, %236 : vector<32x32xf32>
    %239 = arith.addf %234, %238 : vector<32x32xf32>
    %240 = arith.addf %143, %225 : vector<32x32xf32>
    %241 = vector.shape_cast %240 : vector<32x32xf32> to vector<4x8x32xf32>
    %c0_100 = arith.constant 0 : index
    %c0_101 = arith.constant 0 : index
    %c0_102 = arith.constant 0 : index
    %242 = vector.load %arg23[%c0_100, %c0_101, %c0_102] : memref<4x8x32xf32, #tpu.memory_space<vmem>>, vector<4x8x32xf32>
    tpu.vector_store %arg23[%c0_100, %c0_101, %c0_102], %241 {strides = array<i32>} : memref<4x8x32xf32, #tpu.memory_space<vmem>>, vector<4x8x32xf32>,
    %243 = arith.addf %146, %239 : vector<32x32xf32>
    %244 = vector.broadcast %4 : f32 to vector<32x32xf32>
    %245 = arith.mulf %243, %244 : vector<32x32xf32>
    %246 = vector.shape_cast %245 : vector<32x32xf32> to vector<4x8x32xf32>
    %c0_103 = arith.constant 0 : index
    %c0_104 = arith.constant 0 : index
    %c0_105 = arith.constant 0 : index
    %247 = vector.load %arg24[%c0_103, %c0_104, %c0_105] : memref<4x8x32xf32, #tpu.memory_space<vmem>>, vector<4x8x32xf32>
    tpu.vector_store %arg24[%c0_103, %c0_104, %c0_105], %246 {strides = array<i32>} : memref<4x8x32xf32, #tpu.memory_space<vmem>>, vector<4x8x32xf32>,
    return
  }
  func.func @transform_0(%arg0: i32) -> (i32, i32, i32) {
    %c0_i32 = arith.constant 0 : i32
    %c0_i32_0 = arith.constant 0 : i32
    %c0_i32_1 = arith.constant 0 : i32
    return %arg0, %c0_i32, %c0_i32_0 : i32, i32, i32
  }
  func.func @transform_1(%arg0: i32) -> (i32, i32, i32) {
    %c0_i32 = arith.constant 0 : i32
    %c0_i32_0 = arith.constant 0 : i32
    %c0_i32_1 = arith.constant 0 : i32
    return %arg0, %c0_i32, %c0_i32_0 : i32, i32, i32
  }
  func.func @transform_2(%arg0: i32) -> (i32, i32) {
    %c0_i32 = arith.constant 0 : i32
    %c0_i32_0 = arith.constant 0 : i32
    %c0_i32_1 = arith.constant 0 : i32
    return %c0_i32, %c0_i32_0 : i32, i32
  }
  func.func @transform_3(%arg0: i32) -> (i32, i32) {
    %c0_i32 = arith.constant 0 : i32
    %c0_i32_0 = arith.constant 0 : i32
    %c0_i32_1 = arith.constant 0 : i32
    return %c0_i32, %c0_i32_0 : i32, i32
  }
  func.func @transform_4(%arg0: i32) -> (i32, i32) {
    %c0_i32 = arith.constant 0 : i32
    %c0_i32_0 = arith.constant 0 : i32
    %c0_i32_1 = arith.constant 0 : i32
    return %c0_i32, %c0_i32_0 : i32, i32
  }
  func.func @transform_5(%arg0: i32) -> (i32, i32) {
    %c0_i32 = arith.constant 0 : i32
    %c0_i32_0 = arith.constant 0 : i32
    %c0_i32_1 = arith.constant 0 : i32
    return %c0_i32, %c0_i32_0 : i32, i32
  }
  func.func @transform_6(%arg0: i32) -> (i32, i32) {
    %c0_i32 = arith.constant 0 : i32
    %c0_i32_0 = arith.constant 0 : i32
    %c0_i32_1 = arith.constant 0 : i32
    return %c0_i32, %c0_i32_0 : i32, i32
  }
  func.func @transform_7(%arg0: i32) -> (i32, i32) {
    %c0_i32 = arith.constant 0 : i32
    %c0_i32_0 = arith.constant 0 : i32
    %c0_i32_1 = arith.constant 0 : i32
    return %c0_i32, %c0_i32_0 : i32, i32
  }
  func.func @transform_8(%arg0: i32) -> (i32, i32) {
    %c0_i32 = arith.constant 0 : i32
    %c0_i32_0 = arith.constant 0 : i32
    %c0_i32_1 = arith.constant 0 : i32
    return %c0_i32, %c0_i32_0 : i32, i32
  }
  func.func @transform_9(%arg0: i32) -> (i32, i32) {
    %c0_i32 = arith.constant 0 : i32
    %c0_i32_0 = arith.constant 0 : i32
    %c0_i32_1 = arith.constant 0 : i32
    return %c0_i32, %c0_i32_0 : i32, i32
  }
  func.func @transform_10(%arg0: i32) -> (i32, i32) {
    %c0_i32 = arith.constant 0 : i32
    %c0_i32_0 = arith.constant 0 : i32
    %c0_i32_1 = arith.constant 0 : i32
    return %c0_i32, %c0_i32_0 : i32, i32
  }
  func.func @transform_11(%arg0: i32) -> (i32, i32) {
    %c0_i32 = arith.constant 0 : i32
    %c0_i32_0 = arith.constant 0 : i32
    %c0_i32_1 = arith.constant 0 : i32
    return %c0_i32, %c0_i32_0 : i32, i32
  }
  func.func @transform_12(%arg0: i32) -> (i32, i32) {
    %c0_i32 = arith.constant 0 : i32
    %c0_i32_0 = arith.constant 0 : i32
    %c0_i32_1 = arith.constant 0 : i32
    return %c0_i32, %c0_i32_0 : i32, i32
  }
  func.func @transform_13(%arg0: i32) -> (i32, i32) {
    %c0_i32 = arith.constant 0 : i32
    %c0_i32_0 = arith.constant 0 : i32
    %c0_i32_1 = arith.constant 0 : i32
    return %c0_i32, %c0_i32_0 : i32, i32
  }
  func.func @transform_14(%arg0: i32) -> (i32, i32) {
    %c0_i32 = arith.constant 0 : i32
    %c0_i32_0 = arith.constant 0 : i32
    %c0_i32_1 = arith.constant 0 : i32
    return %c0_i32, %c0_i32_0 : i32, i32
  }
  func.func @transform_15(%arg0: i32) -> (i32, i32) {
    %c0_i32 = arith.constant 0 : i32
    %c0_i32_0 = arith.constant 0 : i32
    %c0_i32_1 = arith.constant 0 : i32
    return %c0_i32, %c0_i32_0 : i32, i32
  }
  func.func @transform_16(%arg0: i32) -> (i32, i32) {
    %c0_i32 = arith.constant 0 : i32
    %c0_i32_0 = arith.constant 0 : i32
    %c0_i32_1 = arith.constant 0 : i32
    return %c0_i32, %c0_i32_0 : i32, i32
  }
  func.func @transform_17(%arg0: i32) -> (i32, i32) {
    %c0_i32 = arith.constant 0 : i32
    %c0_i32_0 = arith.constant 0 : i32
    %c0_i32_1 = arith.constant 0 : i32
    return %c0_i32, %c0_i32_0 : i32, i32
  }
  func.func @transform_18(%arg0: i32) -> (i32, i32) {
    %c0_i32 = arith.constant 0 : i32
    %c0_i32_0 = arith.constant 0 : i32
    %c0_i32_1 = arith.constant 0 : i32
    return %c0_i32, %c0_i32_0 : i32, i32
  }
  func.func @transform_19(%arg0: i32) -> (i32, i32) {
    %c0_i32 = arith.constant 0 : i32
    %c0_i32_0 = arith.constant 0 : i32
    %c0_i32_1 = arith.constant 0 : i32
    return %c0_i32, %c0_i32_0 : i32, i32
  }
  func.func @transform_20(%arg0: i32) -> (i32, i32) {
    %c0_i32 = arith.constant 0 : i32
    %c0_i32_0 = arith.constant 0 : i32
    %c0_i32_1 = arith.constant 0 : i32
    return %c0_i32, %c0_i32_0 : i32, i32
  }
  func.func @transform_21(%arg0: i32) -> i32 {
    %c0_i32 = arith.constant 0 : i32
    %c0_i32_0 = arith.constant 0 : i32
    return %c0_i32 : i32
  }
  func.func @transform_22(%arg0: i32) -> (i32, i32, i32) {
    %c0_i32 = arith.constant 0 : i32
    %c0_i32_0 = arith.constant 0 : i32
    %c0_i32_1 = arith.constant 0 : i32
    return %arg0, %c0_i32, %c0_i32_0 : i32, i32, i32
  }
  func.func @transform_23(%arg0: i32) -> (i32, i32, i32) {
    %c0_i32 = arith.constant 0 : i32
    %c0_i32_0 = arith.constant 0 : i32
    %c0_i32_1 = arith.constant 0 : i32
    return %arg0, %c0_i32, %c0_i32_0 : i32, i32, i32
  }
}

</mosaic_0001>

<bundles_post_ra>
// kernel: tpu_custom_call.1
= control target key start
LH: loop header
LB: loop body
LE: loop exit
PB: predicated region body
PF: predicated region fallthrough
CT: control target
= control target key end

     0   :  { %s7171_s0 = inlined_call_operand.vmem [shape: f32[8,8,32], index: 0, kind: input, shape index: {}]   ;;  %s7172_s1 = inlined_call_operand.vmem [shape: f32[8,8,32], index: 1, kind: input, shape index: {}]   ;;  %s7173_s2 = inlined_call_operand.vmem [shape: f32[1,32], index: 2, kind: input, shape index: {}]   ;;  %s7174_s3 = inlined_call_operand.hbm [shape: f32[1,32], index: 3, kind: input, shape index: {}]   ;;  %s7175_s4 = inlined_call_operand.hbm [shape: f32[1,32], index: 4, kind: input, shape index: {}]   ;;  %s7176_s5 = inlined_call_operand.hbm [shape: f32[1,32], index: 5, kind: input, shape index: {}]   ;;  %s7177_s6 = inlined_call_operand.vmem [shape: f32[32,96], index: 6, kind: input, shape index: {}]   ;;  %s7178_s7 = inlined_call_operand.hbm [shape: f32[32,32], index: 7, kind: input, shape index: {}]   ;;  %s7179_s8 = inlined_call_operand.hbm [shape: f32[32,32], index: 8, kind: input, shape index: {}]   ;;  %s7180_s9 = inlined_call_operand.vmem [shape: f32[1,32], index: 9, kind: input, shape index: {}]   ;;  %s7181_s10 = inlined_call_operand.vmem [shape: f32[1,32], index: 10, kind: input, shape index: {}]   ;;  %s7182_s11 = inlined_call_operand.vmem [shape: f32[1,32], index: 11, kind: input, shape index: {}]   ;;  %s7183_s12 = inlined_call_operand.vmem [shape: f32[1,32], index: 12, kind: input, shape index: {}]   ;;  %s7184_s13 = inlined_call_operand.vmem [shape: f32[1,32], index: 13, kind: input, shape index: {}]   ;;  %s7185_s14 = inlined_call_operand.vmem [shape: f32[1,32], index: 14, kind: input, shape index: {}]   ;;  %s7186_s15 = inlined_call_operand.hbm [shape: f32[32,128], index: 15, kind: input, shape index: {}]   ;;  %s7187_s16 = inlined_call_operand.vmem [shape: f32[1,128], index: 16, kind: input, shape index: {}]   ;;  %s7188_s17 = inlined_call_operand.vmem [shape: f32[128,32], index: 17, kind: input, shape index: {}]   ;;  %s7189_s18 = inlined_call_operand.vmem [shape: f32[1,32], index: 18, kind: input, shape index: {}]   ;;  %s7190_s19 = inlined_call_operand.vmem [shape: f32[2,32], index: 19, kind: input, shape index: {}]   ;;  %s7191_s20 = inlined_call_operand.vmem [shape: f32[3,32], index: 20, kind: input, shape index: {}]   ;;  %s7192_s21 = inlined_call_operand.<no memory space> [shape: f32[1], index: 21, kind: input, shape index: {}]   ;;  %s7193_s22 = inlined_call_operand.hbm [shape: f32[8,8,32], index: 22, kind: output, shape index: {0}]   ;;  %s7194_s23 = inlined_call_operand.hbm [shape: f32[8,8,32], index: 23, kind: output, shape index: {1}]  }
   0x1   :  { %7210 = sst [smem:[#allocation30_spill]] %s7171_s0 }
   0x2   :  { %7211 = sst [smem:[#allocation31_spill]] %s7172_s1 }
   0x3   :  { %7212 = sst [smem:[#allocation32_spill]] %s7173_s2 }
   0x4   :  { %7213 = sst [smem:[#allocation33_spill]] %s7174_s3 }
   0x5   :  { %7214 = sst [smem:[#allocation34_spill]] %s7175_s4 }
   0x6   :  { %7215 = sst [smem:[#allocation35_spill]] %s7176_s5 }
   0x7   :  { %7216 = sst [smem:[#allocation36_spill]] %s7177_s6 }
   0x8   :  { %7217 = sst [smem:[#allocation37_spill]] %s7178_s7 }
   0x9   :  { %7218 = sst [smem:[#allocation38_spill]] %s7189_s18 }
   0xa   :  { %7219 = sst [smem:[#allocation39_spill]] %s7191_s20 }
   0xb   :  { %7220 = sst [smem:[#allocation40_spill]] %s7193_s22 }
   0xc   :  { %7221 = sst [smem:[#allocation41_spill]] %s7194_s23 }
   0xd   :  { %29 = sst [smem:[#allocation2]] %s7192_s21 }
   0xe   :  { %30 = vsyncpa [#allocation4], 0 }
   0xf   :  { %31 = vsyncpa [#allocation7], 0 }
  0x10   :  { %32 = vsyncpa [#allocation10], 0 }
  0x11   :  { %33 = vsyncpa [#allocation13], 0 }
  0x12   :  { %34 = vsyncpa [#allocation5], 0 }
  0x13   :  { %36 = vsyncpa [#allocation5 + $0x1], 0 }
  0x14   :  { %37 = vsyncpa [#allocation16], 0 }
  0x15   :  { %39 = vsyncpa [#allocation16 + $0x1], 0  ;;  %s5731_s24 = smov 0   ;;  %s5733_s25 = smov 0  }
  0x16   :  { %s5735_s5 = smov 0   ;;  %s5737_s1 = smov 0  }
  0x17 LB: > { %7222 = sst [smem:[#allocation23_spill]] %s5570_s24  ;;  %s5752_s21 = sadd.s32 4294967295, %s5582_s1   ;;  %s5582_s1 = sphi %s5737_s1, %s7262_s1   ;;  %s5578_s5 = sphi %s5735_s5, %s7267_s5   ;;  %s5574_s25 = sphi %s5733_s25, %s7266_s25   ;;  %s5570_s24 = sphi %s5731_s24, %s7265_s24  }
  0x18   : > { %7223 = sst [smem:[#allocation24_spill]] %s5578_s5  ;;  %s4710_s26 = sadd.s32 4294967294, %s5582_s1  }
  0x19   : > { %7224 = sst [smem:[#allocation25_spill]] %s5582_s1  ;;  %s5756_s2 = sadd.s32 1, %s5582_s1  }
  0x1a   : > { %7225 = sst [smem:[#allocation26_spill]] %s5756_s2  ;;  %s524_s6 = sadd.s32 1, %s5578_s5 }
  0x1b   : > { %s521_s27 = ssub.s32 %s5582_s1, %s5756_s2  ;;  %p534_p0 = scmp.ne.s32.totalorder %s5578_s5, %s5574_s25 }
  0x1c   : > { %p522_p1 = scmp.eq.s32.totalorder %s521_s27, 0  ;;  %p535_p2 = scmp.eq.s32.totalorder %s5752_s21, 1 }
  0x1d   : > { %p540_p3 = scmp.ne.s32.totalorder %s5574_s25, %s5570_s24  ;;  %p541_p4 = scmp.eq.s32.totalorder %s4710_s26, 1 }
  0x1e   : > { %s5767_s7 = scalar_select %p522_p1, %s5578_s5, %s524_s6  }
  0x1f   : > { %p5769_p5 = por %p535_p2, %p534_p0  ;;  %p5773_p6 = por %p541_p4, %p540_p3 }
  0x20   : > { %7226 = sst [smem:[#allocation27_spill]] %s5767_s7  ;;  %p4711_p7 = scmp.ge.s32.totalorder %s5582_s1, 1 }
  0x21   : > { %s7227_s28 = scalar_select %p5769_p5, 1, 0 }
  0x22   : > { %s7229_s29 = scalar_select %p5773_p6, 1, 0 }
  0x23   : > { %7228 = sst [smem:[#allocation28_spill]] %s7227_s28  ;;  %p574_p8 = scmp.lt.s32.totalorder %s5582_s1, 3 }
  0x24   : > { %7230 = sst [smem:[#allocation29_spill]] %s7229_s29  ;;  %p4944_p9 = scmp.eq.s32.totalorder %s5752_s21, 0 }
  0x25   : > { %p5780_p10 = pnand %p4711_p7, %p574_p8  ;;  %s7232_s30 = sld [smem:[#allocation34_spill]] }
  0x26   : > { %s5584_s6 = smov [#allocation6]   ;;  %s7233_s2 = sld [smem:[#allocation37_spill]] }
  0x27   : > { %p4918_p11 = pneg %p5780_p10  ;;  %s603_s27 = sshll.u32 %s5584_s6, 4  ;;  %s604_s27 = int_to_ptr.vmem [resolvable:$true] %s603_s27 }
  0x28   : > { %s5585_s0 = smov [#allocation9]   ;;  %s5587_s6 = smov 8  }
  0x29   : > { %p5794_p12 = pnand %p4944_p9, %p4918_p11  ;;  %s629_s4 = sshll.u32 %s5585_s0, 4  ;;  %s630_s4 = int_to_ptr.vmem [resolvable:$true] %s629_s4 }
  0x2a   : > { %s7235_s7 = sld [smem:[#allocation33_spill]]  ;;  %s5588_s23 = smov [#allocation3]  }
  0x2b   : > { %s601_s26 = sshll.u32 %s7232_s30, 4  ;;  %s5586_s30 = smov 128   ;;  %s602_s26 = int_to_ptr.hbm [resolvable:$true] %s601_s26 }
  0x2c   : > { %s627_s29 = sshll.u32 %s7233_s2, 4  ;;  %s591_s20 = sshll.u32 %s5588_s23, 4  ;;  %s628_s29 = int_to_ptr.hbm [resolvable:$true] %s627_s29  ;;  %s592_s20 = int_to_ptr.vmem [resolvable:$true] %s591_s20 }
  0x2d   : > { %4924 = dma.hbm_to_vmem [thread:$0]  (!%p5794_p12), %s602_s26, 16, %s604_s27, [#allocation7]  }
  0x2e   : > { %4930 = dma.hbm_to_vmem [thread:$0]  (!%p5794_p12), %s628_s29, 512, %s630_s4, [#allocation10], %s5586_s30, %s5586_s30, %s5587_s6  }
  0x2f   : > { %s7236_s0 = sld [smem:[#allocation35_spill]]  ;;  %s5589_s26 = smov [#allocation8]  }
  0x30   : > { %s589_s1 = sshll.u32 %s7235_s7, 4  ;;  %s615_s27 = sshll.u32 %s5589_s26, 4  ;;  %s590_s1 = int_to_ptr.hbm [resolvable:$true] %s589_s1  ;;  %s616_s27 = int_to_ptr.vmem [resolvable:$true] %s615_s27 }
  0x31   : > { %4921 = dma.hbm_to_vmem [thread:$0]  (!%p5794_p12), %s590_s1, 16, %s592_s20, [#allocation4]  }
  0x32   : > { %s641_s5 = sshll.u32 %s7179_s8, 4  ;;  %s673_s7 = sshll.u32 %s7186_s15, 4  ;;  %s642_s5 = int_to_ptr.hbm [resolvable:$true] %s641_s5  ;;  %s674_s7 = int_to_ptr.hbm [resolvable:$true] %s673_s7 }
  0x33   : > { %s5590_s22 = smov [#allocation11]   ;;  %s5591_s20 = smov [#allocation12]  }
  0x34   : > { %s643_s28 = sshll.u32 %s5590_s22, 4  ;;  %s675_s1 = sshll.u32 %s5591_s20, 4  ;;  %s644_s28 = int_to_ptr.vmem [resolvable:$true] %s643_s28  ;;  %s676_s1 = int_to_ptr.vmem [resolvable:$true] %s675_s1 }
  0x35   : > { %s613_s18 = sshll.u32 %s7236_s0, 4  ;;  %727 = sbr.rel (%p5780_p10) target bundleno = 3519 (0xdbf), region = 108  ;;  %s614_s18 = int_to_ptr.hbm [resolvable:$true] %s613_s18 }
  0x36   : > { %4927 = dma.hbm_to_vmem [thread:$0]  (!%p5794_p12), %s614_s18, 16, %s616_s27, [#allocation7]  }
  0x37   : > { %4933 = dma.hbm_to_vmem [thread:$0]  (!%p5794_p12), %s642_s5, 512, %s644_s28, [#allocation10], %s5586_s30, %s5586_s30, %s5587_s6  }
  0x38   : > { %4936 = dma.hbm_to_vmem [thread:$0]  (!%p5794_p12), %s674_s7, 512, %s676_s1, [#allocation13], %s5586_s30, %s5586_s30, %s5587_s6  }
  0x3a   : > { %5545 = dma.done.wait (%p4944_p9), [#allocation4], 16  }
  0x3b   : > { %5547 = vsyncadd (%p4944_p9), [#allocation4], 4294967280 }
  0x3c   : > { %5549 = dma.done.wait (%p4944_p9), [#allocation7], 32  }
  0x3d   : > { %5551 = vsyncadd (%p4944_p9), [#allocation7], 4294967264 }
  0x3e   : > { %5553 = dma.done.wait (%p4944_p9), [#allocation10], 1024  }
  0x3f   : > { %5555 = vsyncadd (%p4944_p9), [#allocation10], 4294966272 }
  0x40   : > { %5557 = dma.done.wait (%p4944_p9), [#allocation13], 512  }
  0x41   : > { %5559 = vsyncadd (%p4944_p9), [#allocation13], 4294966784  ;;  %s4728_s18 = sshll.u32 %s5752_s21, 2  ;;  %vm850_vm0 = vcmask 261120   ;;  %s7237_s6 = sld [smem:[#allocation31_spill]]  ;;  %v5592_v14 = vmov 32.0  }
  0x42   : > { %p828_p13 = scmp.lt.s32.totalorder %s4728_s18, 7  ;;  %s7238_s29 = sld [smem:[#allocation30_spill]]  ;;  %5090 = vrcp.f32 %v5592_v14 }
  0x43   : > { %s7239_s2 = sld [smem:[#allocation36_spill]]  ;;  %s5594_s26 = smov 64  }
  0x44   : > { %s7269_s18 = smov (!%p828_p13, %s4728_s18), 7  ;;  %s7240_s30 = sld [smem:[#allocation32_spill]] }
  0x45   : > { %s4729_s24 = sshll.u32 %s7269_s18, 3  ;;  %s5595_s27 = smov 88  }
  0x46   : > { %s5597_s5 = smov 56   ;;  %s5598_s23 = smov 80  }
  0x47   : > { %s5844_s0 = scalar_lea.vmem %s7237_s6, %s4729_s24  ;;  %s5593_s6 = smov 96  }
  0x48   : > { %s5849_s4 = scalar_lea.vmem %s7238_s29, %s4729_s24  ;;  %v845_v0 = vld [vmem:[%s5844_s0] sm:$0xff]  ;;  %v846_v6 = vld [vmem:[%s5844_s0 + $0x8] sm:$0xff]  ;;  %v847_v12 = vld [vmem:[%s5844_s0 + $0x10] sm:$0xff]  ;;  %v5091_v15 = vpop.eup %5090  ;;  %s5596_s29 = smov 120  }
  0x49   : > { %v843_v1 = vld [vmem:[%s5849_s4 + $0x10] sm:$0xff]  ;;  %v841_v2 = vld [vmem:[%s5849_s4] sm:$0xff]  ;;  %v962_v3 = vsel %vm850_vm0, %v845_v0, 0.0  ;;  %v842_v7 = vld [vmem:[%s5849_s4 + $0x8] sm:$0xff]  ;;  %v965_v9 = vsel %vm850_vm0, %v846_v6, 0.0  ;;  %v968_v13 = vsel %vm850_vm0, %v847_v12, 0.0  ;;  %vm868_vm1 = vweird.f32 %v5091_v15 }
  0x4a   : > { %v857_v4 = vsel %vm850_vm0, %v843_v1, 0.0  ;;  %v851_v5 = vsel %vm850_vm0, %v841_v2, 0.0  ;;  %v844_v8 = vld [vmem:[%s5849_s4 + $0x18] sm:$0xff]  ;;  %963 = vadd.xlane.f32.xlu2 %v962_v3  ;;  %v854_v10 = vsel %vm850_vm0, %v842_v7, 0.0  ;;  %v864_v16 = vmul.f32 32.0, %v5091_v15  ;;  %v1068_v59 = vld [vmem:[%s7239_s2 + $0x10] sm:$0xff] }
  0x4b   : > { %858 = vadd.xlane.f32.xlu1 %v857_v4  ;;  %852 = vadd.xlane.f32.xlu0 %v851_v5  ;;  %v860_v11 = vsel %vm850_vm0, %v844_v8, 0.0  ;;  %v848_v40 = vld [vmem:[%s5844_s0 + $0x18] sm:$0xff]  ;;  %v1067_v60 = vld [vmem:[%s7239_s2 + $0x8] sm:$0xff]  ;;  %v1066_v61 = vld [vmem:[%s7239_s2] sm:$0xff]  ;;  %s5599_s7 = smov 112   ;;  %s5600_s22 = smov 48  }
  0x4c   : > { %v865_v17 = vsub.f32 1.0, %v864_v16  ;;  %v971_v45 = vsel %vm850_vm0, %v848_v40, 0.0  ;;  %v1069_v58 = vld [vmem:[%s7239_s2 + $0x18] sm:$0xff]  ;;  %s5601_s28 = smov 72   ;;  %s5602_s20 = smov 104  }
  0x4d   : > { %1106 = vmatpush.msra.mxu0 %v1069_v58  ;;  %s5603_s1 = smov 40   ;;  %s5604_s18 = smov 8  }
  0x4e   : > { %v866_v18 = vmul.f32 %v5091_v15, %v865_v17  ;;  %s5605_s24 = smov 16   ;;  %s5606_s3 = smov 24  }
  0x4f   : > { %1107 = vmatpush.msra.mxu0 %v1068_v59 }
  0x50   : > { %v867_v19 = vadd.f32 %v5091_v15, %v866_v18 }
  0x51   : > { %1108 = vmatpush.msra.mxu0 %v1067_v60 }
  0x52   : > { %966 = vadd.xlane.f32.xlu2 %v965_v9  ;;  %v5865_v20 = vsel %vm868_vm1, %v5091_v15, %v867_v19 }
  0x53   : > { %861 = vadd.xlane.f32.xlu1 %v860_v11  ;;  %855 = vadd.xlane.f32.xlu0 %v854_v10 }
  0x54   : > { %1109 = vmatpush.msra.mxu0 %v1066_v61 }
  0x5b   : > { %969 = vadd.xlane.f32.xlu1 %v968_v13 }
  0xbd   : > { %v964_v21 = vpop.xlane.xlu2 %963 }
  0xbe   : > { %v859_v22 = vpop.xlane.xlu1 %858  ;;  %v853_v24 = vpop.xlane.xlu0 %852  ;;  %v974_v36 = vmul.f32 %v964_v21, %v5865_v20 }
  0xbf   : > { %v872_v23 = vmul.f32 %v5865_v20, %v859_v22  ;;  %v870_v25 = vmul.f32 %v5865_v20, %v853_v24 }
  0xc0   : > { %v5890_v43 = vsub.f32 %v845_v0, %v974_v36 }
  0xc1   : > { %v5869_v26 = vsub.f32 %v843_v1, %v872_v23  ;;  %v5871_v27 = vsub.f32 %v841_v2, %v870_v25 }
  0xc2   : > { %v982_v51 = vmul.f32 %v5890_v43, %v5890_v43 }
  0xc3   : > { %v880_v28 = vmul.f32 %v5869_v26, %v5869_v26  ;;  %v878_v29 = vmul.f32 %v5871_v27, %v5871_v27 }
  0xc4   : > { %v986_v54 = vsel %vm850_vm0, %v982_v51, 0.0 }
  0xc5   : > { %v888_v30 = vsel %vm850_vm0, %v880_v28, 0.0  ;;  %v967_v31 = vpop.xlane.xlu2 %966  ;;  %v882_v32 = vsel %vm850_vm0, %v878_v29, 0.0 }
  0xc6   : > { %889 = vadd.xlane.f32.xlu1 %v888_v30  ;;  %v862_v33 = vpop.xlane.xlu1 %861  ;;  %v975_v34 = vmul.f32 %v967_v31, %v5865_v20  ;;  %883 = vadd.xlane.f32.xlu0 %v882_v32  ;;  %v856_v35 = vpop.xlane.xlu0 %855 }
  0xc7   : > { %v871_v37 = vmul.f32 %v5865_v20, %v856_v35  ;;  %v873_v38 = vmul.f32 %v5865_v20, %v862_v33  ;;  %v5073_v35 = vld [vmem:[%s7240_s30] ss:$0 sm:$0xff]  ;;  %s849_s30 = sld [smem:[#allocation2]] }
  0xc8   : > { %v5883_v39 = vsub.f32 %v846_v6, %v975_v34 }
  0xc9   : > { %v5886_v41 = vsub.f32 %v842_v7, %v871_v37  ;;  %v5892_v44 = vsub.f32 %v844_v8, %v873_v38 }
  0xca   : > { %v983_v42 = vmul.f32 %v5883_v39, %v5883_v39 }
  0xcb   : > { %v879_v46 = vmul.f32 %v5886_v41, %v5886_v41  ;;  %v881_v52 = vmul.f32 %v5892_v44, %v5892_v44 }
  0xcc   : > { %v989_v47 = vsel %vm850_vm0, %v983_v42, 0.0  ;;  %v5074_v42 = vld [vmem:[#allocation3] ss:$0 sm:$0xff] }
  0xcd   : > { %v885_v48 = vsel %vm850_vm0, %v879_v46, 0.0  ;;  %v891_v55 = vsel %vm850_vm0, %v881_v52, 0.0 }
  0xce   : > { %990 = vadd.xlane.f32.xlu1 %v989_v47  ;;  %v970_v49 = vpop.xlane.xlu1 %969  ;;  %972 = vadd.xlane.f32.xlu0 %v971_v45 }
  0xcf   : > { %886 = vadd.xlane.f32.xlu2 %v885_v48  ;;  %v976_v50 = vmul.f32 %v970_v49, %v5865_v20 }
  0xd1   : > { %v5904_v53 = vsub.f32 %v847_v12, %v976_v50 }
  0xd3   : > { %v984_v56 = vmul.f32 %v5904_v53, %v5904_v53 }
  0xd5   : > { %v992_v57 = vsel %vm850_vm0, %v984_v56, 0.0 }
  0xd6   : > { %987 = vadd.xlane.f32.xlu0 %v986_v54 }
  0xd7   : > { %892 = vadd.xlane.f32.xlu2 %v891_v55 }
  0xdf   : > { %993 = vadd.xlane.f32.xlu2 %v992_v57 }
 0x139   : > { %v890_v62 = vpop.xlane.xlu1 %889  ;;  %v884_v0 = vpop.xlane.xlu0 %883 }
 0x13a   : > { %v896_v63 = vmul.f32 %v890_v62, %v5865_v20  ;;  %v894_v1 = vmul.f32 %v884_v0, %v5865_v20 }
 0x13c   : > { %v5925_v2 = vadd.f32 1e-05, %v896_v63  ;;  %v898_v3 = vadd.f32 1e-05, %v894_v1 }
 0x13e   : > { %5092 = vrsqrt.f32 %v5925_v2  ;;  %vm908_vm3 = vweird.f32 %v898_v3  ;;  %vm928_vm7 = vweird.f32 %v5925_v2 }
 0x13f   : > { %5094 = vrsqrt.f32 %v898_v3 }
 0x141   : > { %v973_v5 = vpop.xlane.xlu0 %972  ;;  %v991_v16 = vpop.xlane.xlu1 %990 }
 0x142   : > { %v887_v4 = vpop.xlane.xlu2 %886  ;;  %v977_v7 = vmul.f32 %v973_v5, %v5865_v20  ;;  %v999_v29 = vmul.f32 %v991_v16, %v5865_v20 }
 0x143   : > { %v895_v6 = vmul.f32 %v887_v4, %v5865_v20 }
 0x144   : > { %v5930_v8 = vpop.eup %5092  ;;  %v5932_v11 = vsub.f32 %v848_v40, %v977_v7  ;;  %v5949_v38 = vadd.f32 1e-05, %v999_v29 }
 0x145   : > { %v5095_v9 = vpop.eup %5094  ;;  %v899_v10 = vadd.f32 1e-05, %v895_v6  ;;  %v923_v12 = vmul.f32 %v5930_v8, %v5925_v2  ;;  %vm929_vm8 = vweird.f32 %v5930_v8 }
 0x146   : > { %v903_v13 = vmul.f32 %v5095_v9, %v898_v3  ;;  %v985_v14 = vmul.f32 %v5932_v11, %v5932_v11  ;;  %vm909_vm2 = vweird.f32 %v5095_v9  ;;  %vm5957_vm10 = vmor %vm928_vm7, %vm929_vm8 }
 0x147   : > { %5096 = vrsqrt.f32 %v899_v10  ;;  %v924_v18 = vmul.f32 %v5930_v8, %v923_v12  ;;  %vm910_vm4 = vmor %vm908_vm3, %vm909_vm2  ;;  %vm918_vm5 = vweird.f32 %v899_v10  ;;  %vm1022_vm2 = vweird.f32 %v5949_v38 }
 0x148   : > { %v904_v15 = vmul.f32 %v5095_v9, %v903_v13  ;;  %v995_v17 = vsel %vm850_vm0, %v985_v14, 0.0 }
 0x149   : > { %996 = vadd.xlane.f32.xlu0 %v995_v17  ;;  %v988_v22 = vpop.xlane.xlu0 %987  ;;  %v925_v31 = vmul.f32 0.5, %v924_v18 }
 0x14a   : > { %v905_v19 = vmul.f32 0.5, %v904_v15  ;;  %v893_v21 = vpop.xlane.xlu2 %892  ;;  %v998_v24 = vmul.f32 %v988_v22, %v5865_v20 }
 0x14b   : > { %v897_v23 = vmul.f32 %v893_v21, %v5865_v20  ;;  %v926_v45 = vsub.f32 1.5, %v925_v31 }
 0x14c   : > { %v906_v25 = vsub.f32 1.5, %v905_v19  ;;  %v5943_v34 = vadd.f32 1e-05, %v998_v24 }
 0x14d   : > { %v5097_v28 = vpop.eup %5096  ;;  %v901_v30 = vadd.f32 1e-05, %v897_v23  ;;  %v927_v54 = vmul.f32 %v5930_v8, %v926_v45 }
 0x14e   : > { %v907_v32 = vmul.f32 %v5095_v9, %v906_v25  ;;  %v913_v33 = vmul.f32 %v5097_v28, %v899_v10  ;;  %vm919_vm6 = vweird.f32 %v5097_v28  ;;  %vm1012_vm14 = vweird.f32 %v5943_v34 }
 0x14f   : > { %5098 = vrsqrt.f32 %v901_v30  ;;  %vm920_vm9 = vmor %vm918_vm5, %vm919_vm6  ;;  %v931_v1 = vsel %vm5957_vm10, %v5930_v8, %v927_v54  ;;  %vm938_vm11 = vweird.f32 %v901_v30 }
 0x150   : > { %v914_v36 = vmul.f32 %v5097_v28, %v913_v33  ;;  %5100 = vrsqrt.f32 %v5943_v34  ;;  %v911_v37 = vsel %vm910_vm4, %v5095_v9, %v907_v32  ;;  %v944_v6 = vmul.f32 %v931_v1, %v5869_v26  ;;  %v5076_v33 = vld [vmem:[#allocation8] ss:$0 sm:$0xff] }
 0x151   : > { %v942_v40 = vmul.f32 %v911_v37, %v5871_v27  ;;  %5102 = vrsqrt.f32 %v5949_v38 }
 0x152   : > { %v915_v46 = vmul.f32 0.5, %v914_v36  ;;  %v994_v47 = vpop.xlane.xlu2 %993 }
 0x153   : > { %v950_v48 = vmul.f32 %v5073_v35, %v942_v40  ;;  %v1000_v51 = vmul.f32 %v994_v47, %v5865_v20 }
 0x154   : > { %v916_v49 = vsub.f32 1.5, %v915_v46 }
 0x155   : > { %v5099_v50 = vpop.eup %5098  ;;  %v958_v52 = vadd.f32 %v5074_v42, %v950_v48  ;;  %v1004_v61 = vadd.f32 1e-05, %v1000_v51 }
 0x156   : > { %v5101_v27 = vpop.eup %5100  ;;  %v917_v55 = vmul.f32 %v5097_v28, %v916_v49  ;;  %v933_v56 = vmul.f32 %v5099_v50, %v901_v30  ;;  %vm939_vm12 = vweird.f32 %v5099_v50 }
 0x157   : > { %v1007_v58 = vmul.f32 %v5101_v27, %v5943_v34  ;;  %4732 = vmatmul.msk.f32.vlgmr.msra.gmra.mxu0 %vm850_vm0, %v958_v52  ;;  %v5103_v2 = vpop.eup %5102  ;;  %5104 = vrsqrt.f32 %v1004_v61  ;;  %vm940_vm13 = vmor %vm938_vm11, %vm939_vm12  ;;  %vm1013_vm15 = vweird.f32 %v5101_v27  ;;  %vm1032_vm5 = vweird.f32 %v1004_v61 }
 0x158   : > { %v934_v59 = vmul.f32 %v5099_v50, %v933_v56  ;;  %v921_v60 = vsel %vm920_vm9, %v5097_v28, %v917_v55  ;;  %v1017_v7 = vmul.f32 %v5103_v2, %v5949_v38  ;;  %vm1014_vm1 = vmor %vm1012_vm14, %vm1013_vm15  ;;  %vm1023_vm3 = vweird.f32 %v5103_v2 }
 0x159   : > { %v943_v62 = vmul.f32 %v921_v60, %v5886_v41  ;;  %v1008_v0 = vmul.f32 %v5101_v27, %v1007_v58  ;;  %v952_v41 = vmul.f32 %v5073_v35, %v944_v6  ;;  %vm1024_vm4 = vmor %vm1022_vm2, %vm1023_vm3  ;;  %vm1138_vm11 = vcmask 64512  }
 0x15a   : > { %v935_v63 = vmul.f32 0.5, %v934_v59  ;;  %v1018_v12 = vmul.f32 %v5103_v2, %v1017_v7 }
 0x15b   : > { %v951_v3 = vmul.f32 %v5073_v35, %v943_v62  ;;  %v1009_v10 = vmul.f32 0.5, %v1008_v0  ;;  %v960_v15 = vadd.f32 %v5074_v42, %v952_v41 }
 0x15c   : > { %v936_v4 = vsub.f32 1.5, %v935_v63  ;;  %v1019_v17 = vmul.f32 0.5, %v1018_v12 }
 0x15d   : > { %v959_v5 = vadd.f32 %v5074_v42, %v951_v3  ;;  %v1010_v13 = vsub.f32 1.5, %v1009_v10  ;;  %v5105_v14 = vpop.eup %5104 }
 0x15e   : > { %v937_v9 = vmul.f32 %v5099_v50, %v936_v4  ;;  %v1027_v18 = vmul.f32 %v5105_v14, %v1004_v61  ;;  %v1020_v21 = vsub.f32 1.5, %v1019_v17  ;;  %vm1033_vm6 = vweird.f32 %v5105_v14 }
 0x15f   : > { %4733 = vmatmul.msk.f32.gmra.mxu0 %vm850_vm0, %v959_v5  ;;  %v1011_v26 = vmul.f32 %v5101_v27, %v1010_v13  ;;  %vm1034_vm7 = vmor %vm1032_vm5, %vm1033_vm6 }
 0x160   : > { %v941_v8 = vsel %vm940_vm13, %v5099_v50, %v937_v9  ;;  %v1028_v22 = vmul.f32 %v5105_v14, %v1027_v18  ;;  %v1021_v28 = vmul.f32 %v5103_v2, %v1020_v21 }
 0x161   : > { %v945_v16 = vmul.f32 %v941_v8, %v5892_v44  ;;  %v1015_v23 = vsel %vm1014_vm1, %v5101_v27, %v1011_v26  ;;  %v5075_v44 = vld [vmem:[#allocation6] ss:$0 sm:$0xff] }
 0x162   : > { %v1046_v25 = vmul.f32 %v1015_v23, %v5890_v43  ;;  %v1029_v29 = vmul.f32 0.5, %v1028_v22  ;;  %v1025_v32 = vsel %vm1024_vm4, %v5103_v2, %v1021_v28 }
 0x163   : > { %v953_v19 = vmul.f32 %v5073_v35, %v945_v16  ;;  %v1047_v35 = vmul.f32 %v1025_v32, %v5883_v39 }
 0x164   : > { %v1054_v30 = vmul.f32 %v5075_v44, %v1046_v25  ;;  %v1030_v31 = vsub.f32 1.5, %v1029_v29 }
 0x165   : > { %v961_v24 = vadd.f32 %v5074_v42, %v953_v19  ;;  %v1055_v43 = vmul.f32 %v5075_v44, %v1047_v35 }
 0x166   : > { %v1062_v34 = vadd.f32 %v5076_v33, %v1054_v30  ;;  %v1031_v36 = vmul.f32 %v5105_v14, %v1030_v31 }
 0x167   : > { %4734 = vmatmul.msk.f32.gmra.mxu0 %vm850_vm0, %v960_v15  ;;  %v1063_v38 = vadd.f32 %v5076_v33, %v1055_v43 }
 0x168   : > { %v1035_v37 = vsel %vm1034_vm7, %v5105_v14, %v1031_v36 }
 0x169   : > { %v1048_v40 = vmul.f32 %v1035_v37, %v5904_v53 }
 0x16b   : > { %v1056_v42 = vmul.f32 %v5075_v44, %v1048_v40 }
 0x16d   : > { %v1064_v45 = vadd.f32 %v5076_v33, %v1056_v42 }
 0x16f   : > { %4735 = vmatmul.msk.f32.gmra.mxu0 %vm850_vm0, %v961_v24 }
 0x177   : > { %4736 = vmatmul.msk.f32.gmra.mxu0 %vm850_vm0, %v1062_v34 }
 0x17f   : > { %4737 = vmatmul.msk.f32.gmra.mxu0 %vm850_vm0, %v1063_v38 }
 0x187   : > { %4738 = vmatmul.msk.f32.gmra.mxu0 %vm850_vm0, %v1064_v45 }
 0x1bc   : > { %v997_v46 = vpop.xlane.xlu0 %996 }
 0x1bd   : > { %v1001_v47 = vmul.f32 %v997_v46, %v5865_v20 }
 0x1bf   : > { %v1005_v48 = vadd.f32 1e-05, %v1001_v47 }
 0x1c1   : > { %5106 = vrsqrt.f32 %v1005_v48  ;;  %vm1042_vm9 = vweird.f32 %v1005_v48 }
 0x1c7   : > { %v5107_v39 = vpop.eup %5106 }
 0x1c8   : > { %v1037_v49 = vmul.f32 %v5107_v39, %v1005_v48  ;;  %vm1043_vm8 = vweird.f32 %v5107_v39 }
 0x1c9   : > { %vm1044_vm10 = vmor %vm1042_vm9, %vm1043_vm8 }
 0x1ca   : > { %v1038_v50 = vmul.f32 %v5107_v39, %v1037_v49 }
 0x1cc   : > { %v1039_v51 = vmul.f32 0.5, %v1038_v50 }
 0x1ce   : > { %v1040_v52 = vsub.f32 1.5, %v1039_v51 }
 0x1d0   : > { %v1041_v27 = vmul.f32 %v5107_v39, %v1040_v52 }
 0x1d2   : > { %v1045_v53 = vsel %vm1044_vm10, %v5107_v39, %v1041_v27 }
 0x1d3   : > { %v1049_v55 = vmul.f32 %v1045_v53, %v5932_v11 }
 0x1d4   : > { %v5982_v54 = vpop.f32.mrf.mxu0 }
 0x1d5   : > { %1136 = vrot.lane.b32.xlu1 %v5982_v54, %s5593_s6  ;;  %v1057_v56 = vmul.f32 %v5075_v44, %v1049_v55 }
 0x1d7   : > { %v1065_v57 = vadd.f32 %v5076_v33, %v1057_v56 }
 0x1d9   : > { %4739 = vmatmul.msk.f32.gmra.mxu0 %vm850_vm0, %v1065_v57 }
 0x1dc   : > { %v5988_v58 = vpop.f32.mrf.mxu0 }
 0x1dd   : > { %1164 = vrot.lane.b32.xlu0 %v5988_v58, %s5593_s6 }
 0x1e4   : > { %v5992_v59 = vpop.f32.mrf.mxu0 }
 0x1e5   : > { %1191 = vrot.lane.b32.xlu2 %v5992_v59, %s5593_s6  ;;  %v5013_v6 = vpack.i.bf16 %v5992_v59, %v5982_v54 }
 0x1ec   : > { %v5996_v60 = vpop.f32.mrf.mxu0 }
 0x1ed   : > { %1218 = vrot.lane.b32.xlu2 %v5996_v60, %s5593_s6  ;;  %v5018_v0 = vpack.i.bf16 %v5988_v58, %v5996_v60 }
 0x1f4   : > { %v6000_v11 = vpop.f32.mrf.mxu0 }
 0x1f5   : > { %1245 = vrot.lane.b32.xlu0 %v6000_v11, %s5593_s6 }
 0x1fc   : > { %v6004_v61 = vpop.f32.mrf.mxu0 }
 0x1fd   : > { %1272 = vrot.lane.b32.xlu1 %v6004_v61, %s5593_s6 }
 0x204   : > { %v6008_v62 = vpop.f32.mrf.mxu0 }
 0x205   : > { %1299 = vrot.lane.b32.xlu2 %v6008_v62, %s5593_s6  ;;  %v5023_v63 = vpack.i.bf16 %v6008_v62, %v6004_v61 }
 0x207   : > { %5024 = vrot.lane.b32.xlu0 %v5023_v63, %s5594_s26 }
 0x20d   : > { %5019 = vrot.lane.b32.xlu2 %v5018_v0, %s5594_s26 }
 0x215   : > { %1762 = vrot.lane.b32.xlu2 %v5982_v54, %s5595_s27 }
 0x23f   : > { %v1192_v1 = vpop.permute.xlu2 %1191 }
 0x240   : > { %4744 = vmatpush.xpose.msk.msra.mxu3 %vm1138_vm11, %v1192_v1 }
 0x243   : > { %4745 = vmatmul.msk.f32.vlgmr.msra.gmra.mxu3 %vm1138_vm11, %v5992_v59 }
 0x247   : > { %v1137_v2 = vpop.permute.xlu1 %1136  ;;  %v1219_v3 = vpop.permute.xlu2 %1218 }
 0x248   : > { %4740 = vmatpush.xpose.msk.msra.mxu2 %vm1138_vm11, %v1137_v2  ;;  %4746 = vmatpush.xpose.msk.msra.mxu1 %vm1138_vm11, %v1219_v3 }
 0x24b   : > { %4741 = vmatmul.msk.f32.vlgmr.msra.gmra.mxu2 %vm1138_vm11, %v5982_v54  ;;  %4747 = vmatmul.msk.f32.vlgmr.msra.gmra.mxu1 %vm1138_vm11, %v5996_v60 }
 0x24f   : > { %v1165_v4 = vpop.permute.xlu0 %1164 }
 0x250   : > { %4742 = vmatpush.xpose.msk.msrb.mxu2 %vm1138_vm11, %v1165_v4 }
 0x253   : > { %4743 = vmatmul.msk.f32.vlgmr.msrb.gmra.mxu2 %vm1138_vm11, %v5988_v58 }
 0x256   : > { %v6032_v5 = vpop.f32.mrf.mxu0 }
 0x257   : > { %1326 = vrot.lane.b32.xlu1 %v6032_v5, %s5593_s6  ;;  %v5028_v12 = vpack.i.bf16 %v6032_v5, %v6000_v11 }
 0x25f   : > { %v1300_v7 = vpop.permute.xlu2 %1299  ;;  %5014 = vrot.lane.b32.xlu1 %v5013_v6, %s5594_s26 }
 0x260   : > { %4752 = vmatpush.xpose.msk.msrb.mxu1 %vm1138_vm11, %v1300_v7 }
 0x263   : > { %4753 = vmatmul.msk.f32.vlgmr.msrb.gmra.mxu1 %vm1138_vm11, %v6008_v62 }
 0x267   : > { %v5020_v9 = vpop.permute.xlu2 %5019  ;;  %v1246_v10 = vpop.permute.xlu0 %1245  ;;  %1790 = vrot.lane.b32.xlu1 %v5988_v58, %s5595_s27 }
 0x268   : > { %v5022_v41 = vunpack.i.h.bf16 %v5020_v9  ;;  %4748 = vmatpush.xpose.msk.msra.mxu2 %vm1138_vm11, %v1246_v10  ;;  %v5021_v29 = vunpack.i.l.bf16 %v5020_v9 }
 0x26a   : > { %1599 = vmatpush.msra.mxu1 %v5022_v41 }
 0x26b   : > { %4749 = vmatmul.msk.f32.vlgmr.msra.gmra.mxu2 %vm1138_vm11, %v6000_v11 }
 0x26f   : > { %v1273_v13 = vpop.permute.xlu1 %1272  ;;  %5029 = vrot.lane.b32.xlu1 %v5028_v12, %s5594_s26  ;;  %v6076_v48 = vpop.permute.xlu2 %1762 }
 0x270   : > { %4750 = vmatpush.xpose.msk.msrb.mxu3 %vm1138_vm11, %v1273_v13 }
 0x273   : > { %4751 = vmatmul.msk.f32.vlgmr.msrb.gmra.mxu3 %vm1138_vm11, %v6004_v61 }
 0x279   : > { %v6061_v22 = vpop.permute.xlu0 %5024 }
 0x27a   : > { %v5026_v44 = vunpack.i.l.bf16 %v6061_v22 }
 0x2c6   : > { %v1214_v8 = vpop.f32.mrf.mxu3 }
 0x2c7   : > { %v1354_v14 = vmul.f32 0.35355338, %v1214_v8 }
 0x2c8   : > { %v1241_v15 = vpop.f32.mrf.mxu1 }
 0x2c9   : > { %v6053_v16 = vmul.f32 0.35355338, %v1241_v15  ;;  %v1366_v17 = vsel %vm1138_vm11, %v1354_v14, -inf  ;;  %v1327_v26 = vpop.permute.xlu1 %1326 }
 0x2ca   : > { %1367 = vmax.xlane.f32.xlu2 %v1366_v17  ;;  %4754 = vmatpush.xpose.msk.msrb.mxu2 %vm1138_vm11, %v1327_v26 }
 0x2cb   : > { %v1369_v18 = vsel %vm1138_vm11, %v6053_v16, -inf }
 0x2cc   : > { %1370 = vmax.xlane.f32.xlu1 %v1369_v18 }
 0x2cd   : > { %4755 = vmatmul.msk.f32.vlgmr.msrb.gmra.mxu2 %vm1138_vm11, %v6032_v5 }
 0x2ce   : > { %v1160_v19 = vpop.f32.mrf.mxu2 }
 0x2cf   : > { %v1352_v21 = vmul.f32 0.35355338, %v1160_v19 }
 0x2d1   : > { %v1360_v23 = vsel %vm1138_vm11, %v1352_v21, -inf  ;;  %v5015_v24 = vpop.permute.xlu1 %5014 }
 0x2d2   : > { %1361 = vmax.xlane.f32.xlu0 %v1360_v23  ;;  %v5017_v25 = vunpack.i.h.bf16 %v5015_v24  ;;  %v5016_v28 = vunpack.i.l.bf16 %v5015_v24 }
 0x2d4   : > { %1573 = vmatpush.msra.mxu3 %v5016_v28  ;;  %1625 = vmatpush.msra.mxu2 %v5017_v25 }
 0x2d6   : > { %v1187_v30 = vpop.f32.mrf.mxu2  ;;  %1651 = vmatpush.msrb.mxu3 %v5021_v29  ;;  %1703 = vmatpush.msrb.mxu2 %v5026_v44 }
 0x2d7   : > { %v1353_v31 = vmul.f32 0.35355338, %v1187_v30 }
 0x2d9   : > { %v1363_v32 = vsel %vm1138_vm11, %v1353_v31, -inf  ;;  %v6066_v33 = vpop.permute.xlu1 %1790 }
 0x2da   : > { %1364 = vmax.xlane.f32.xlu0 %v1363_v32 }
 0x2e0   : > { %v1322_v34 = vpop.f32.mrf.mxu1 }
 0x2e1   : > { %v1358_v35 = vmul.f32 0.35355338, %v1322_v34  ;;  %v6068_v36 = vpop.permute.xlu1 %5029  ;;  %v5043_v34 = vpack.i.bf16 %v6008_v62, %v5982_v54 }
 0x2e2   : > { %v5031_v43 = vunpack.i.l.bf16 %v6068_v36 }
 0x2e3   : > { %v1378_v37 = vsel %vm1138_vm11, %v1358_v35, -inf }
 0x2e4   : > { %1379 = vmax.xlane.f32.xlu1 %v1378_v37  ;;  %1677 = vmatpush.msrb.mxu1 %v5031_v43 }
 0x2ee   : > { %v1268_v38 = vpop.f32.mrf.mxu2 }
 0x2ef   : > { %v1356_v40 = vmul.f32 0.35355338, %v1268_v38 }
 0x2f1   : > { %v1372_v42 = vsel %vm1138_vm11, %v1356_v40, -inf }
 0x2f2   : > { %1373 = vmax.xlane.f32.xlu0 %v1372_v42 }
 0x2f6   : > { %v1295_v45 = vpop.f32.mrf.mxu3 }
 0x2f7   : > { %v1357_v46 = vmul.f32 0.35355338, %v1295_v45 }
 0x2f9   : > { %v1375_v47 = vsel %vm1138_vm11, %v1357_v46, -inf }
 0x2fa   : > { %1376 = vmax.xlane.f32.xlu2 %v1375_v47 }
 0x306   : > { %1788 = vrot.lane.b32.xlu0 %v5988_v58, %s5596_s29 }
 0x33d   : > { %v1368_v39 = vpop.xlane.xlu2 %1367 }
 0x33e   : > { %v1386_v49 = vsub.f32 %v1354_v14, %v1368_v39 }
 0x33f   : > { %v1371_v14 = vpop.xlane.xlu1 %1370 }
 0x340   : > { %v1396_v50 = vmul.f32 1.442695, %v1386_v49  ;;  %v1387_v17 = vsub.f32 %v6053_v16, %v1371_v14 }
 0x342   : > { %5108 = vpow2.f32 %v1396_v50  ;;  %v1398_v18 = vmul.f32 1.442695, %v1387_v17 }
 0x345   : > { %v1362_v51 = vpop.xlane.xlu0 %1361 }
 0x346   : > { %v1384_v52 = vsub.f32 %v1352_v21, %v1362_v51 }
 0x348   : > { %v6078_v27 = vpop.eup %5108  ;;  %v1392_v53 = vmul.f32 1.442695, %v1384_v52 }
 0x349   : > { %v1414_v55 = vsel %vm1138_vm11, %v6078_v27, 0.0 }
 0x34a   : > { %5110 = vpow2.f32 %v1392_v53  ;;  %1415 = vadd.xlane.f32.xlu0 %v1414_v55 }
 0x34d   : > { %v1365_v2 = vpop.xlane.xlu0 %1364 }
 0x34e   : > { %v1385_v15 = vsub.f32 %v1353_v31, %v1365_v2 }
 0x350   : > { %v6082_v56 = vpop.eup %5110  ;;  %v1349_v57 = vpop.f32.mrf.mxu2  ;;  %v1394_v26 = vmul.f32 1.442695, %v1385_v15  ;;  %v6163_v15 = vpack.i.bf16 %v6004_v61, %v5992_v59 }
 0x351   : > { %v1408_v63 = vsel %vm1138_vm11, %v6082_v56, 0.0  ;;  %v6086_v0 = vmul.f32 0.35355338, %v1349_v57 }
 0x352   : > { %1409 = vadd.xlane.f32.xlu1 %v1408_v63 }
 0x353   : > { %v1381_v1 = vsel %vm1138_vm11, %v6086_v0, -inf }
 0x354   : > { %1382 = vmax.xlane.f32.xlu2 %v1381_v1 }
 0x357   : > { %v1380_v19 = vpop.xlane.xlu1 %1379 }
 0x358   : > { %v1390_v21 = vsub.f32 %v1358_v35, %v1380_v19 }
 0x35a   : > { %v1404_v23 = vmul.f32 1.442695, %v1390_v21 }
 0x365   : > { %v1374_v3 = vpop.xlane.xlu0 %1373 }
 0x366   : > { %v1388_v4 = vsub.f32 %v1356_v40, %v1374_v3 }
 0x368   : > { %v1400_v6 = vmul.f32 1.442695, %v1388_v4 }
 0x36a   : > { %5112 = vpow2.f32 %v1400_v6 }
 0x36b   : > { %1846 = vrot.lane.b32.xlu1 %v5996_v60, %s5595_s27 }
 0x36c   : > { %1760 = vrot.lane.b32.xlu2 %v5982_v54, %s5596_s29 }
 0x36d   : > { %v1377_v7 = vpop.xlane.xlu2 %1376 }
 0x36e   : > { %v1389_v9 = vsub.f32 %v1357_v46, %v1377_v7 }
 0x370   : > { %v6094_v10 = vpop.eup %5112  ;;  %v1402_v41 = vmul.f32 1.442695, %v1389_v9 }
 0x371   : > { %v1420_v12 = vsel %vm1138_vm11, %v6094_v10, 0.0 }
 0x372   : > { %5114 = vpow2.f32 %v1402_v41  ;;  %1421 = vadd.xlane.f32.xlu0 %v1420_v12  ;;  %v5027_v41 = vunpack.i.h.bf16 %v6061_v22 }
 0x373   : > { %5116 = vpow2.f32 %v1394_v26 }
 0x374   : > { %5118 = vpow2.f32 %v1398_v18 }
 0x375   : > { %5120 = vpow2.f32 %v1404_v23 }
 0x378   : > { %v6098_v13 = vpop.eup %5114  ;;  %v6121_v30 = vpop.permute.xlu0 %1788 }
 0x379   : > { %v1423_v8 = vsel %vm1138_vm11, %v6098_v13, 0.0  ;;  %v6105_v24 = vpop.eup %5116 }
 0x37a   : > { %1424 = vadd.xlane.f32.xlu0 %v1423_v8  ;;  %v6107_v25 = vpop.eup %5118  ;;  %v1411_v28 = vsel %vm1138_vm11, %v6105_v24, 0.0 }
 0x37b   : > { %v1417_v16 = vsel %vm1138_vm11, %v6107_v25, 0.0  ;;  %v6115_v29 = vpop.eup %5120 }
 0x37c   : > { %v1426_v44 = vsel %vm1138_vm11, %v6115_v29, 0.0 }
 0x38e   : > { %1818 = vrot.lane.b32.xlu0 %v5992_v59, %s5595_s27 }
 0x395   : > { %1412 = vadd.xlane.f32.xlu1 %v1411_v28  ;;  %1418 = vadd.xlane.f32.xlu2 %v1417_v16 }
 0x396   : > { %1930 = vrot.lane.b32.xlu0 %v6008_v62, %s5595_s27 }
 0x39d   : > { %1427 = vadd.xlane.f32.xlu2 %v1426_v44 }
 0x3ae   : > { %1816 = vrot.lane.b32.xlu1 %v5992_v59, %s5596_s29 }
 0x3b5   : > { %1844 = vrot.lane.b32.xlu2 %v5996_v60, %s5596_s29 }
 0x3b6   : > { %1900 = vrot.lane.b32.xlu1 %v6004_v61, %s5596_s29 }
 0x3bd   : > { %v1416_v31 = vpop.xlane.xlu0 %1415  ;;  %1902 = vrot.lane.b32.xlu2 %v6004_v61, %s5595_s27 }
 0x3be   : > { %5122 = vrcp.f32 %v1416_v31  ;;  %1872 = vrot.lane.b32.xlu1 %v6000_v11, %s5596_s29  ;;  %v1473_v38 = vand.u32 2147483648, %v1416_v31  ;;  %v1471_v45 = vand.u32 2147483647, %v1416_v31  ;;  %vm1467_vm13 = vweird.f32 %v1416_v31 }
 0x3c0   : > { %v1474_v50 = vor.u32 1.1754944e-38, %v1473_v38  ;;  %vm1472_vm15 = vcmp.eq.f32.partialorder %v1471_v45, 8.507059e+37 }
 0x3c4   : > { %v5123_v32 = vpop.eup %5122 }
 0x3c5   : > { %v1463_v35 = vmul.f32 %v5123_v32, %v1416_v31  ;;  %v1410_v43 = vpop.xlane.xlu1 %1409  ;;  %1874 = vrot.lane.b32.xlu2 %v6000_v11, %s5595_s27  ;;  %vm1468_vm12 = vweird.f32 %v5123_v32 }
 0x3c6   : > { %5124 = vrcp.f32 %v1410_v43  ;;  %5044 = vrot.lane.b32.xlu1 %v5043_v34, %s5597_s5  ;;  %vm1469_vm14 = vmor %vm1467_vm13, %vm1468_vm12  ;;  %v1443_v63 = vand.u32 2147483648, %v1410_v43  ;;  %vm1437_vm2 = vweird.f32 %v1410_v43 }
 0x3c7   : > { %v1464_v37 = vsub.f32 1.0, %v1463_v35  ;;  %v1383_v40 = vpop.xlane.xlu2 %1382 }
 0x3c8   : > { %v1391_v46 = vsub.f32 %v6086_v0, %v1383_v40  ;;  %v1441_v0 = vand.u32 2147483647, %v1410_v43  ;;  %v1444_v4 = vor.u32 1.1754944e-38, %v1443_v63 }
 0x3c9   : > { %v1465_v42 = vmul.f32 %v5123_v32, %v1464_v37 }
 0x3ca   : > { %v1406_v39 = vmul.f32 1.442695, %v1391_v46  ;;  %vm1442_vm4 = vcmp.eq.f32.partialorder %v1441_v0, 8.507059e+37 }
 0x3cb   : > { %v1466_v47 = vadd.f32 %v5123_v32, %v1465_v42 }
 0x3cc   : > { %v5125_v49 = vpop.eup %5124  ;;  %5126 = vpow2.f32 %v1406_v39 }
 0x3cd   : > { %v1470_v51 = vsel %vm1469_vm14, %v5123_v32, %v1466_v47  ;;  %v1433_v52 = vmul.f32 %v5125_v49, %v1410_v43  ;;  %1958 = vrot.lane.b32.xlu2 %v6032_v5, %s5595_s27  ;;  %vm1438_vm1 = vweird.f32 %v5125_v49  ;;  %s7051_s27 = sand.u32 1, %s5574_s25  }
 0x3ce   : > { %v1475_v53 = vsel %vm1472_vm15, %v1474_v50, %v1470_v51  ;;  %vm1439_vm3 = vmor %vm1437_vm2, %vm1438_vm1  ;;  %s4506_s6 = scalar_lea.sflag [#allocation5], %s7051_s27 }
 0x3cf   : > { %v1434_v55 = vsub.f32 1.0, %v1433_v52  ;;  %v1476_v57 = vmul.f32 %v6078_v27, %v1475_v53  ;;  %v5033_v27 = vpack.i.bf16 %v5996_v60, %v5988_v58  ;;  %v1761_v32 = vpop.permute.xlu2 %1760 }
 0x3d1   : > { %v1435_v1 = vmul.f32 %v5125_v49, %v1434_v55  ;;  %4758 = vmatmul.msk.f32.vlgmr.msra.gmra.mxu2 %vm1138_vm11, %v1476_v57 }
 0x3d2   : > { %4764 = vmatpush.xpose.msk.msra.mxu2 %vm1138_vm11, %v6076_v48  ;;  %v6143_v2 = vpop.eup %5126 }
 0x3d3   : > { %v1436_v3 = vadd.f32 %v5125_v49, %v1435_v1  ;;  %v1429_v6 = vsel %vm1138_vm11, %v6143_v2, 0.0 }
 0x3d4   : > { %1430 = vadd.xlane.f32.xlu0 %v1429_v6 }
 0x3d5   : > { %v1440_v7 = vsel %vm1439_vm3, %v5125_v49, %v1436_v3  ;;  %5034 = vrot.lane.b32.xlu2 %v5033_v27, %s5597_s5 }
 0x3d6   : > { %v1445_v9 = vsel %vm1442_vm4, %v1444_v4, %v1440_v7 }
 0x3d7   : > { %v1446_v48 = vmul.f32 %v6082_v56, %v1445_v9 }
 0x3d9   : > { %4756 = vmatmul.msk.f32.vlgmr.msra.gmra.mxu3 %vm1138_vm11, %v1446_v48 }
 0x3da   : > { %1729 = vmatpush.msra.mxu3 %v5027_v41 }
 0x3dd   : > { %2422 = vrot.lane.b32.xlu2 %v5988_v58, %s5598_s23  ;;  %v1847_v44 = vpop.permute.xlu1 %1846 }
 0x3e5   : > { %v6155_v12 = vpop.xlane.xlu0 %1421 }
 0x3e6   : > { %v1503_v1 = vand.u32 2147483648, %v6155_v12  ;;  %vm1497_vm4 = vweird.f32 %v6155_v12 }
 0x3e8   : > { %1928 = vrot.lane.b32.xlu0 %v6008_v62, %s5596_s29 }
 0x3ed   : > { %v1425_v8 = vpop.xlane.xlu0 %1424 }
 0x3ee   : > { %5128 = vrcp.f32 %v1425_v8  ;;  %v1518_v17 = vand.u32 2147483648, %v1425_v8  ;;  %v1516_v18 = vand.u32 2147483647, %v1425_v8  ;;  %vm1512_vm6 = vweird.f32 %v1425_v8 }
 0x3ef   : > { %5130 = vrcp.f32 %v6155_v12 }
 0x3f0   : > { %1956 = vrot.lane.b32.xlu0 %v6032_v5, %s5596_s29  ;;  %v1519_v21 = vor.u32 1.1754944e-38, %v1518_v17  ;;  %vm1517_vm8 = vcmp.eq.f32.partialorder %v1516_v18, 8.507059e+37 }
 0x3f4   : > { %v5129_v56 = vpop.eup %5128 }
 0x3f5   : > { %v1508_v14 = vmul.f32 %v5129_v56, %v1425_v8  ;;  %vm1513_vm5 = vweird.f32 %v5129_v56  ;;  %v6175_v34 = vpop.eup %5130 }
 0x3f6   : > { %vm1514_vm7 = vmor %vm1512_vm6, %vm1513_vm5  ;;  %v1493_v37 = vmul.f32 %v6175_v34, %v6155_v12  ;;  %vm1498_vm13 = vweird.f32 %v6175_v34 }
 0x3f7   : > { %v1509_v22 = vsub.f32 1.0, %v1508_v14  ;;  %v1501_v14 = vand.u32 2147483647, %v6155_v12  ;;  %vm6192_vm5 = vmor %vm1497_vm4, %vm1498_vm13 }
 0x3f8   : > { %5039 = vrot.lane.b32.xlu0 %v6163_v15, %s5597_s5  ;;  %v1494_v40 = vsub.f32 1.0, %v1493_v37 }
 0x3f9   : > { %v1510_v26 = vmul.f32 %v5129_v56, %v1509_v22 }
 0x3fa   : > { %v1495_v49 = vmul.f32 %v6175_v34, %v1494_v40 }
 0x3fb   : > { %v1511_v19 = vadd.f32 %v5129_v56, %v1510_v26  ;;  %v5032_v26 = vunpack.i.h.bf16 %v6068_v36 }
 0x3fc   : > { %v1496_v27 = vadd.f32 %v6175_v34, %v1495_v49 }
 0x3fd   : > { %v1515_v23 = vsel %vm1514_vm7, %v5129_v56, %v1511_v19  ;;  %vm1502_vm7 = vcmp.eq.f32.partialorder %v1501_v14, 8.507059e+37 }
 0x3fe   : > { %v1520_v28 = vsel %vm1517_vm8, %v1519_v21, %v1515_v23  ;;  %v1500_v12 = vsel %vm6192_vm5, %v6175_v34, %v1496_v27 }
 0x3ff   : > { %v1521_v16 = vmul.f32 %v6098_v13, %v1520_v28 }
 0x400   : > { %v6168_v31 = vpop.permute.xlu0 %1818  ;;  %2420 = vrot.lane.b32.xlu0 %v5988_v58, %s5599_s7 }
 0x401   : > { %4761 = vmatmul.msk.f32.vlgmr.msrb.gmra.mxu2 %vm1138_vm11, %v1521_v16 }
 0x402   : > { %4770 = vmatpush.xpose.msk.msrb.mxu2 %vm1138_vm11, %v1847_v44 }
 0x408   : > { %v1413_v35 = vpop.xlane.xlu1 %1412  ;;  %v1931_v43 = vpop.permute.xlu0 %1930 }
 0x409   : > { %5132 = vrcp.f32 %v1413_v35  ;;  %v1419_v13 = vpop.xlane.xlu2 %1418  ;;  %4765 = vmatmul.msk.f32.vlgmr.msra.gmra.mxu2 %vm1138_vm11, %v1761_v32  ;;  %v1458_v50 = vand.u32 2147483648, %v1413_v35  ;;  %v1456_v53 = vand.u32 2147483647, %v1413_v35  ;;  %vm1452_vm12 = vweird.f32 %v1413_v35 }
 0x40a   : > { %5134 = vrcp.f32 %v1419_v13  ;;  %4776 = vmatpush.xpose.msk.msra.mxu2 %vm1138_vm11, %v1931_v43  ;;  %v1488_v55 = vand.u32 2147483648, %v1419_v13  ;;  %v1486_v63 = vand.u32 2147483647, %v1419_v13  ;;  %vm1482_vm15 = vweird.f32 %v1419_v13 }
 0x40b   : > { %v1459_v3 = vor.u32 1.1754944e-38, %v1458_v50  ;;  %vm1457_vm1 = vcmp.eq.f32.partialorder %v1456_v53, 8.507059e+37 }
 0x40c   : > { %v1489_v9 = vor.u32 1.1754944e-38, %v1488_v55  ;;  %vm1487_vm3 = vcmp.eq.f32.partialorder %v1486_v63, 8.507059e+37 }
 0x40f   : > { %v5133_v38 = vpop.eup %5132 }
 0x410   : > { %v5135_v42 = vpop.eup %5134  ;;  %v1448_v45 = vmul.f32 %v5133_v38, %v1413_v35  ;;  %vm1453_vm9 = vweird.f32 %v5133_v38 }
 0x411   : > { %v1478_v46 = vmul.f32 %v5135_v42, %v1419_v13  ;;  %v1428_v47 = vpop.xlane.xlu2 %1427  ;;  %vm1483_vm10 = vweird.f32 %v5135_v42  ;;  %vm1454_vm14 = vmor %vm1452_vm12, %vm1453_vm9 }
 0x412   : > { %v1449_v39 = vsub.f32 1.0, %v1448_v45  ;;  %5136 = vrcp.f32 %v1428_v47  ;;  %vm1484_vm2 = vmor %vm1482_vm15, %vm1483_vm10  ;;  %v1533_v23 = vand.u32 2147483648, %v1428_v47  ;;  %v1531_v36 = vand.u32 2147483647, %v1428_v47 }
 0x413   : > { %v1479_v51 = vsub.f32 1.0, %v1478_v46  ;;  %vm1527_vm8 = vweird.f32 %v1428_v47 }
 0x414   : > { %v1450_v52 = vmul.f32 %v5133_v38, %v1449_v39  ;;  %v1534_v44 = vor.u32 1.1754944e-38, %v1533_v23  ;;  %vm1532_vm10 = vcmp.eq.f32.partialorder %v1531_v36, 8.507059e+37 }
 0x415   : > { %v1480_v57 = vmul.f32 %v5135_v42, %v1479_v51 }
 0x416   : > { %v1451_v0 = vadd.f32 %v5133_v38, %v1450_v52 }
 0x417   : > { %v1481_v4 = vadd.f32 %v5135_v42, %v1480_v57 }
 0x418   : > { %v5137_v6 = vpop.eup %5136  ;;  %v1455_v7 = vsel %vm1454_vm14, %v5133_v38, %v1451_v0 }
 0x419   : > { %v1460_v48 = vsel %vm1457_vm1, %v1459_v3, %v1455_v7  ;;  %v1485_v41 = vsel %vm1484_vm2, %v5135_v42, %v1481_v4  ;;  %v1523_v8 = vmul.f32 %v5137_v6, %v1428_v47  ;;  %v1845_v56 = vpop.permute.xlu2 %1844  ;;  %vm1528_vm6 = vweird.f32 %v5137_v6 }
 0x41a   : > { %4771 = vmatmul.msk.f32.vlgmr.msrb.gmra.mxu2 %vm1138_vm11, %v1845_v56  ;;  %v1461_v22 = vmul.f32 %v6105_v24, %v1460_v48  ;;  %v1490_v17 = vsel %vm1487_vm3, %v1489_v9, %v1485_v41  ;;  %v1504_v24 = vor.u32 1.1754944e-38, %v1503_v1  ;;  %vm1529_vm9 = vmor %vm1527_vm8, %vm1528_vm6 }
 0x41b   : > { %v1524_v19 = vsub.f32 1.0, %v1523_v8  ;;  %v1491_v21 = vmul.f32 %v6107_v25, %v1490_v17 }
 0x41c   : > { %4757 = vmatmul.msk.f32.vlgmr.msra.gmra.mxu1 %vm1138_vm11, %v1461_v22  ;;  %v1505_v25 = vsel %vm1502_vm7, %v1504_v24, %v1500_v12 }
 0x41d   : > { %v1525_v28 = vmul.f32 %v5137_v6, %v1524_v19  ;;  %1755 = vmatpush.msra.mxu1 %v5032_v26  ;;  %4759 = vmatmul.msk.f32.vlgmr.msrb.gmra.mxu3 %vm1138_vm11, %v1491_v21  ;;  %v1506_v43 = vmul.f32 %v6094_v10, %v1505_v25 }
 0x41e   : > { %4766 = vmatpush.xpose.msk.msrb.mxu3 %vm1138_vm11, %v6066_v33 }
 0x41f   : > { %v1526_v16 = vadd.f32 %v5137_v6, %v1525_v28 }
 0x420   : > { %v1817_v32 = vpop.permute.xlu1 %1816 }
 0x421   : > { %v1530_v34 = vsel %vm1529_vm9, %v5137_v6, %v1526_v16  ;;  %v1903_v35 = vpop.permute.xlu2 %1902 }
 0x422   : > { %v1535_v13 = vsel %vm1532_vm10, %v1534_v44, %v1530_v34 }
 0x423   : > { %v1536_v37 = vmul.f32 %v6115_v29, %v1535_v13 }
 0x424   : > { %4760 = vmatmul.msk.f32.vlgmr.msrb.gmra.mxu1 %vm1138_vm11, %v1506_v43 }
 0x425   : > { %4768 = vmatpush.xpose.msk.msrb.mxu1 %vm1138_vm11, %v6168_v31  ;;  %4762 = vmatmul.msk.f32.vlgmr.msra.gmra.mxu3 %vm1138_vm11, %v1536_v37 }
 0x428   : > { %v1901_v38 = vpop.permute.xlu1 %1900 }
 0x429   : > { %v1875_v33 = vpop.permute.xlu2 %1874 }
 0x42a   : > { %4772 = vmatpush.xpose.msk.msra.mxu3 %vm1138_vm11, %v1875_v33 }
 0x42d   : > { %4767 = vmatmul.msk.f32.vlgmr.msrb.gmra.mxu3 %vm1138_vm11, %v6121_v30 }
 0x430   : > { %v1873_v10 = vpop.permute.xlu1 %1872 }
 0x431   : > { %v1959_v40 = vpop.permute.xlu2 %1958 }
 0x432   : > { %4778 = vmatpush.xpose.msk.msrb.mxu3 %vm1138_vm11, %v1959_v40 }
 0x435   : > { %4773 = vmatmul.msk.f32.vlgmr.msra.gmra.mxu3 %vm1138_vm11, %v1873_v10 }
 0x438   : > { %v5045_v1 = vpop.permute.xlu1 %5044 }
 0x439   : > { %v5035_v29 = vpop.permute.xlu2 %5034  ;;  %v5046_v0 = vunpack.i.l.bf16 %v5045_v1  ;;  %v5047_v6 = vunpack.i.h.bf16 %v5045_v1 }
 0x43a   : > { %v5036_v42 = vunpack.i.l.bf16 %v5035_v29  ;;  %v5037_v57 = vunpack.i.h.bf16 %v5035_v29 }
 0x43c   : > { %2231 = vmatpush.msrb.mxu2 %v5036_v42 }
 0x441   : > { %v6252_v29 = vpop.permute.xlu2 %2422 }
 0x447   : > { %v1431_v45 = vpop.xlane.xlu0 %1430 }
 0x448   : > { %5138 = vrcp.f32 %v1431_v45  ;;  %v1548_v39 = vand.u32 2147483648, %v1431_v45  ;;  %v1546_v50 = vand.u32 2147483647, %v1431_v45  ;;  %vm1542_vm13 = vweird.f32 %v1431_v45 }
 0x44a   : > { %v1549_v30 = vor.u32 1.1754944e-38, %v1548_v39  ;;  %vm1547_vm15 = vcmp.eq.f32.partialorder %v1546_v50, 8.507059e+37 }
 0x44e   : > { %v5139_v31 = vpop.eup %5138 }
 0x44f   : > { %v1538_v46 = vmul.f32 %v5139_v31, %v1431_v45  ;;  %vm1543_vm12 = vweird.f32 %v5139_v31 }
 0x450   : > { %vm1544_vm14 = vmor %vm1542_vm13, %vm1543_vm12 }
 0x451   : > { %v1539_v47 = vsub.f32 1.0, %v1538_v46 }
 0x453   : > { %v1540_v49 = vmul.f32 %v5139_v31, %v1539_v47 }
 0x454   : > { %v6225_v27 = vpop.f32.mrf.mxu2 }
 0x455   : > { %v1541_v51 = vadd.f32 %v5139_v31, %v1540_v49 }
 0x457   : > { %v1545_v52 = vsel %vm1544_vm14, %v5139_v31, %v1541_v51 }
 0x458   : > { %v1550_v53 = vsel %vm1547_vm15, %v1549_v30, %v1545_v52 }
 0x459   : > { %v1551_v55 = vmul.f32 %v6143_v2, %v1550_v53 }
 0x45a   : > { %v1929_v63 = vpop.permute.xlu0 %1928 }
 0x45b   : > { %4763 = vmatmul.msk.f32.vlgmr.msra.gmra.mxu1 %vm1138_vm11, %v1551_v55  ;;  %4777 = vmatmul.msk.f32.vlgmr.msra.gmra.mxu2 %vm1138_vm11, %v1929_v63 }
 0x45c   : > { %4774 = vmatpush.xpose.msk.msra.mxu1 %vm1138_vm11, %v1903_v35  ;;  %2283 = vmatpush.msra.mxu2 %v5037_v57  ;;  %v6230_v8 = vpop.f32.mrf.mxu3 }
 0x462   : > { %v1957_v3 = vpop.permute.xlu0 %1956 }
 0x463   : > { %4769 = vmatmul.msk.f32.vlgmr.msrb.gmra.mxu1 %vm1138_vm11, %v1817_v32  ;;  %4779 = vmatmul.msk.f32.vlgmr.msrb.gmra.mxu3 %vm1138_vm11, %v1957_v3 }
 0x464   : > { %2205 = vmatpush.msrb.mxu1 %v5046_v0 }
 0x46a   : > { %v6221_v4 = vpop.permute.xlu0 %5039 }
 0x46b   : > { %v5041_v2 = vunpack.i.l.bf16 %v6221_v4  ;;  %4775 = vmatmul.msk.f32.vlgmr.msra.gmra.mxu1 %vm1138_vm11, %v1901_v38 }
 0x46d   : > { %2257 = vmatpush.msra.mxu3 %v5041_v2 }
 0x46f   : > { %2361 = vmatpush.msrb.mxu3 %v5047_v6 }
 0x472   : > { %v6274_v1 = vpop.permute.xlu0 %2420 }
 0x484   : > { %v6227_v7 = vpop.f32.mrf.mxu2 }
 0x48c   : > { %v1785_v9 = vpop.f32.mrf.mxu2 }
 0x48d   : > { %v1984_v48 = vmul.f32 0.35355338, %v1785_v9 }
 0x48f   : > { %v1992_v41 = vsel %vm1138_vm11, %v1984_v48, -inf }
 0x490   : > { %1993 = vmax.xlane.f32.xlu2 %v1992_v41 }
 0x499   : > { %v6239_v28 = vpop.f32.mrf.mxu1 }
 0x49d   : > { %v1869_v56 = vpop.f32.mrf.mxu2 }
 0x49e   : > { %v1987_v14 = vmul.f32 0.35355338, %v1869_v56 }
 0x4a0   : > { %v6232_v22 = vpop.f32.mrf.mxu3  ;;  %v2001_v17 = vsel %vm1138_vm11, %v1987_v14, -inf }
 0x4a1   : > { %2002 = vmax.xlane.f32.xlu2 %v2001_v17  ;;  %v6241_v36 = vpop.f32.mrf.mxu1 }
 0x4a8   : > { %v6235_v26 = vpop.f32.mrf.mxu3 }
 0x4b0   : > { %v1813_v18 = vpop.f32.mrf.mxu3 }
 0x4b1   : > { %v1985_v19 = vmul.f32 0.35355338, %v1813_v18 }
 0x4b3   : > { %v1995_v21 = vsel %vm1138_vm11, %v1985_v19, -inf }
 0x4b4   : > { %1996 = vmax.xlane.f32.xlu1 %v1995_v21 }
 0x4b8   : > { %v1897_v12 = vpop.f32.mrf.mxu3 }
 0x4b9   : > { %v1988_v23 = vmul.f32 0.35355338, %v1897_v12 }
 0x4bb   : > { %v2004_v24 = vsel %vm1138_vm11, %v1988_v23, -inf }
 0x4bc   : > { %2005 = vmax.xlane.f32.xlu1 %v2004_v24 }
 0x4d8   : > { %v6243_v16 = vpop.f32.mrf.mxu1 }
 0x4de   : > { %v1953_v34 = vpop.f32.mrf.mxu2 }
 0x4df   : > { %v1990_v43 = vmul.f32 0.35355338, %v1953_v34 }
 0x4e0   : > { %v1841_v25 = vpop.f32.mrf.mxu1 }
 0x4e1   : > { %v1986_v44 = vmul.f32 0.35355338, %v1841_v25  ;;  %v2010_v10 = vsel %vm1138_vm11, %v1990_v43, -inf }
 0x4e3   : > { %v1998_v32 = vsel %vm1138_vm11, %v1986_v44, -inf }
 0x4e4   : > { %1999 = vmax.xlane.f32.xlu0 %v1998_v32 }
 0x4e6   : > { %v1981_v35 = vpop.f32.mrf.mxu3 }
 0x4e7   : > { %v6246_v13 = vmul.f32 0.35355338, %v1981_v35 }
 0x4e8   : > { %v1925_v37 = vpop.f32.mrf.mxu1 }
 0x4e9   : > { %v1989_v33 = vmul.f32 0.35355338, %v1925_v37  ;;  %v2013_v38 = vsel %vm1138_vm11, %v6246_v13, -inf }
 0x4ea   : > { %2014 = vmax.xlane.f32.xlu2 %v2013_v38 }
 0x4eb   : > { %v2007_v40 = vsel %vm1138_vm11, %v1989_v33, -inf }
 0x4ec   : > { %2008 = vmax.xlane.f32.xlu1 %v2007_v40  ;;  %2011 = vmax.xlane.f32.xlu0 %v2010_v10 }
 0x503   : > { %v1994_v42 = vpop.xlane.xlu2 %1993 }
 0x504   : > { %v2016_v45 = vsub.f32 %v1984_v48, %v1994_v42 }
 0x506   : > { %v2024_v31 = vmul.f32 1.442695, %v2016_v45 }
 0x508   : > { %5140 = vpow2.f32 %v2024_v31 }
 0x50e   : > { %v6254_v46 = vpop.eup %5140 }
 0x50f   : > { %v2040_v47 = vsel %vm1138_vm11, %v6254_v46, 0.0 }
 0x510   : > { %2041 = vadd.xlane.f32.xlu1 %v2040_v47 }
 0x514   : > { %v2003_v39 = vpop.xlane.xlu2 %2002 }
 0x515   : > { %v2019_v49 = vsub.f32 %v1987_v14, %v2003_v39 }
 0x517   : > { %v2030_v50 = vmul.f32 1.442695, %v2019_v49 }
 0x519   : > { %5142 = vpow2.f32 %v2030_v50 }
 0x51f   : > { %v6258_v51 = vpop.eup %5142 }
 0x520   : > { %v2049_v30 = vsel %vm1138_vm11, %v6258_v51, 0.0 }
 0x521   : > { %2050 = vadd.xlane.f32.xlu1 %v2049_v30 }
 0x527   : > { %v1997_v52 = vpop.xlane.xlu1 %1996 }
 0x528   : > { %v2017_v53 = vsub.f32 %v1985_v19, %v1997_v52 }
 0x52a   : > { %v2026_v55 = vmul.f32 1.442695, %v2017_v53 }
 0x52c   : > { %5144 = vpow2.f32 %v2026_v55 }
 0x52f   : > { %v2006_v48 = vpop.xlane.xlu1 %2005 }
 0x530   : > { %v2020_v41 = vsub.f32 %v1988_v23, %v2006_v48 }
 0x532   : > { %v6262_v57 = vpop.eup %5144  ;;  %v2032_v14 = vmul.f32 1.442695, %v2020_v41 }
 0x533   : > { %v2043_v63 = vsel %vm1138_vm11, %v6262_v57, 0.0 }
 0x534   : > { %2044 = vadd.xlane.f32.xlu0 %v2043_v63 }
 0x53a   : > { %2450 = vrot.lane.b32.xlu1 %v5992_v59, %s5598_s23 }
 0x542   : > { %2394 = vrot.lane.b32.xlu1 %v5982_v54, %s5598_s23 }
 0x548   : > { %2534 = vrot.lane.b32.xlu0 %v6004_v61, %s5598_s23 }
 0x54a   : > { %2532 = vrot.lane.b32.xlu1 %v6004_v61, %s5599_s7 }
 0x550   : > { %2448 = vrot.lane.b32.xlu0 %v5992_v59, %s5599_s7 }
 0x552   : > { %2562 = vrot.lane.b32.xlu1 %v6008_v62, %s5598_s23 }
 0x557   : > { %v2000_v0 = vpop.xlane.xlu0 %1999 }
 0x558   : > { %2392 = vrot.lane.b32.xlu0 %v5982_v54, %s5599_s7  ;;  %v2018_v3 = vsub.f32 %v1986_v44, %v2000_v0 }
 0x55a   : > { %v2028_v2 = vmul.f32 1.442695, %v2018_v3 }
 0x55c   : > { %5146 = vpow2.f32 %v2028_v2 }
 0x55d   : > { %5148 = vpow2.f32 %v2032_v14  ;;  %v2015_v42 = vpop.xlane.xlu2 %2014 }
 0x55e   : > { %v2023_v39 = vsub.f32 %v6246_v13, %v2015_v42 }
 0x55f   : > { %v2012_v56 = vpop.xlane.xlu0 %2011  ;;  %v2009_v19 = vpop.xlane.xlu1 %2008 }
 0x560   : > { %v2022_v17 = vsub.f32 %v1990_v43, %v2012_v56  ;;  %v2021_v12 = vsub.f32 %v1989_v33, %v2009_v19  ;;  %v2038_v30 = vmul.f32 1.442695, %v2023_v39 }
 0x562   : > { %v6282_v6 = vpop.eup %5146  ;;  %v2036_v18 = vmul.f32 1.442695, %v2022_v17  ;;  %v2034_v25 = vmul.f32 1.442695, %v2021_v12 }
 0x563   : > { %v2046_v9 = vsel %vm1138_vm11, %v6282_v6, 0.0  ;;  %v6286_v21 = vpop.eup %5148 }
 0x564   : > { %2047 = vadd.xlane.f32.xlu2 %v2046_v9  ;;  %5150 = vpow2.f32 %v2036_v18  ;;  %v2052_v24 = vsel %vm1138_vm11, %v6286_v21, 0.0 }
 0x565   : > { %5152 = vpow2.f32 %v2034_v25 }
 0x56a   : > { %v6292_v44 = vpop.eup %5150 }
 0x56b   : > { %v2058_v23 = vsel %vm1138_vm11, %v6292_v44, 0.0  ;;  %v6296_v34 = vpop.eup %5152 }
 0x56c   : > { %v2055_v35 = vsel %vm1138_vm11, %v6296_v34, 0.0 }
 0x57c   : > { %2053 = vadd.xlane.f32.xlu1 %v2052_v24  ;;  %2288 = vrot.lane.b32.xlu2 %v6000_v11, %s5597_s5 }
 0x582   : > { %2059 = vadd.xlane.f32.xlu0 %v2058_v23 }
 0x583   : > { %v2042_v32 = vpop.xlane.xlu1 %2041 }
 0x584   : > { %5154 = vrcp.f32 %v2042_v32  ;;  %v2075_v38 = vand.u32 2147483648, %v2042_v32  ;;  %v2073_v10 = vand.u32 2147483647, %v2042_v32  ;;  %vm2069_vm2 = vweird.f32 %v2042_v32 }
 0x585   : > { %5156 = vpow2.f32 %v2038_v30 }
 0x586   : > { %v2076_v31 = vor.u32 1.1754944e-38, %v2075_v38  ;;  %vm2074_vm4 = vcmp.eq.f32.partialorder %v2073_v10, 8.507059e+37 }
 0x58a   : > { %v5155_v43 = vpop.eup %5154  ;;  %2056 = vadd.xlane.f32.xlu0 %v2055_v35  ;;  %v5042_v35 = vunpack.i.h.bf16 %v6221_v4 }
 0x58b   : > { %v2065_v37 = vmul.f32 %v5155_v43, %v2042_v32  ;;  %vm2070_vm1 = vweird.f32 %v5155_v43  ;;  %v6309_v53 = vpop.eup %5156 }
 0x58c   : > { %vm2071_vm3 = vmor %vm2069_vm2, %vm2070_vm1  ;;  %v2061_v13 = vsel %vm1138_vm11, %v6309_v53, 0.0 }
 0x58d   : > { %v2066_v33 = vsub.f32 1.0, %v2065_v37 }
 0x58f   : > { %v2067_v40 = vmul.f32 %v5155_v43, %v2066_v33 }
 0x591   : > { %v2068_v45 = vadd.f32 %v5155_v43, %v2067_v40 }
 0x593   : > { %v2072_v47 = vsel %vm2071_vm3, %v5155_v43, %v2068_v45 }
 0x594   : > { %v2077_v49 = vsel %vm2074_vm4, %v2076_v31, %v2072_v47  ;;  %v2051_v52 = vpop.xlane.xlu1 %2050 }
 0x595   : > { %2560 = vrot.lane.b32.xlu1 %v6008_v62, %s5599_s7  ;;  %v2078_v50 = vmul.f32 %v6254_v46, %v2077_v49  ;;  %5158 = vrcp.f32 %v2051_v52  ;;  %v2120_v24 = vand.u32 2147483648, %v2051_v52  ;;  %vm2114_vm10 = vweird.f32 %v2051_v52 }
 0x596   : > { %v2118_v23 = vand.u32 2147483647, %v2051_v52 }
 0x597   : > { %4780 = vmatmul.msk.f32.vlgmr.msrb.gmra.mxu1 %vm1138_vm11, %v2078_v50  ;;  %v2121_v37 = vor.u32 1.1754944e-38, %v2120_v24 }
 0x598   : > { %vm2119_vm13 = vcmp.eq.f32.partialorder %v2118_v23, 8.507059e+37 }
 0x59b   : > { %v5159_v55 = vpop.eup %5158 }
 0x59c   : > { %v2110_v63 = vmul.f32 %v5159_v55, %v2051_v52  ;;  %vm2115_vm8 = vweird.f32 %v5159_v55 }
 0x59d   : > { %2366 = vrot.lane.b32.xlu1 %v6032_v5, %s5597_s5  ;;  %vm2116_vm12 = vmor %vm2114_vm10, %vm2115_vm8  ;;  %s4726_s5 = sshll.u32 %s7051_s27, 5 }
 0x59e   : > { %2506 = vrot.lane.b32.xlu0 %v6000_v11, %s5598_s23  ;;  %v2111_v3 = vsub.f32 1.0, %v2110_v63 }
 0x5a0   : > { %v2112_v41 = vmul.f32 %v5159_v55, %v2111_v3 }
 0x5a2   : > { %v2113_v19 = vadd.f32 %v5159_v55, %v2112_v41 }
 0x5a4   : > { %v2117_v43 = vsel %vm2116_vm12, %v5159_v55, %v2113_v19 }
 0x5a5   : > { %2590 = vrot.lane.b32.xlu1 %v6032_v5, %s5598_s23  ;;  %2062 = vadd.xlane.f32.xlu2 %v2061_v13  ;;  %v2122_v33 = vsel %vm2119_vm13, %v2121_v37, %v2117_v43 }
 0x5a6   : > { %2504 = vrot.lane.b32.xlu0 %v6000_v11, %s5599_s7  ;;  %v2123_v38 = vmul.f32 %v6258_v51, %v2122_v33 }
 0x5a7   : > { %v2045_v46 = vpop.xlane.xlu0 %2044 }
 0x5a8   : > { %5160 = vrcp.f32 %v2045_v46  ;;  %v2090_v48 = vand.u32 2147483648, %v2045_v46  ;;  %v2088_v14 = vand.u32 2147483647, %v2045_v46  ;;  %vm2084_vm6 = vweird.f32 %v2045_v46 }
 0x5aa   : > { %v2091_v18 = vor.u32 1.1754944e-38, %v2090_v48  ;;  %vm2089_vm9 = vcmp.eq.f32.partialorder %v2088_v14, 8.507059e+37 }
 0x5ae   : > { %v5161_v0 = vpop.eup %5160  ;;  %2478 = vrot.lane.b32.xlu0 %v5996_v60, %s5598_s23  ;;  %s819_s23 = scalar_lea.vmem [#allocation14], %s4726_s5 }
 0x5af   : > { %v2080_v2 = vmul.f32 %v5161_v0, %v2045_v46  ;;  %vm2085_vm5 = vweird.f32 %v5161_v0 }
 0x5b0   : > { %vm2086_vm7 = vmor %vm2084_vm6, %vm2085_vm5 }
 0x5b1   : > { %v2081_v9 = vsub.f32 1.0, %v2080_v2 }
 0x5b3   : > { %v2082_v56 = vmul.f32 %v5161_v0, %v2081_v9 }
 0x5b5   : > { %v2083_v17 = vadd.f32 %v5161_v0, %v2082_v56 }
 0x5b6   : > { %2588 = vrot.lane.b32.xlu0 %v6032_v5, %s5599_s7 }
 0x5b7   : > { %v2087_v12 = vsel %vm2086_vm7, %v5161_v0, %v2083_v17 }
 0x5b8   : > { %v2092_v25 = vsel %vm2089_vm9, %v2091_v18, %v2087_v12 }
 0x5b9   : > { %v2093_v32 = vmul.f32 %v6262_v57, %v2092_v25  ;;  %v2451_v57 = vpop.permute.xlu1 %2450 }
 0x5ba   : > { %v6330_v10 = vpop.permute.xlu0 %2534 }
 0x5bb   : > { %4781 = vmatmul.msk.f32.vlgmr.msrb.gmra.mxu2 %vm1138_vm11, %v2093_v32 }
 0x5bc   : > { %2335 = vmatpush.msrb.mxu2 %v5042_v35 }
 0x5bd   : > { %2476 = vrot.lane.b32.xlu2 %v5996_v60, %s5599_s7  ;;  %s7207_s7 = sshll.u32 %s5752_s21, 5 }
 0x5c1   : > { %v2395_v4 = vpop.permute.xlu1 %2394 }
 0x5c2   : > { %v6335_v51 = vpop.permute.xlu0 %2448 }
 0x5c3   : > { %4783 = vmatmul.msk.f32.vlgmr.msra.gmra.mxu2 %vm1138_vm11, %v2123_v38 }
 0x5c4   : > { %4790 = vmatpush.xpose.msk.msra.mxu2 %vm1138_vm11, %v6252_v29 }
 0x5c9   : > { %v6332_v42 = vpop.permute.xlu1 %2532 }
 0x5ca   : > { %v2393_v0 = vpop.permute.xlu0 %2392 }
 0x5d1   : > { %v2563_v52 = vpop.permute.xlu1 %2562 }
 0x5d7   : > { %v2048_v40 = vpop.xlane.xlu2 %2047 }
 0x5d8   : > { %5162 = vrcp.f32 %v2048_v40  ;;  %v2105_v49 = vand.u32 2147483648, %v2048_v40  ;;  %v2103_v29 = vand.u32 2147483647, %v2048_v40  ;;  %vm2099_vm15 = vweird.f32 %v2048_v40 }
 0x5da   : > { %v2106_v13 = vor.u32 1.1754944e-38, %v2105_v49  ;;  %vm2104_vm2 = vcmp.eq.f32.partialorder %v2103_v29, 8.507059e+37 }
 0x5de   : > { %v5163_v45 = vpop.eup %5162 }
 0x5df   : > { %v2095_v31 = vmul.f32 %v5163_v45, %v2048_v40  ;;  %v2289_v47 = vpop.permute.xlu2 %2288  ;;  %vm2100_vm14 = vweird.f32 %v5163_v45 }
 0x5e0   : > { %2309 = vmatpush.msra.mxu1 %v2289_v47  ;;  %vm2101_vm1 = vmor %vm2099_vm15, %vm2100_vm14 }
 0x5e1   : > { %v2096_v39 = vsub.f32 1.0, %v2095_v31 }
 0x5e2   : > { %4788 = vmatpush.xpose.msk.msrb.mxu1 %vm1138_vm11, %v2395_v4 }
 0x5e3   : > { %v2097_v50 = vmul.f32 %v5163_v45, %v2096_v39 }
 0x5e5   : > { %v2098_v30 = vadd.f32 %v5163_v45, %v2097_v50 }
 0x5e7   : > { %v2102_v46 = vsel %vm2101_vm1, %v5163_v45, %v2098_v30 }
 0x5e8   : > { %v2107_v55 = vsel %vm2104_vm2, %v2106_v13, %v2102_v46 }
 0x5e9   : > { %v2108_v63 = vmul.f32 %v6282_v6, %v2107_v55 }
 0x5eb   : > { %4782 = vmatmul.msk.f32.vlgmr.msra.gmra.mxu3 %vm1138_vm11, %v2108_v63 }
 0x5ec   : > { %4792 = vmatpush.xpose.msk.msra.mxu3 %vm1138_vm11, %v2451_v57 }
 0x5ef   : > { %v2054_v3 = vpop.xlane.xlu1 %2053 }
 0x5f0   : > { %5164 = vrcp.f32 %v2054_v3  ;;  %v2135_v56 = vand.u32 2147483648, %v2054_v3  ;;  %v2133_v17 = vand.u32 2147483647, %v2054_v3  ;;  %vm2129_vm4 = vweird.f32 %v2054_v3 }
 0x5f2   : > { %v2136_v24 = vor.u32 1.1754944e-38, %v2135_v56  ;;  %vm2134_vm6 = vcmp.eq.f32.partialorder %v2133_v17, 8.507059e+37 }
 0x5f5   : > { %v2060_v2 = vpop.xlane.xlu0 %2059 }
 0x5f6   : > { %v5165_v9 = vpop.eup %5164  ;;  %5166 = vrcp.f32 %v2060_v2  ;;  %v2165_v35 = vand.u32 2147483648, %v2060_v2  ;;  %v2163_v37 = vand.u32 2147483647, %v2060_v2  ;;  %vm2159_vm8 = vweird.f32 %v2060_v2 }
 0x5f7   : > { %v2125_v48 = vmul.f32 %v5165_v9, %v2054_v3  ;;  %vm2130_vm3 = vweird.f32 %v5165_v9 }
 0x5f8   : > { %vm2131_vm5 = vmor %vm2129_vm4, %vm2130_vm3  ;;  %v2166_v4 = vor.u32 1.1754944e-38, %v2165_v35  ;;  %vm2164_vm10 = vcmp.eq.f32.partialorder %v2163_v37, 8.507059e+37 }
 0x5f9   : > { %v2126_v41 = vsub.f32 1.0, %v2125_v48 }
 0x5fb   : > { %v2127_v14 = vmul.f32 %v5165_v9, %v2126_v41 }
 0x5fc   : > { %v5167_v18 = vpop.eup %5166 }
 0x5fd   : > { %v2128_v19 = vadd.f32 %v5165_v9, %v2127_v14  ;;  %v2155_v6 = vmul.f32 %v5167_v18, %v2060_v2  ;;  %v2057_v12 = vpop.xlane.xlu0 %2056  ;;  %vm2160_vm7 = vweird.f32 %v5167_v18 }
 0x5fe   : > { %5168 = vrcp.f32 %v2057_v12  ;;  %vm2161_vm9 = vmor %vm2159_vm8, %vm2160_vm7  ;;  %v2150_v50 = vand.u32 2147483648, %v2057_v12  ;;  %v2148_v30 = vand.u32 2147483647, %v2057_v12  ;;  %vm2144_vm13 = vweird.f32 %v2057_v12 }
 0x5ff   : > { %v2132_v25 = vsel %vm2131_vm5, %v5165_v9, %v2128_v19  ;;  %v2156_v23 = vsub.f32 1.0, %v2155_v6 }
 0x600   : > { %v2137_v32 = vsel %vm2134_vm6, %v2136_v24, %v2132_v25  ;;  %v2151_v13 = vor.u32 1.1754944e-38, %v2150_v50  ;;  %vm2149_vm15 = vcmp.eq.f32.partialorder %v2148_v30, 8.507059e+37 }
 0x601   : > { %v2157_v43 = vmul.f32 %v5167_v18, %v2156_v23  ;;  %v2138_v33 = vmul.f32 %v6286_v21, %v2137_v32 }
 0x603   : > { %v2158_v38 = vadd.f32 %v5167_v18, %v2157_v43  ;;  %4784 = vmatmul.msk.f32.vlgmr.msra.gmra.mxu1 %vm1138_vm11, %v2138_v33 }
 0x604   : > { %v5169_v57 = vpop.eup %5168 }
 0x605   : > { %v2162_v40 = vsel %vm2161_vm9, %v5167_v18, %v2158_v38  ;;  %v2140_v45 = vmul.f32 %v5169_v57, %v2057_v12  ;;  %vm2145_vm12 = vweird.f32 %v5169_v57 }
 0x606   : > { %v2167_v31 = vsel %vm2164_vm10, %v2166_v4, %v2162_v40  ;;  %vm2146_vm14 = vmor %vm2144_vm13, %vm2145_vm12 }
 0x607   : > { %v2141_v47 = vsub.f32 1.0, %v2140_v45  ;;  %v2561_v39 = vpop.permute.xlu1 %2560  ;;  %v2168_v49 = vmul.f32 %v6292_v44, %v2167_v31 }
 0x609   : > { %v2142_v29 = vmul.f32 %v5169_v57, %v2141_v47  ;;  %4786 = vmatmul.msk.f32.vlgmr.msrb.gmra.mxu3 %vm1138_vm11, %v2168_v49 }
 0x60a   : > { %4800 = vmatpush.xpose.msk.msrb.mxu3 %vm1138_vm11, %v2563_v52 }
 0x60b   : > { %v2143_v21 = vadd.f32 %v5169_v57, %v2142_v29  ;;  %4789 = vmatmul.msk.f32.vlgmr.msrb.gmra.mxu1 %vm1138_vm11, %v2393_v0 }
 0x60d   : > { %v2147_v46 = vsel %vm2146_vm14, %v5169_v57, %v2143_v21 }
 0x60e   : > { %v2152_v55 = vsel %vm2149_vm15, %v2151_v13, %v2147_v46 }
 0x60f   : > { %v2367_v63 = vpop.permute.xlu1 %2366  ;;  %v2153_v44 = vmul.f32 %v6296_v34, %v2152_v55 }
 0x610   : > { %2387 = vmatpush.msrb.mxu0 %v2367_v63  ;;  %v2507_v3 = vpop.permute.xlu0 %2506 }
 0x611   : > { %4785 = vmatmul.msk.f32.vlgmr.msrb.gmra.mxu2 %vm1138_vm11, %v2153_v44  ;;  %4793 = vmatmul.msk.f32.vlgmr.msra.gmra.mxu3 %vm1138_vm11, %v6335_v51 }
 0x612   : > { %4796 = vmatpush.xpose.msk.msra.mxu1 %vm1138_vm11, %v2507_v3  ;;  %4798 = vmatpush.xpose.msk.msrb.mxu2 %vm1138_vm11, %v6330_v10 }
 0x614   : > { %v6365_v12 = vpop.f32.mrf.mxu1 }
 0x617   : > { %v2591_v19 = vpop.permute.xlu1 %2590 }
 0x618   : > { %v2505_v52 = vpop.permute.xlu0 %2504  ;;  %v2063_v0 = vpop.xlane.xlu2 %2062 }
 0x619   : > { %4791 = vmatmul.msk.f32.vlgmr.msra.gmra.mxu2 %vm1138_vm11, %v6274_v1  ;;  %4797 = vmatmul.msk.f32.vlgmr.msra.gmra.mxu1 %vm1138_vm11, %v2505_v52  ;;  %5170 = vrcp.f32 %v2063_v0  ;;  %v2180_v10 = vand.u32 2147483648, %v2063_v0  ;;  %v2178_v41 = vand.u32 2147483647, %v2063_v0  ;;  %vm2174_vm2 = vweird.f32 %v2063_v0 }
 0x61a   : > { %4801 = vmatmul.msk.f32.vlgmr.msrb.gmra.mxu3 %vm1138_vm11, %v2561_v39 }
 0x61b   : > { %v2181_v1 = vor.u32 1.1754944e-38, %v2180_v10  ;;  %vm2179_vm4 = vcmp.eq.f32.partialorder %v2178_v41, 8.507059e+37 }
 0x61f   : > { %v5171_v34 = vpop.eup %5170 }
 0x620   : > { %v2479_v2 = vpop.permute.xlu0 %2478  ;;  %v2170_v9 = vmul.f32 %v5171_v34, %v2063_v0  ;;  %vm2175_vm1 = vweird.f32 %v5171_v34 }
 0x621   : > { %4794 = vmatpush.xpose.msk.msra.mxu0 %vm1138_vm11, %v2479_v2  ;;  %4799 = vmatmul.msk.f32.vlgmr.msrb.gmra.mxu2 %vm1138_vm11, %v6332_v42  ;;  %vm2176_vm3 = vmor %vm2174_vm2, %vm2175_vm1  ;;  %v2477_v42 = vpop.permute.xlu2 %2476  ;;  %v5048_v2 = vpack.i.bf16 %v5982_v54, %v5988_v58 }
 0x622   : > { %v2171_v51 = vsub.f32 1.0, %v2170_v9  ;;  %v5058_v9 = vpack.i.bf16 %v6008_v62, %v6000_v11 }
 0x624   : > { %v2172_v48 = vmul.f32 %v5171_v34, %v2171_v51 }
 0x626   : > { %v2173_v56 = vadd.f32 %v5171_v34, %v2172_v48 }
 0x628   : > { %v2177_v14 = vsel %vm2176_vm3, %v5171_v34, %v2173_v56  ;;  %v2589_v6 = vpop.permute.xlu0 %2588 }
 0x629   : > { %v2182_v17 = vsel %vm2179_vm4, %v2181_v1, %v2177_v14 }
 0x62a   : > { %v2183_v18 = vmul.f32 %v6309_v53, %v2182_v17 }
 0x62c   : > { %4787 = vmatmul.msk.f32.vlgmr.msrb.gmra.mxu0 %vm1138_vm11, %v2183_v18 }
 0x62d   : > { %4802 = vmatpush.xpose.msk.msrb.mxu0 %vm1138_vm11, %v2591_v19 }
 0x634   : > { %4795 = vmatmul.msk.f32.vlgmr.msra.gmra.mxu0 %vm1138_vm11, %v2477_v42 }
 0x63c   : > { %4803 = vmatmul.msk.f32.vlgmr.msrb.gmra.mxu0 %vm1138_vm11, %v2589_v6 }
 0x63e   : > { %v6369_v25 = vpop.f32.mrf.mxu2 }
 0x646   : > { %v6374_v43 = vpop.f32.mrf.mxu2 }
 0x66e   : > { %v6371_v23 = vpop.f32.mrf.mxu3 }
 0x680   : > { %v6367_v24 = vpop.f32.mrf.mxu1 }
 0x688   : > { %v2417_v53 = vpop.f32.mrf.mxu1 }
 0x689   : > { %v2616_v32 = vmul.f32 0.35355338, %v2417_v53 }
 0x68b   : > { %v2624_v35 = vsel %vm1138_vm11, %v2616_v32, -inf }
 0x68c   : > { %2625 = vmax.xlane.f32.xlu0 %v2624_v35  ;;  %v6376_v37 = vpop.f32.mrf.mxu3 }
 0x694   : > { %v6378_v33 = vpop.f32.mrf.mxu2  ;;  %v2473_v38 = vpop.f32.mrf.mxu3 }
 0x695   : > { %v6380_v57 = vmul.f32 0.35355338, %v2473_v38 }
 0x696   : > { %v2529_v4 = vpop.f32.mrf.mxu1 }
 0x697   : > { %v2620_v40 = vmul.f32 0.35355338, %v2529_v4  ;;  %v2630_v45 = vsel %vm1138_vm11, %v6380_v57, -inf }
 0x698   : > { %2631 = vmax.xlane.f32.xlu2 %v2630_v45 }
 0x699   : > { %v2636_v31 = vsel %vm1138_vm11, %v2620_v40, -inf }
 0x69a   : > { %2637 = vmax.xlane.f32.xlu0 %v2636_v31 }
 0x69c   : > { %v2445_v47 = vpop.f32.mrf.mxu2 }
 0x69d   : > { %v2617_v39 = vmul.f32 0.35355338, %v2445_v47  ;;  %v2585_v21 = vpop.f32.mrf.mxu3 }
 0x69e   : > { %v6392_v46 = vmul.f32 0.35355338, %v2585_v21 }
 0x69f   : > { %v2627_v49 = vsel %vm1138_vm11, %v2617_v39, -inf }
 0x6a0   : > { %2628 = vmax.xlane.f32.xlu1 %v2627_v49  ;;  %v2642_v55 = vsel %vm1138_vm11, %v6392_v46, -inf }
 0x6a4   : > { %v2557_v50 = vpop.f32.mrf.mxu2 }
 0x6a5   : > { %v6386_v29 = vmul.f32 0.35355338, %v2557_v50 }
 0x6a7   : > { %v2639_v30 = vsel %vm1138_vm11, %v6386_v29, -inf }
 0x6a8   : > { %2640 = vmax.xlane.f32.xlu1 %v2639_v30 }
 0x6a9   : > { %v6390_v13 = vpop.f32.mrf.mxu0 }
 0x6b0   : > { %2643 = vmax.xlane.f32.xlu1 %v2642_v55 }
 0x6b1   : > { %v2501_v63 = vpop.f32.mrf.mxu0 }
 0x6b2   : > { %v2619_v44 = vmul.f32 0.35355338, %v2501_v63 }
 0x6b4   : > { %v2633_v3 = vsel %vm1138_vm11, %v2619_v44, -inf }
 0x6b5   : > { %2634 = vmax.xlane.f32.xlu0 %v2633_v3 }
 0x6b9   : > { %v2613_v52 = vpop.f32.mrf.mxu0 }
 0x6ba   : > { %v2623_v0 = vmul.f32 0.35355338, %v2613_v52 }
 0x6bc   : > { %v2645_v34 = vsel %vm1138_vm11, %v2623_v0, -inf }
 0x6bd   : > { %2646 = vmax.xlane.f32.xlu2 %v2645_v34 }
 0x6c9   : > { %5049 = vrot.lane.b32.xlu1 %v5048_v2, %s5600_s22  ;;  %5054 = vrot.lane.b32.xlu0 %v6163_v15, %s5600_s22 }
 0x6d1   : > { %3054 = vrot.lane.b32.xlu0 %v5988_v58, %s5601_s28 }
 0x6d5   : > { %5059 = vrot.lane.b32.xlu2 %v5058_v9, %s5600_s22 }
 0x6d9   : > { %3052 = vrot.lane.b32.xlu0 %v5988_v58, %s5602_s20 }
 0x6dd   : > { %3026 = vrot.lane.b32.xlu2 %v5982_v54, %s5601_s28 }
 0x6e1   : > { %3024 = vrot.lane.b32.xlu0 %v5982_v54, %s5602_s20 }
 0x6e5   : > { %3082 = vrot.lane.b32.xlu2 %v5992_v59, %s5601_s28 }
 0x6e9   : > { %3166 = vrot.lane.b32.xlu0 %v6004_v61, %s5601_s28 }
 0x6ed   : > { %3080 = vrot.lane.b32.xlu2 %v5992_v59, %s5602_s20 }
 0x6f1   : > { %3164 = vrot.lane.b32.xlu0 %v6004_v61, %s5602_s20 }
 0x6f5   : > { %3138 = vrot.lane.b32.xlu2 %v6000_v11, %s5601_s28 }
 0x6f9   : > { %2894 = vrot.lane.b32.xlu0 %v5996_v60, %s5600_s22 }
 0x6ff   : > { %v2626_v15 = vpop.xlane.xlu0 %2625 }
 0x700   : > { %v2648_v51 = vsub.f32 %v2616_v32, %v2626_v15 }
 0x702   : > { %v2656_v41 = vmul.f32 1.442695, %v2648_v51 }
 0x70b   : > { %v2632_v32 = vpop.xlane.xlu2 %2631 }
 0x70c   : > { %v2650_v31 = vsub.f32 %v6380_v57, %v2632_v32 }
 0x70d   : > { %v2638_v1 = vpop.xlane.xlu0 %2637 }
 0x70e   : > { %v2652_v14 = vsub.f32 %v2620_v40, %v2638_v1  ;;  %v2660_v47 = vmul.f32 1.442695, %v2650_v31 }
 0x710   : > { %v2664_v18 = vmul.f32 1.442695, %v2652_v14 }
 0x713   : > { %v2629_v10 = vpop.xlane.xlu1 %2628 }
 0x714   : > { %v2649_v48 = vsub.f32 %v2617_v39, %v2629_v10 }
 0x716   : > { %v2658_v56 = vmul.f32 1.442695, %v2649_v48 }
 0x718   : > { %5172 = vpow2.f32 %v2658_v56 }
 0x719   : > { %5174 = vpow2.f32 %v2656_v41 }
 0x71a   : > { %5176 = vpow2.f32 %v2664_v18 }
 0x71b   : > { %v2641_v35 = vpop.xlane.xlu1 %2640 }
 0x71c   : > { %v2653_v55 = vsub.f32 %v6386_v29, %v2641_v35 }
 0x71e   : > { %v6426_v17 = vpop.eup %5172 }
 0x71f   : > { %v2675_v19 = vsel %vm1138_vm11, %v6426_v17, 0.0  ;;  %v6430_v42 = vpop.eup %5174 }
 0x720   : > { %2676 = vadd.xlane.f32.xlu1 %v2675_v19  ;;  %v2672_v6 = vsel %vm1138_vm11, %v6430_v42, 0.0  ;;  %v6434_v53 = vpop.eup %5176 }
 0x721   : > { %v2684_v40 = vsel %vm1138_vm11, %v6434_v53, 0.0 }
 0x723   : > { %2673 = vadd.xlane.f32.xlu0 %v2672_v6  ;;  %v2644_v50 = vpop.xlane.xlu1 %2643 }
 0x728   : > { %v2635_v38 = vpop.xlane.xlu0 %2634 }
 0x729   : > { %v2651_v4 = vsub.f32 %v2619_v44, %v2635_v38  ;;  %v2666_v44 = vmul.f32 1.442695, %v2653_v55  ;;  %v2654_v38 = vsub.f32 %v6392_v46, %v2644_v50 }
 0x72b   : > { %v2662_v45 = vmul.f32 1.442695, %v2651_v4  ;;  %2685 = vadd.xlane.f32.xlu0 %v2684_v40  ;;  %v2668_v4 = vmul.f32 1.442695, %v2654_v38 }
 0x72d   : > { %5178 = vpow2.f32 %v2662_v45 }
 0x72e   : > { %5180 = vpow2.f32 %v2660_v47 }
 0x730   : > { %v2647_v39 = vpop.xlane.xlu2 %2646 }
 0x731   : > { %v2655_v49 = vsub.f32 %v2623_v0, %v2647_v39 }
 0x733   : > { %v6439_v30 = vpop.eup %5178  ;;  %v2670_v21 = vmul.f32 1.442695, %v2655_v49 }
 0x734   : > { %v2681_v63 = vsel %vm1138_vm11, %v6439_v30, 0.0  ;;  %v6444_v3 = vpop.eup %5180 }
 0x735   : > { %5182 = vpow2.f32 %v2670_v21  ;;  %2682 = vadd.xlane.f32.xlu2 %v2681_v63  ;;  %v2678_v48 = vsel %vm1138_vm11, %v6444_v3, 0.0 }
 0x736   : > { %5184 = vpow2.f32 %v2666_v44 }
 0x737   : > { %5186 = vpow2.f32 %v2668_v4 }
 0x738   : > { %v5060_v57 = vpop.permute.xlu2 %5059 }
 0x739   : > { %v5061_v10 = vunpack.i.l.bf16 %v5060_v57  ;;  %v5062_v41 = vunpack.i.h.bf16 %v5060_v57 }
 0x73b   : > { %v5050_v52 = vpop.permute.xlu1 %5049  ;;  %v6446_v34 = vpop.eup %5182 }
 0x73c   : > { %v5052_v0 = vunpack.i.h.bf16 %v5050_v52  ;;  %v5051_v2 = vunpack.i.l.bf16 %v5050_v52  ;;  %v5055_v9 = vpop.permute.xlu0 %5054  ;;  %v2693_v29 = vsel %vm1138_vm11, %v6446_v34, 0.0  ;;  %v6454_v56 = vpop.eup %5184 }
 0x73d   : > { %v5057_v15 = vunpack.i.h.bf16 %v5055_v9  ;;  %v5056_v51 = vunpack.i.l.bf16 %v5055_v9  ;;  %2694 = vadd.xlane.f32.xlu1 %v2693_v29  ;;  %2679 = vadd.xlane.f32.xlu2 %v2678_v48  ;;  %v2687_v14 = vsel %vm1138_vm11, %v6454_v56, 0.0  ;;  %v6477_v40 = vpop.eup %5186 }
 0x73e   : > { %2837 = vmatpush.msrb.mxu1 %v5052_v0  ;;  %2863 = vmatpush.msra.mxu2 %v5051_v2  ;;  %v2690_v45 = vsel %vm1138_vm11, %v6477_v40, 0.0 }
 0x73f   : > { %2889 = vmatpush.msra.mxu3 %v5056_v51  ;;  %3192 = vrot.lane.b32.xlu0 %v6008_v62, %s5602_s20 }
 0x740   : > { %2941 = vmatpush.msra.mxu1 %v5061_v10  ;;  %2967 = vmatpush.msrb.mxu2 %v5057_v15  ;;  %v3027_v31 = vpop.permute.xlu2 %3026 }
 0x741   : > { %2993 = vmatpush.msrb.mxu3 %v5062_v41 }
 0x744   : > { %v6456_v1 = vpop.permute.xlu0 %3054 }
 0x745   : > { %2688 = vadd.xlane.f32.xlu1 %v2687_v14 }
 0x747   : > { %3110 = vrot.lane.b32.xlu0 %v5996_v60, %s5601_s28 }
 0x748   : > { %v6481_v47 = vpop.permute.xlu2 %3082 }
 0x74c   : > { %v6462_v18 = vpop.permute.xlu0 %3052 }
 0x74f   : > { %3222 = vrot.lane.b32.xlu0 %v6032_v5, %s5601_s28 }
 0x750   : > { %v6483_v49 = vpop.permute.xlu2 %3080 }
 0x754   : > { %v6466_v19 = vpop.permute.xlu0 %3024 }
 0x755   : > { %3194 = vrot.lane.b32.xlu2 %v6008_v62, %s5601_s28 }
 0x758   : > { %v3139_v9 = vpop.permute.xlu2 %3138 }
 0x75c   : > { %v6470_v6 = vpop.permute.xlu0 %3166 }
 0x75e   : > { %3136 = vrot.lane.b32.xlu1 %v6000_v11, %s5602_s20 }
 0x764   : > { %v6474_v32 = vpop.permute.xlu0 %3164 }
 0x76c   : > { %v2895_v35 = vpop.permute.xlu0 %2894 }
 0x76d   : > { %2915 = vmatpush.msra.mxu0 %v2895_v35 }
 0x77e   : > { %2691 = vadd.xlane.f32.xlu2 %v2690_v45 }
 0x793   : > { %v2677_v39 = vpop.xlane.xlu1 %2676 }
 0x794   : > { %5188 = vrcp.f32 %v2677_v39  ;;  %v2720_v44 = vand.u32 2147483647, %v2677_v39  ;;  %v2722_v57 = vand.u32 2147483648, %v2677_v39  ;;  %vm2716_vm6 = vweird.f32 %v2677_v39 }
 0x796   : > { %v2674_v21 = vpop.xlane.xlu0 %2673  ;;  %2998 = vrot.lane.b32.xlu2 %v6032_v5, %s5600_s22  ;;  %vm2721_vm8 = vcmp.eq.f32.partialorder %v2720_v44, 8.507059e+37  ;;  %v2723_v29 = vor.u32 1.1754944e-38, %v2722_v57 }
 0x797   : > { %5190 = vrcp.f32 %v2674_v21  ;;  %v2707_v10 = vand.u32 2147483648, %v2674_v21  ;;  %v2705_v14 = vand.u32 2147483647, %v2674_v21  ;;  %vm2701_vm10 = vweird.f32 %v2674_v21 }
 0x799   : > { %vm2706_vm13 = vcmp.eq.f32.partialorder %v2705_v14, 8.507059e+37 }
 0x79a   : > { %v5189_v46 = vpop.eup %5188 }
 0x79b   : > { %v2712_v50 = vmul.f32 %v5189_v46, %v2677_v39  ;;  %vm2717_vm5 = vweird.f32 %v5189_v46 }
 0x79c   : > { %vm2718_vm7 = vmor %vm2716_vm6, %vm2717_vm5 }
 0x79d   : > { %v2713_v55 = vsub.f32 1.0, %v2712_v50  ;;  %v5191_v63 = vpop.eup %5190  ;;  %v2708_v50 = vor.u32 1.1754944e-38, %v2707_v10 }
 0x79e   : > { %v2697_v0 = vmul.f32 %v5191_v63, %v2674_v21  ;;  %v2686_v2 = vpop.xlane.xlu0 %2685  ;;  %3108 = vrot.lane.b32.xlu2 %v5996_v60, %s5602_s20  ;;  %vm2702_vm9 = vweird.f32 %v5191_v63 }
 0x79f   : > { %v2714_v52 = vmul.f32 %v5189_v46, %v2713_v55  ;;  %5192 = vrcp.f32 %v2686_v2  ;;  %vm2703_vm12 = vmor %vm2701_vm10, %vm2702_vm9  ;;  %vm2761_vm15 = vweird.f32 %v2686_v2 }
 0x7a0   : > { %v2698_v51 = vsub.f32 1.0, %v2697_v0 }
 0x7a1   : > { %v2715_v15 = vadd.f32 %v5189_v46, %v2714_v52 }
 0x7a2   : > { %v2699_v41 = vmul.f32 %v5191_v63, %v2698_v51 }
 0x7a3   : > { %v2719_v48 = vsel %vm2718_vm7, %v5189_v46, %v2715_v15 }
 0x7a4   : > { %v2724_v35 = vsel %vm2721_vm8, %v2723_v29, %v2719_v48  ;;  %v2700_v38 = vadd.f32 %v5191_v63, %v2699_v41 }
 0x7a5   : > { %v2725_v4 = vmul.f32 %v6426_v17, %v2724_v35  ;;  %v5193_v45 = vpop.eup %5192  ;;  %v2767_v17 = vand.u32 2147483648, %v2686_v2 }
 0x7a6   : > { %v2704_v55 = vsel %vm2703_vm12, %v5191_v63, %v2700_v38  ;;  %v2757_v39 = vmul.f32 %v5193_v45, %v2686_v2  ;;  %3220 = vrot.lane.b32.xlu2 %v6032_v5, %s5602_s20  ;;  %vm2762_vm14 = vweird.f32 %v5193_v45  ;;  %v2765_v63 = vand.u32 2147483647, %v2686_v2  ;;  %s7252_s20 = sld [smem:[#allocation40_spill]] }
 0x7a7   : > { %4805 = vmatmul.msk.f32.vlgmr.msra.gmra.mxu2 %vm1138_vm11, %v2725_v4  ;;  %v2709_v44 = vsel %vm2706_vm13, %v2708_v50, %v2704_v55  ;;  %vm2763_vm1 = vmor %vm2761_vm15, %vm2762_vm14  ;;  %v2768_v15 = vor.u32 1.1754944e-38, %v2767_v17 }
 0x7a8   : > { %4814 = vmatpush.xpose.msk.msra.mxu2 %vm1138_vm11, %v6456_v1  ;;  %v2758_v46 = vsub.f32 1.0, %v2757_v39  ;;  %v2683_v57 = vpop.xlane.xlu2 %2682  ;;  %v2710_v21 = vmul.f32 %v6430_v42, %v2709_v44  ;;  %vm2766_vm2 = vcmp.eq.f32.partialorder %v2765_v63, 8.507059e+37 }
 0x7a9   : > { %5194 = vrcp.f32 %v2683_v57  ;;  %v2752_v35 = vand.u32 2147483648, %v2683_v57  ;;  %v2750_v2 = vand.u32 2147483647, %v2683_v57  ;;  %vm2746_vm4 = vweird.f32 %v2683_v57 }
 0x7aa   : > { %v2759_v52 = vmul.f32 %v5193_v45, %v2758_v46  ;;  %4804 = vmatmul.msk.f32.vlgmr.msrb.gmra.mxu1 %vm1138_vm11, %v2710_v21 }
 0x7ab   : > { %4812 = vmatpush.xpose.msk.msrb.mxu1 %vm1138_vm11, %v3027_v31  ;;  %v2753_v4 = vor.u32 1.1754944e-38, %v2752_v35  ;;  %vm2751_vm6 = vcmp.eq.f32.partialorder %v2750_v2, 8.507059e+37 }
 0x7ac   : > { %v2760_v0 = vadd.f32 %v5193_v45, %v2759_v52  ;;  %s5492_s22 = scalar_lea.hbm %s7252_s20, 64 }
 0x7ae   : > { %v2764_v51 = vsel %vm2763_vm1, %v5193_v45, %v2760_v0 }
 0x7af   : > { %v5195_v1 = vpop.eup %5194  ;;  %v2769_v29 = vsel %vm2766_vm2, %v2768_v15, %v2764_v51 }
 0x7b0   : > { %v2742_v10 = vmul.f32 %v5195_v1, %v2683_v57  ;;  %v2770_v42 = vmul.f32 %v6434_v53, %v2769_v29  ;;  %v6499_v48 = vpop.xlane.xlu1 %2694  ;;  %v2680_v41 = vpop.xlane.xlu2 %2679  ;;  %vm2747_vm3 = vweird.f32 %v5195_v1 }
 0x7b1   : > { %5196 = vrcp.f32 %v2680_v41  ;;  %vm2748_vm5 = vmor %vm2746_vm4, %vm2747_vm3  ;;  %v2737_v46 = vand.u32 2147483648, %v2680_v41  ;;  %v2735_v57 = vand.u32 2147483647, %v2680_v41  ;;  %vm2731_vm8 = vweird.f32 %v2680_v41 }
 0x7b2   : > { %v2743_v14 = vsub.f32 1.0, %v2742_v10  ;;  %4808 = vmatmul.msk.f32.vlgmr.msra.gmra.mxu1 %vm1138_vm11, %v2770_v42  ;;  %vm2806_vm2 = vweird.f32 %v6499_v48 }
 0x7b3   : > { %4820 = vmatpush.xpose.msk.msra.mxu1 %vm1138_vm11, %v3139_v9  ;;  %v2738_v63 = vor.u32 1.1754944e-38, %v2737_v46  ;;  %vm2736_vm10 = vcmp.eq.f32.partialorder %v2735_v57, 8.507059e+37 }
 0x7b4   : > { %v2744_v31 = vmul.f32 %v5195_v1, %v2743_v14 }
 0x7b6   : > { %v2745_v38 = vadd.f32 %v5195_v1, %v2744_v31 }
 0x7b7   : > { %v5197_v53 = vpop.eup %5196 }
 0x7b8   : > { %v2749_v45 = vsel %vm2748_vm5, %v5195_v1, %v2745_v38  ;;  %v2689_v55 = vpop.xlane.xlu1 %2688  ;;  %v2727_v39 = vmul.f32 %v5197_v53, %v2680_v41  ;;  %vm2732_vm7 = vweird.f32 %v5197_v53  ;;  %v3193_v38 = vpop.permute.xlu0 %3192 }
 0x7b9   : > { %v2754_v50 = vsel %vm2751_vm6, %v2753_v4, %v2749_v45  ;;  %5198 = vrcp.f32 %v2689_v55  ;;  %vm2733_vm9 = vmor %vm2731_vm8, %vm2732_vm7  ;;  %v2780_v10 = vand.u32 2147483647, %v2689_v55  ;;  %vm2776_vm13 = vweird.f32 %v2689_v55  ;;  %v3195_v4 = vpop.permute.xlu2 %3194 }
 0x7ba   : > { %4813 = vmatmul.msk.f32.vlgmr.msrb.gmra.mxu1 %vm1138_vm11, %v6466_v19  ;;  %v2755_v44 = vmul.f32 %v6439_v30, %v2754_v50  ;;  %v2728_v9 = vsub.f32 1.0, %v2727_v39  ;;  %v2782_v19 = vand.u32 2147483648, %v2689_v55  ;;  %5200 = vrcp.f32 %v6499_v48 }
 0x7bb   : > { %vm2781_vm15 = vcmp.eq.f32.partialorder %v2780_v10, 8.507059e+37 }
 0x7bc   : > { %4807 = vmatmul.msk.f32.vlgmr.msra.gmra.mxu0 %vm1138_vm11, %v2755_v44  ;;  %v2729_v21 = vmul.f32 %v5197_v53, %v2728_v9  ;;  %v2783_v41 = vor.u32 1.1754944e-38, %v2782_v19 }
 0x7be   : > { %v2730_v52 = vadd.f32 %v5197_v53, %v2729_v21 }
 0x7bf   : > { %v5199_v17 = vpop.eup %5198 }
 0x7c0   : > { %v2772_v0 = vmul.f32 %v5199_v17, %v2689_v55  ;;  %v2734_v15 = vsel %vm2733_vm9, %v5197_v53, %v2730_v52  ;;  %vm2777_vm12 = vweird.f32 %v5199_v17  ;;  %v3111_v55 = vpop.permute.xlu0 %3110 }
 0x7c1   : > { %v2739_v51 = vsel %vm2736_vm10, %v2738_v63, %v2734_v15  ;;  %vm2778_vm14 = vmor %vm2776_vm13, %vm2777_vm12 }
 0x7c2   : > { %v2773_v1 = vsub.f32 1.0, %v2772_v0  ;;  %v2740_v30 = vmul.f32 %v6444_v3, %v2739_v51 }
 0x7c4   : > { %v2774_v29 = vmul.f32 %v5199_v17, %v2773_v1  ;;  %4806 = vmatmul.msk.f32.vlgmr.msra.gmra.mxu3 %vm1138_vm11, %v2740_v30 }
 0x7c5   : > { %4816 = vmatpush.xpose.msk.msra.mxu3 %vm1138_vm11, %v6481_v47  ;;  %v5201_v47 = vpop.eup %5200 }
 0x7c6   : > { %v2775_v42 = vadd.f32 %v5199_v17, %v2774_v29  ;;  %v2802_v2 = vmul.f32 %v5201_v47, %v6499_v48  ;;  %vm2807_vm1 = vweird.f32 %v5201_v47 }
 0x7c7   : > { %vm2808_vm3 = vmor %vm2806_vm2, %vm2807_vm1 }
 0x7c8   : > { %v2779_v14 = vsel %vm2778_vm14, %v5199_v17, %v2775_v42  ;;  %v3223_v52 = vpop.permute.xlu0 %3222 }
 0x7c9   : > { %v2784_v35 = vsel %vm2781_vm15, %v2783_v41, %v2779_v14 }
 0x7ca   : > { %v2785_v31 = vmul.f32 %v6454_v56, %v2784_v35  ;;  %v2803_v56 = vsub.f32 1.0, %v2802_v2 }
 0x7cc   : > { %4809 = vmatmul.msk.f32.vlgmr.msrb.gmra.mxu2 %vm1138_vm11, %v2785_v31  ;;  %v2804_v45 = vmul.f32 %v5201_v47, %v2803_v56 }
 0x7cd   : > { %4822 = vmatpush.xpose.msk.msrb.mxu2 %vm1138_vm11, %v6470_v6  ;;  %v2812_v6 = vand.u32 2147483648, %v6499_v48 }
 0x7ce   : > { %v2805_v53 = vadd.f32 %v5201_v47, %v2804_v45 }
 0x7cf   : > { %v2813_v39 = vor.u32 1.1754944e-38, %v2812_v6 }
 0x7d0   : > { %v3137_v3 = vpop.permute.xlu1 %3136 }
 0x7d1   : > { %4821 = vmatmul.msk.f32.vlgmr.msra.gmra.mxu1 %vm1138_vm11, %v3137_v3 }
 0x7d4   : > { %4815 = vmatmul.msk.f32.vlgmr.msra.gmra.mxu2 %vm1138_vm11, %v6462_v18  ;;  %v2810_v18 = vand.u32 2147483647, %v6499_v48 }
 0x7d6   : > { %vm2811_vm4 = vcmp.eq.f32.partialorder %v2810_v18, 8.507059e+37 }
 0x7dc   : > { %4823 = vmatmul.msk.f32.vlgmr.msrb.gmra.mxu2 %vm1138_vm11, %v6474_v32  ;;  %v2809_v32 = vsel %vm2808_vm3, %v5201_v47, %v2805_v53 }
 0x7dd   : > { %v2814_v44 = vsel %vm2811_vm4, %v2813_v39, %v2809_v32 }
 0x7de   : > { %v2815_v57 = vmul.f32 %v6446_v34, %v2814_v44 }
 0x7f1   : > { %v2692_v50 = vpop.xlane.xlu2 %2691 }
 0x7f2   : > { %5202 = vrcp.f32 %v2692_v50  ;;  %v2797_v63 = vand.u32 2147483648, %v2692_v50  ;;  %v2795_v0 = vand.u32 2147483647, %v2692_v50  ;;  %vm2791_vm6 = vweird.f32 %v2692_v50 }
 0x7f4   : > { %v2798_v51 = vor.u32 1.1754944e-38, %v2797_v63  ;;  %vm2796_vm8 = vcmp.eq.f32.partialorder %v2795_v0, 8.507059e+37 }
 0x7f8   : > { %v5203_v9 = vpop.eup %5202 }
 0x7f9   : > { %v2787_v46 = vmul.f32 %v5203_v9, %v2692_v50  ;;  %v2999_v21 = vpop.permute.xlu2 %2998  ;;  %vm2792_vm5 = vweird.f32 %v5203_v9 }
 0x7fa   : > { %3019 = vmatpush.msrb.mxu0 %v2999_v21  ;;  %vm2793_vm7 = vmor %vm2791_vm6, %vm2792_vm5 }
 0x7fb   : > { %v2788_v17 = vsub.f32 1.0, %v2787_v46  ;;  %4811 = vmatmul.msk.f32.vlgmr.msrb.gmra.mxu0 %vm1138_vm11, %v2815_v57 }
 0x7fc   : > { %4818 = vmatpush.xpose.msk.msra.mxu0 %vm1138_vm11, %v3111_v55 }
 0x7fd   : > { %v2789_v48 = vmul.f32 %v5203_v9, %v2788_v17 }
 0x7ff   : > { %v2790_v15 = vadd.f32 %v5203_v9, %v2789_v48 }
 0x800   : > { %4826 = vmatpush.xpose.msk.msrb.mxu0 %vm1138_vm11, %v3223_v52 }
 0x801   : > { %v2794_v1 = vsel %vm2793_vm7, %v5203_v9, %v2790_v15  ;;  %v3109_v34 = vpop.permute.xlu2 %3108  ;;  %v5063_v15 = vpack.i.bf16 %v5988_v58, %v5982_v54 }
 0x802   : > { %v2799_v19 = vsel %vm2796_vm8, %v2798_v51, %v2794_v1 }
 0x803   : > { %4819 = vmatmul.msk.f32.vlgmr.msra.gmra.mxu0 %vm1138_vm11, %v3109_v34  ;;  %v2800_v30 = vmul.f32 %v6477_v40, %v2799_v19 }
 0x805   : > { %4810 = vmatmul.msk.f32.vlgmr.msrb.gmra.mxu3 %vm1138_vm11, %v2800_v30 }
 0x806   : > { %4824 = vmatpush.xpose.msk.msrb.mxu3 %vm1138_vm11, %v3195_v4 }
 0x809   : > { %v3221_v29 = vpop.permute.xlu2 %3220 }
 0x80b   : > { %4827 = vmatmul.msk.f32.vlgmr.msrb.gmra.mxu0 %vm1138_vm11, %v3221_v29 }
 0x80d   : > { %4817 = vmatmul.msk.f32.vlgmr.msra.gmra.mxu3 %vm1138_vm11, %v6483_v49 }
 0x815   : > { %4825 = vmatmul.msk.f32.vlgmr.msrb.gmra.mxu3 %vm1138_vm11, %v3193_v38 }
 0x827   : > { %v6537_v10 = vpop.f32.mrf.mxu1 }
 0x82a   : > { %v6542_v35 = vpop.f32.mrf.mxu2 }
 0x82f   : > { %v6539_v42 = vpop.f32.mrf.mxu1 }
 0x837   : > { %v3049_v41 = vpop.f32.mrf.mxu1 }
 0x838   : > { %v3248_v14 = vmul.f32 0.35355338, %v3049_v41 }
 0x839   : > { %v6548_v4 = vpop.f32.mrf.mxu0 }
 0x83a   : > { %v3256_v40 = vsel %vm1138_vm11, %v3248_v14, -inf }
 0x83b   : > { %3257 = vmax.xlane.f32.xlu1 %v3256_v40 }
 0x847   : > { %v6552_v53 = vpop.f32.mrf.mxu3 }
 0x84e   : > { %v3161_v31 = vpop.f32.mrf.mxu1 }
 0x84f   : > { %v3252_v3 = vmul.f32 0.35355338, %v3161_v31  ;;  %v6544_v47 = vpop.f32.mrf.mxu2 }
 0x851   : > { %v3268_v2 = vsel %vm1138_vm11, %v3252_v3, -inf }
 0x852   : > { %3269 = vmax.xlane.f32.xlu2 %v3268_v2 }
 0x857   : > { %v3077_v49 = vpop.f32.mrf.mxu2 }
 0x858   : > { %v3249_v56 = vmul.f32 0.35355338, %v3077_v49 }
 0x85a   : > { %v3259_v38 = vsel %vm1138_vm11, %v3249_v56, -inf }
 0x85b   : > { %3260 = vmax.xlane.f32.xlu0 %v3259_v38 }
 0x85f   : > { %v3189_v39 = vpop.f32.mrf.mxu2 }
 0x860   : > { %v6560_v44 = vmul.f32 0.35355338, %v3189_v39 }
 0x862   : > { %v3271_v21 = vsel %vm1138_vm11, %v6560_v44, -inf }
 0x878   : > { %v6550_v45 = vpop.f32.mrf.mxu0 }
 0x880   : > { %v3133_v6 = vpop.f32.mrf.mxu0 }
 0x881   : > { %v3251_v17 = vmul.f32 0.35355338, %v3133_v6 }
 0x883   : > { %v3265_v48 = vsel %vm1138_vm11, %v3251_v17, -inf }
 0x888   : > { %v6554_v18 = vpop.f32.mrf.mxu3  ;;  %v3245_v50 = vpop.f32.mrf.mxu0 }
 0x889   : > { %v6556_v55 = vmul.f32 0.35355338, %v3245_v50 }
 0x88b   : > { %v3277_v32 = vsel %vm1138_vm11, %v6556_v55, -inf }
 0x88c   : > { %3278 = vmax.xlane.f32.xlu0 %v3277_v32 }
 0x890   : > { %v3105_v9 = vpop.f32.mrf.mxu3 }
 0x891   : > { %v3250_v46 = vmul.f32 0.35355338, %v3105_v9 }
 0x893   : > { %v3262_v57 = vsel %vm1138_vm11, %v3250_v46, -inf }
 0x894   : > { %3272 = vmax.xlane.f32.xlu0 %v3271_v21  ;;  %3263 = vmax.xlane.f32.xlu1 %v3262_v57 }
 0x898   : > { %v3217_v52 = vpop.f32.mrf.mxu3 }
 0x899   : > { %v3254_v63 = vmul.f32 0.35355338, %v3217_v52 }
 0x89b   : > { %v3274_v0 = vsel %vm1138_vm11, %v3254_v63, -inf }
 0x89c   : > { %3266 = vmax.xlane.f32.xlu1 %v3265_v48  ;;  %3275 = vmax.xlane.f32.xlu2 %v3274_v0 }
 0x8ae   : > { %v3258_v34 = vpop.xlane.xlu1 %3257 }
 0x8af   : > { %v3280_v30 = vsub.f32 %v3248_v14, %v3258_v34 }
 0x8b1   : > { %v3288_v29 = vmul.f32 1.442695, %v3280_v30 }
 0x8b4   : > { %5064 = vrot.lane.b32.xlu2 %v5063_v15, %s5603_s1 }
 0x8c5   : > { %v3270_v51 = vpop.xlane.xlu2 %3269 }
 0x8c6   : > { %v3284_v1 = vsub.f32 %v3252_v3, %v3270_v51 }
 0x8c8   : > { %v3296_v19 = vmul.f32 1.442695, %v3284_v1 }
 0x8ca   : > { %5204 = vpow2.f32 %v3296_v19 }
 0x8cb   : > { %5206 = vpow2.f32 %v3288_v29 }
 0x8ce   : > { %v3261_v58 = vpop.xlane.xlu0 %3260 }
 0x8cf   : > { %v3281_v39 = vsub.f32 %v3249_v56, %v3261_v58 }
 0x8d0   : > { %v6570_v41 = vpop.eup %5204 }
 0x8d1   : > { %v3316_v40 = vsel %vm1138_vm11, %v6570_v41, 0.0  ;;  %v6574_v31 = vpop.eup %5206  ;;  %v3290_v48 = vmul.f32 1.442695, %v3281_v39 }
 0x8d2   : > { %3317 = vadd.xlane.f32.xlu0 %v3316_v40  ;;  %v3304_v54 = vsel %vm1138_vm11, %v6574_v31, 0.0 }
 0x8dd   : > { %3305 = vadd.xlane.f32.xlu2 %v3304_v54  ;;  %v5068_v54 = vpack.i.bf16 %v5992_v59, %v6000_v11 }
 0x8ff   : > { %v3279_v38 = vpop.xlane.xlu0 %3278 }
 0x907   : > { %v3264_v3 = vpop.xlane.xlu1 %3263 }
 0x908   : > { %v3282_v2 = vsub.f32 %v3250_v46, %v3264_v3  ;;  %v3273_v46 = vpop.xlane.xlu0 %3272 }
 0x909   : > { %v3285_v56 = vsub.f32 %v6560_v44, %v3273_v46 }
 0x90a   : > { %v3292_v49 = vmul.f32 1.442695, %v3282_v2 }
 0x90b   : > { %v3298_v19 = vmul.f32 1.442695, %v3285_v56 }
 0x90c   : > { %5208 = vpow2.f32 %v3292_v49 }
 0x90f   : > { %v3267_v14 = vpop.xlane.xlu1 %3266  ;;  %v3276_v6 = vpop.xlane.xlu2 %3275 }
 0x910   : > { %v3283_v50 = vsub.f32 %v3251_v17, %v3267_v14  ;;  %v3286_v32 = vsub.f32 %v3254_v63, %v3276_v6 }
 0x912   : > { %v3294_v9 = vmul.f32 1.442695, %v3283_v50  ;;  %v3300_v21 = vmul.f32 1.442695, %v3286_v32  ;;  %v6578_v57 = vpop.eup %5208 }
 0x913   : > { %v3310_v52 = vsel %vm1138_vm11, %v6578_v57, 0.0 }
 0x914   : > { %5210 = vpow2.f32 %v3294_v9  ;;  %3311 = vadd.xlane.f32.xlu2 %v3310_v52 }
 0x915   : > { %5212 = vpow2.f32 %v3300_v21 }
 0x916   : > { %5214 = vpow2.f32 %v3290_v48 }
 0x917   : > { %v5065_v0 = vpop.permute.xlu2 %5064  ;;  %5216 = vpow2.f32 %v3298_v19 }
 0x918   : > { %v5067_v15 = vunpack.i.h.bf16 %v5065_v0  ;;  %v5066_v51 = vunpack.i.l.bf16 %v5065_v0 }
 0x91a   : > { %v6582_v1 = vpop.eup %5210  ;;  %3469 = vmatpush.msrb.mxu1 %v5066_v51  ;;  %3495 = vmatpush.msra.mxu2 %v5067_v15 }
 0x91b   : > { %v6585_v17 = vpop.eup %5212  ;;  %v3313_v63 = vsel %vm1138_vm11, %v6582_v1, 0.0 }
 0x91c   : > { %3314 = vadd.xlane.f32.xlu1 %v3313_v63  ;;  %v3322_v34 = vsel %vm1138_vm11, %v6585_v17, 0.0  ;;  %v6591_v30 = vpop.eup %5214 }
 0x91d   : > { %3323 = vadd.xlane.f32.xlu0 %v3322_v34  ;;  %v3307_v29 = vsel %vm1138_vm11, %v6591_v30, 0.0  ;;  %v6595_v44 = vpop.eup %5216 }
 0x91e   : > { %v3319_v40 = vsel %vm1138_vm11, %v6595_v44, 0.0 }
 0x924   : > { %3308 = vadd.xlane.f32.xlu1 %v3307_v29 }
 0x92c   : > { %3320 = vadd.xlane.f32.xlu1 %v3319_v40  ;;  %3604 = vrot.lane.b32.xlu2 %v6008_v62, %s5603_s1  ;;  %v3287_v62 = vsub.f32 %v6556_v55, %v3279_v38 }
 0x92e   : > { %v3302_v58 = vmul.f32 1.442695, %v3287_v62 }
 0x930   : > { %5218 = vpow2.f32 %v3302_v58 }
 0x931   : > { %5069 = vrot.lane.b32.xlu0 %v5068_v54, %s5603_s1 }
 0x934   : > { %3526 = vrot.lane.b32.xlu2 %v5996_v60, %s5603_s1 }
 0x936   : > { %v6617_v60 = vpop.eup %5218 }
 0x93c   : > { %3672 = vrot.lane.b32.xlu2 %v6367_v24, %s5604_s18 }
 0x944   : > { %3706 = vrot.lane.b32.xlu2 %v6544_v47, %s5605_s24 }
 0x945   : > { %3578 = vrot.lane.b32.xlu1 %v6004_v61, %s5603_s1  ;;  %v3325_v61 = vsel %vm1138_vm11, %v6617_v60, 0.0  ;;  %v3318_v6 = vpop.xlane.xlu0 %3317 }
 0x946   : > { %vm3393_vm15 = vweird.f32 %v3318_v6  ;;  %v3397_v19 = vand.u32 2147483647, %v3318_v6 }
 0x948   : > { %vm3398_vm5 = vcmp.eq.f32.partialorder %v3397_v19, 8.507059e+37 }
 0x94d   : > { %3630 = vrot.lane.b32.xlu1 %v6032_v5, %s5603_s1 }
 0x950   : > { %v3306_v59 = vpop.xlane.xlu2 %3305 }
 0x951   : > { %5220 = vrcp.f32 %v3306_v59  ;;  %v3339_v3 = vand.u32 2147483648, %v3306_v59  ;;  %v3337_v2 = vand.u32 2147483647, %v3306_v59  ;;  %vm3333_vm10 = vweird.f32 %v3306_v59 }
 0x952   : > { %5222 = vrcp.f32 %v3318_v6 }
 0x953   : > { %vm3338_vm13 = vcmp.eq.f32.partialorder %v3337_v2, 8.507059e+37 }
 0x955   : > { %3704 = vrot.lane.b32.xlu1 %v6539_v42, %s5605_s24  ;;  %v3340_v42 = vor.u32 1.1754944e-38, %v3339_v3 }
 0x957   : > { %v5221_v11 = vpop.eup %5220 }
 0x958   : > { %v3329_v24 = vmul.f32 %v5221_v11, %v3306_v59  ;;  %vm3334_vm9 = vweird.f32 %v5221_v11 }
 0x959   : > { %vm3335_vm12 = vmor %vm3333_vm10, %vm3334_vm9 }
 0x95a   : > { %v3330_v47 = vsub.f32 1.0, %v3329_v24 }
 0x95b   : > { %3326 = vadd.xlane.f32.xlu0 %v3325_v61 }
 0x95c   : > { %v3331_v55 = vmul.f32 %v5221_v11, %v3330_v47 }
 0x95d   : > { %3674 = vrot.lane.b32.xlu1 %v6378_v33, %s5604_s18  ;;  %v5223_v33 = vpop.eup %5222 }
 0x95e   : > { %v3332_v5 = vadd.f32 %v5221_v11, %v3331_v55  ;;  %vm3394_vm14 = vweird.f32 %v5223_v33 }
 0x95f   : > { %vm6647_vm1 = vmor %vm3393_vm15, %vm3394_vm14 }
 0x960   : > { %v3336_v49 = vsel %vm3335_vm12, %v5221_v11, %v3332_v5 }
 0x961   : > { %v3341_v38 = vsel %vm3338_vm13, %v3340_v42, %v3336_v49 }
 0x962   : > { %v3342_v14 = vmul.f32 %v6574_v31, %v3341_v38  ;;  %v3389_v31 = vmul.f32 %v5223_v33, %v3318_v6 }
 0x964   : > { %4828 = vmatmul.msk.f32.vlgmr.msrb.gmra.mxu1 %vm1138_vm11, %v3342_v14  ;;  %v3390_v32 = vsub.f32 1.0, %v3389_v31 }
 0x96f   : > { %3708 = vrot.lane.b32.xlu0 %v6554_v18, %s5605_s24 }
 0x977   : > { %3696 = vrot.lane.b32.xlu0 %v6537_v10, %s5605_s24 }
 0x97f   : > { %3698 = vrot.lane.b32.xlu0 %v6542_v35, %s5605_s24  ;;  %v3391_v35 = vmul.f32 %v5223_v33, %v3390_v32 }
 0x981   : > { %v3392_v48 = vadd.f32 %v5223_v33, %v3391_v35 }
 0x983   : > { %v3396_v40 = vsel %vm6647_vm1, %v5223_v33, %v3392_v48 }
 0x987   : > { %3700 = vrot.lane.b32.xlu0 %v6552_v53, %s5605_s24  ;;  %v3312_v50 = vpop.xlane.xlu2 %3311 }
 0x988   : > { %5224 = vrcp.f32 %v3312_v50  ;;  %vm3363_vm4 = vweird.f32 %v3312_v50  ;;  %v3369_v47 = vand.u32 2147483648, %v3312_v50  ;;  %v3367_v3 = vand.u32 2147483647, %v3312_v50 }
 0x98a   : > { %v3370_v31 = vor.u32 1.1754944e-38, %v3369_v47  ;;  %vm3368_vm10 = vcmp.eq.f32.partialorder %v3367_v3, 8.507059e+37 }
 0x98e   : > { %v5225_v39 = vpop.eup %5224 }
 0x98f   : > { %3702 = vrot.lane.b32.xlu0 %v6548_v4, %s5605_s24  ;;  %v3315_v18 = vpop.xlane.xlu1 %3314  ;;  %v3359_v9 = vmul.f32 %v5225_v39, %v3312_v50  ;;  %v6637_v21 = vpop.permute.xlu2 %3604  ;;  %v3399_v4 = vand.u32 2147483648, %v3318_v6  ;;  %vm3364_vm2 = vweird.f32 %v5225_v39 }
 0x990   : > { %5226 = vrcp.f32 %v3315_v18  ;;  %v6635_v10 = vpop.xlane.xlu0 %3323  ;;  %v3382_v54 = vand.u32 2147483647, %v3315_v18  ;;  %v3384_v62 = vand.u32 2147483648, %v3315_v18  ;;  %vm6653_vm6 = vmor %vm3363_vm4, %vm3364_vm2  ;;  %vm3378_vm7 = vweird.f32 %v3315_v18 }
 0x991   : > { %5228 = vrcp.f32 %v6635_v10  ;;  %v3360_v52 = vsub.f32 1.0, %v3359_v9  ;;  %v3400_v24 = vor.u32 1.1754944e-38, %v3399_v4  ;;  %vm3423_vm14 = vweird.f32 %v6635_v10 }
 0x992   : > { %vm3383_vm9 = vcmp.eq.f32.partialorder %v3382_v54, 8.507059e+37  ;;  %v3385_v42 = vor.u32 1.1754944e-38, %v3384_v62 }
 0x993   : > { %v3361_v0 = vmul.f32 %v5225_v39, %v3360_v52  ;;  %v3401_v5 = vsel %vm3398_vm5, %v3400_v24, %v3396_v40 }
 0x995   : > { %v3362_v58 = vadd.f32 %v5225_v39, %v3361_v0 }
 0x996   : > { %v5227_v53 = vpop.eup %5226 }
 0x997   : > { %v6640_v46 = vpop.eup %5228  ;;  %v3374_v15 = vmul.f32 %v5227_v53, %v3315_v18  ;;  %v6642_v51 = vpop.xlane.xlu1 %3308  ;;  %vm3379_vm3 = vweird.f32 %v5227_v53  ;;  %v3366_v49 = vsel %vm6653_vm6, %v5225_v39, %v3362_v58  ;;  %v3402_v18 = vmul.f32 %v6570_v41, %v3401_v5 }
 0x998   : > { %v3419_v56 = vmul.f32 %v6640_v46, %v6635_v10  ;;  %5230 = vrcp.f32 %v6642_v51  ;;  %v3527_v63 = vpop.permute.xlu2 %3526  ;;  %vm3380_vm8 = vmor %vm3378_vm7, %vm3379_vm3  ;;  %v3371_v9 = vsel %vm3368_vm10, %v3370_v31, %v3366_v49  ;;  %vm3424_vm12 = vweird.f32 %v6640_v46 }
 0x999   : > { %v3375_v29 = vsub.f32 1.0, %v3374_v15  ;;  %3547 = vmatpush.msra.mxu0 %v3527_v63  ;;  %v3354_v35 = vand.u32 2147483648, %v6642_v51  ;;  %v3352_v48 = vand.u32 2147483647, %v6642_v51  ;;  %v3429_v15 = vand.u32 2147483648, %v6635_v10  ;;  %vm6670_vm15 = vmor %vm3423_vm14, %vm3424_vm12 }
 0x99a   : > { %v3420_v11 = vsub.f32 1.0, %v3419_v56  ;;  %vm3348_vm1 = vweird.f32 %v6642_v51  ;;  %v3372_v34 = vmul.f32 %v6578_v57, %v3371_v9  ;;  %vm3760_vm14 = vcmask 130048  }
 0x99b   : > { %v3376_v59 = vmul.f32 %v5227_v53, %v3375_v29  ;;  %v3355_v29 = vor.u32 1.1754944e-38, %v3354_v35  ;;  %vm3353_vm3 = vcmp.eq.f32.partialorder %v3352_v48, 8.507059e+37 }
 0x99c   : > { %v3421_v14 = vmul.f32 %v6640_v46, %v3420_v11 }
 0x99d   : > { %v3377_v55 = vadd.f32 %v5227_v53, %v3376_v59 }
 0x99e   : > { %v5231_v2 = vpop.eup %5230  ;;  %v3422_v52 = vadd.f32 %v6640_v46, %v3421_v14 }
 0x99f   : > { %v3381_v38 = vsel %vm3380_vm8, %v5227_v53, %v3377_v55  ;;  %v3344_v6 = vmul.f32 %v5231_v2, %v6642_v51  ;;  %v3321_v33 = vpop.xlane.xlu1 %3320  ;;  %vm3349_vm13 = vweird.f32 %v5231_v2 }
 0x9a0   : > { %v3386_v32 = vsel %vm3383_vm9, %v3385_v42, %v3381_v38  ;;  %5232 = vrcp.f32 %v3321_v33  ;;  %vm3350_vm2 = vmor %vm3348_vm1, %vm3349_vm13  ;;  %v3426_v40 = vsel %vm6670_vm15, %v6640_v46, %v3422_v52  ;;  %v3414_v47 = vand.u32 2147483648, %v3321_v33 }
 0x9a1   : > { %v3345_v50 = vsub.f32 1.0, %v3344_v6  ;;  %v3387_v39 = vmul.f32 %v6582_v1, %v3386_v32  ;;  %v3427_v1 = vand.u32 2147483647, %v6635_v10  ;;  %v3430_v10 = vor.u32 1.1754944e-38, %v3429_v15  ;;  %v3828_v15 = vld [vmem:[#allocation11 + $0x8] sm:$0xff] }
 0x9a2   : > { %vm3408_vm6 = vweird.f32 %v3321_v33  ;;  %v3412_v61 = vand.u32 2147483647, %v3321_v33  ;;  %vm3769_vm15 = vcmask 195584  }
 0x9a3   : > { %v3346_v53 = vmul.f32 %v5231_v2, %v3345_v50  ;;  %v5070_v0 = vpop.permute.xlu0 %5069  ;;  %4831 = vmatmul.msk.f32.vlgmr.msra.gmra.mxu0 %vm1138_vm11, %v3387_v39  ;;  %vm3428_vm4 = vcmp.eq.f32.partialorder %v3427_v1, 8.507059e+37 }
 0x9a4   : > { %v5072_v4 = vunpack.i.h.bf16 %v5070_v0  ;;  %v5071_v41 = vunpack.i.l.bf16 %v5070_v0  ;;  %v3431_v59 = vsel %vm3428_vm4, %v3430_v10, %v3426_v40  ;;  %vm3413_vm8 = vcmp.eq.f32.partialorder %v3412_v61, 8.507059e+37  ;;  %v3830_v0 = vld [vmem:[#allocation11 + $0x18] sm:$0xff]  ;;  %v3778_v40 = vld [vmem:[#allocation9] sm:$0xff] }
 0x9a5   : > { %v3347_v63 = vadd.f32 %v5231_v2, %v3346_v53  ;;  %v3432_v24 = vmul.f32 %v6585_v17, %v3431_v59 }
 0x9a6   : > { %v5233_v19 = vpop.eup %5232  ;;  %3521 = vmatpush.msra.mxu3 %v5072_v4  ;;  %3573 = vmatpush.msra.mxu1 %v5071_v41  ;;  %v3827_v4 = vld [vmem:[#allocation11] sm:$0xff] }
 0x9a7   : > { %v3351_v54 = vsel %vm3350_vm2, %v5231_v2, %v3347_v63  ;;  %v3404_v62 = vmul.f32 %v5233_v19, %v3321_v33  ;;  %4830 = vmatmul.msk.f32.vlgmr.msra.gmra.mxu3 %vm1138_vm11, %v3372_v34  ;;  %4832 = vmatmul.msk.f32.vlgmr.msra.gmra.mxu1 %vm1138_vm11, %v3402_v18  ;;  %vm3409_vm5 = vweird.f32 %v5233_v19  ;;  %v3780_v63 = vld [vmem:[#allocation9 + $0x10] sm:$0xff] }
 0x9a8   : > { %v3356_v51 = vsel %vm3353_vm3, %v3355_v29, %v3351_v54  ;;  %3625 = vmatpush.msrb.mxu3 %v6637_v21  ;;  %vm3410_vm7 = vmor %vm3408_vm6, %vm3409_vm5  ;;  %v3415_v21 = vor.u32 1.1754944e-38, %v3414_v47  ;;  %v3779_v29 = vld [vmem:[#allocation9 + $0x8] sm:$0xff] }
 0x9a9   : > { %v3405_v57 = vsub.f32 1.0, %v3404_v62  ;;  %v3357_v58 = vmul.f32 %v6591_v30, %v3356_v51 }
 0x9ab   : > { %v3406_v11 = vmul.f32 %v5233_v19, %v3405_v57  ;;  %4829 = vmatmul.msk.f32.vlgmr.msra.gmra.mxu2 %vm1138_vm11, %v3357_v58 }
 0x9ad   : > { %v3407_v46 = vadd.f32 %v5233_v19, %v3406_v11 }
 0x9af   : > { %4834 = vmatmul.msk.f32.vlgmr.msrb.gmra.mxu3 %vm1138_vm11, %v3432_v24  ;;  %v3411_v3 = vsel %vm3410_vm7, %v5233_v19, %v3407_v46 }
 0x9b0   : > { %v3416_v55 = vsel %vm3413_vm8, %v3415_v21, %v3411_v3 }
 0x9b1   : > { %v3417_v30 = vmul.f32 %v6595_v44, %v3416_v55 }
 0x9b7   : > { %v3579_v2 = vpop.permute.xlu1 %3578 }
 0x9b8   : > { %3599 = vmatpush.msrb.mxu2 %v3579_v2 }
 0x9b9   : > { %4833 = vmatmul.msk.f32.vlgmr.msrb.gmra.mxu2 %vm1138_vm11, %v3417_v30 }
 0x9ba   : > { %3859 = vmatpush.msra.mxu2 %v3830_v0 }
 0x9bf   : > { %v3631_v5 = vpop.permute.xlu1 %3630 }
 0x9c0   : > { %3651 = vmatpush.msrb.mxu0 %v3631_v5 }
 0x9ce   : > { %v3327_v42 = vpop.xlane.xlu0 %3326 }
 0x9cf   : > { %5234 = vrcp.f32 %v3327_v42  ;;  %v3444_v14 = vand.u32 2147483648, %v3327_v42  ;;  %v3442_v33 = vand.u32 2147483647, %v3327_v42  ;;  %vm3438_vm10 = vweird.f32 %v3327_v42 }
 0x9d1   : > { %v3445_v32 = vor.u32 1.1754944e-38, %v3444_v14  ;;  %vm3443_vm13 = vcmp.eq.f32.partialorder %v3442_v33, 8.507059e+37 }
 0x9d5   : > { %v5235_v17 = vpop.eup %5234 }
 0x9d6   : > { %v3434_v49 = vmul.f32 %v5235_v17, %v3327_v42  ;;  %vm3439_vm9 = vweird.f32 %v5235_v17 }
 0x9d7   : > { %vm3440_vm12 = vmor %vm3438_vm10, %vm3439_vm9 }
 0x9d8   : > { %v3435_v38 = vsub.f32 1.0, %v3434_v49 }
 0x9da   : > { %v3436_v6 = vmul.f32 %v5235_v17, %v3435_v38 }
 0x9dc   : > { %v3437_v31 = vadd.f32 %v5235_v17, %v3436_v6 }
 0x9de   : > { %v3441_v50 = vsel %vm3440_vm12, %v5235_v17, %v3437_v31 }
 0x9df   : > { %v3446_v44 = vsel %vm3443_vm13, %v3445_v32, %v3441_v50 }
 0x9e0   : > { %v3447_v18 = vmul.f32 %v6617_v60, %v3446_v44 }
 0x9e1   : > { %v3471_v9 = vpop.f32.mrf.mxu1  ;;  %v3709_v58 = vpop.permute.xlu0 %3708 }
 0x9e2   : > { %4835 = vmatmul.msk.f32.vlgmr.msrb.gmra.mxu0 %vm1138_vm11, %v3447_v18 }
 0x9e9   : > { %v3697_v21 = vpop.permute.xlu0 %3696 }
 0xa20   : > { %v3549_v60 = vpop.f32.mrf.mxu0 }
 0xa24   : > { %v3575_v35 = vpop.f32.mrf.mxu1 }
 0xa25   : > { %3736 = vrot.lane.b32.xlu2 %v3575_v35, %s5606_s3 }
 0xa2a   : > { %v3523_v52 = vpop.f32.mrf.mxu3 }
 0xa2d   : > { %3676 = vrot.lane.b32.xlu2 %v6376_v37, %s5604_s18  ;;  %v3829_v37 = vld [vmem:[#allocation11 + $0x10] sm:$0xff] }
 0xa2e   : > { %v3497_v39 = vpop.f32.mrf.mxu2  ;;  %3860 = vmatpush.msra.mxu2 %v3829_v37 }
 0xa30   : > { %3861 = vmatpush.msra.mxu2 %v3828_v15 }
 0xa32   : > { %v3627_v48 = vpop.f32.mrf.mxu3  ;;  %3862 = vmatpush.msra.mxu2 %v3827_v4 }
 0xa35   : > { %3678 = vrot.lane.b32.xlu2 %v6390_v13, %s5604_s18 }
 0xa3c   : > { %v3601_v53 = vpop.f32.mrf.mxu2 }
 0xa3d   : > { %3738 = vrot.lane.b32.xlu1 %v3601_v53, %s5606_s3 }
 0xa45   : > { %3740 = vrot.lane.b32.xlu1 %v3627_v48, %s5606_s3 }
 0xa4d   : > { %3710 = vrot.lane.b32.xlu1 %v6550_v45, %s5605_s24  ;;  %s4522_s24 = scalar_lea.hbm %s7252_s20, %s7207_s7 }
 0xa55   : > { %3664 = vrot.lane.b32.xlu1 %v6365_v12, %s5604_s18  ;;  %v3673_v12 = vpop.permute.xlu2 %3672 }
 0xa56   : > { %v3756_v41 = vsel %vm1138_vm11, %v6241_v36, %v3673_v12 }
 0xa5d   : > { %3666 = vrot.lane.b32.xlu1 %v6369_v25, %s5604_s18  ;;  %v3707_v45 = vpop.permute.xlu2 %3706  ;;  %v3705_v25 = vpop.permute.xlu1 %3704 }
 0xa5e   : > { %v3765_v56 = vsel %vm3760_vm14, %v3756_v41, %v3705_v25 }
 0xa5f   : > { %v3653_v13 = vpop.f32.mrf.mxu0 }
 0xa60   : > { %3742 = vrot.lane.b32.xlu2 %v3653_v13, %s5606_s3 }
 0xa65   : > { %3668 = vrot.lane.b32.xlu1 %v6371_v23, %s5604_s18  ;;  %v3675_v34 = vpop.permute.xlu1 %3674 }
 0xa66   : > { %v3757_v36 = vsel %vm1138_vm11, %v6227_v7, %v3675_v34 }
 0xa67   : > { %v3766_v62 = vsel %vm3760_vm14, %v3757_v36, %v3707_v45  ;;  %v5285_v45 = vld [vmem:[%s5844_s0 + $0x10] sm:$0xff] }
 0xa68   : > { %3728 = vrot.lane.b32.xlu2 %v3471_v9, %s5606_s3 }
 0xa6d   : > { %3670 = vrot.lane.b32.xlu1 %v6374_v43, %s5604_s18  ;;  %v3781_v43 = vld [vmem:[#allocation9 + $0x18] sm:$0xff] }
 0xa6e   : > { %3810 = vmatpush.msrb.mxu1 %v3781_v43 }
 0xa70   : > { %3730 = vrot.lane.b32.xlu2 %v3497_v39, %s5606_s3  ;;  %3811 = vmatpush.msrb.mxu1 %v3780_v63  ;;  %v5078_v63 = vld [vmem:[%s7180_s9] ss:$0 sm:$0xff] }
 0xa72   : > { %3812 = vmatpush.msrb.mxu1 %v3779_v29  ;;  %v5287_v29 = vld [vmem:[%s5844_s0 + $0x18] sm:$0xff] }
 0xa74   : > { %3813 = vmatpush.msrb.mxu1 %v3778_v40 }
 0xa78   : > { %3732 = vrot.lane.b32.xlu2 %v3523_v52, %s5606_s3  ;;  %v5077_v52 = vld [vmem:[%s7181_s10] ss:$0 sm:$0xff] }
 0xa7f   : > { %v3737_v23 = vpop.permute.xlu2 %3736 }
 0xa80   : > { %v3774_v1 = vsel %vm3769_vm15, %v3765_v56, %v3737_v23  ;;  %3734 = vrot.lane.b32.xlu2 %v3549_v60, %s5606_s3  ;;  %v5284_v60 = vld [vmem:[%s5844_s0 + $0x8] sm:$0xff]  ;;  %v5286_v56 = vld [vmem:[%s5844_s0] sm:$0xff]  ;;  %s4523_s3 = sshll.u32 %s819_s23, 4  ;;  %s4524_s3 = int_to_ptr.vmem [resolvable:$true] %s4523_s3 }
 0xa81   : > { %4840 = vmatmul.msk.f32.vlgmr.msra.gmra.mxu2 %vm850_vm0, %v3774_v1 }
 0xa87   : > { %v3677_v19 = vpop.permute.xlu2 %3676 }
 0xa88   : > { %v3758_v57 = vsel %vm1138_vm11, %v6235_v26, %v3677_v19 }
 0xa89   : > { %v3767_v11 = vsel %vm3760_vm14, %v3758_v57, %v3709_v58 }
 0xa8f   : > { %v3679_v51 = vpop.permute.xlu2 %3678 }
 0xa90   : > { %v3759_v24 = vsel %vm1138_vm11, %v6243_v16, %v3679_v51  ;;  %v3699_v16 = vpop.permute.xlu0 %3698 }
 0xa98   : > { %v3701_v6 = vpop.permute.xlu0 %3700 }
 0xaa0   : > { %v3703_v44 = vpop.permute.xlu0 %3702 }
 0xaaf   : > { %v3739_v54 = vpop.permute.xlu1 %3738 }
 0xab0   : > { %v3775_v10 = vsel %vm3769_vm15, %v3766_v62, %v3739_v54 }
 0xab1   : > { %4841 = vmatmul.msk.f32.gmra.mxu2 %vm850_vm0, %v3775_v10  ;;  %v5288_v10 = vld [vmem:[%s5849_s4] sm:$0xff] }
 0xab7   : > { %v3741_v59 = vpop.permute.xlu1 %3740 }
 0xab8   : > { %v3776_v46 = vsel %vm3769_vm15, %v3767_v11, %v3741_v59 }
 0xab9   : > { %4842 = vmatmul.msk.f32.gmra.mxu2 %vm850_vm0, %v3776_v46 }
 0xaba   : > { %v3743_v7 = vpop.permute.xlu2 %3742 }
 0xabf   : > { %v3711_v47 = vpop.permute.xlu1 %3710 }
 0xac0   : > { %v3768_v61 = vsel %vm3760_vm14, %v3759_v24, %v3711_v47 }
 0xac1   : > { %v3777_v3 = vsel %vm3769_vm15, %v3768_v61, %v3743_v7  ;;  %v5289_v7 = vld [vmem:[%s5849_s4 + $0x8] sm:$0xff] }
 0xac2   : > { %4843 = vmatmul.msk.f32.gmra.mxu2 %vm850_vm0, %v3777_v3  ;;  %v3729_v26 = vpop.permute.xlu2 %3728 }
 0xac7   : > { %v3665_v55 = vpop.permute.xlu1 %3664 }
 0xac8   : > { %v3752_v2 = vsel %vm1138_vm11, %v6230_v8, %v3665_v55 }
 0xac9   : > { %v3761_v30 = vsel %vm3760_vm14, %v3752_v2, %v3697_v21  ;;  %v5290_v21 = vld [vmem:[%s5849_s4 + $0x10] sm:$0xff] }
 0xaca   : > { %v3770_v5 = vsel %vm3769_vm15, %v3761_v30, %v3729_v26  ;;  %v3731_v42 = vpop.permute.xlu2 %3730 }
 0xacb   : > { %4836 = vmatmul.msk.f32.vlgmr.msrb.gmra.mxu1 %vm850_vm0, %v3770_v5  ;;  %v5291_v5 = vld [vmem:[%s5849_s4 + $0x18] sm:$0xff]  ;;  %s7251_s4 = sld [smem:[#allocation38_spill]] }
 0xacf   : > { %v3667_v17 = vpop.permute.xlu1 %3666 }
 0xad0   : > { %v3753_v49 = vsel %vm1138_vm11, %v6239_v28, %v3667_v17 }
 0xad1   : > { %v3762_v38 = vsel %vm3760_vm14, %v3753_v49, %v3699_v16 }
 0xad2   : > { %v3771_v14 = vsel %vm3769_vm15, %v3762_v38, %v3731_v42  ;;  %v3733_v8 = vpop.permute.xlu2 %3732 }
 0xad3   : > { %4837 = vmatmul.msk.f32.gmra.mxu1 %vm850_vm0, %v3771_v14 }
 0xad7   : > { %v3669_v33 = vpop.permute.xlu1 %3668 }
 0xad8   : > { %v3754_v31 = vsel %vm1138_vm11, %v6225_v27, %v3669_v33 }
 0xad9   : > { %v3763_v32 = vsel %vm3760_vm14, %v3754_v31, %v3701_v6 }
 0xada   : > { %v3772_v50 = vsel %vm3769_vm15, %v3763_v32, %v3733_v8  ;;  %v3735_v9 = vpop.permute.xlu2 %3734 }
 0xadb   : > { %4838 = vmatmul.msk.f32.gmra.mxu1 %vm850_vm0, %v3772_v50 }
 0xadf   : > { %v3671_v28 = vpop.permute.xlu1 %3670 }
 0xae0   : > { %v3755_v18 = vsel %vm1138_vm11, %v6232_v22, %v3671_v28  ;;  %v6757_v22 = vstv %s849_s30  ;;  %s4525_s30 = sshll.u32 %s4522_s24, 4  ;;  %s4526_s30 = int_to_ptr.hbm [resolvable:$true] %s4525_s30 }
 0xae1   : > { %v3764_v35 = vsel %vm3760_vm14, %v3755_v18, %v3703_v44  ;;  %s5486_s26 = sshra.s32 %s4526_s30, 4  ;;  %s5487_s26 = int_to_ptr.hbm [resolvable:$true] %s5486_s26 }
 0xae2   : > { %v3773_v39 = vsel %vm3769_vm15, %v3764_v35, %v3735_v9  ;;  %s5488_s29 = scalar_lea.hbm %s5487_s26, 32  ;;  %p5493_p3 = scmp.lt.s32.totalorder %s5487_s26, %s7252_s20 }
 0xae3   : > { %4839 = vmatmul.msk.f32.gmra.mxu1 %vm850_vm0, %v3773_v39  ;;  %p5489_p0 = scmp.ne.s32.totalorder %s5487_s26, %s5488_s29  ;;  %p5494_p4 = scmp.lt.s32.totalorder %s5492_s22, %s5488_s29 }
 0xae5   : > { %p5490_p1 = pnand %p5489_p0, %p5769_p5  ;;  %p5495_p7 = por %p5494_p4, %p5493_p3 }
 0xae7   : > { %p5491_p2 = pneg %p5490_p1 }
 0xae9   : > { %p5496_p8 = pnand %p5495_p7, %p5491_p2 }
 0xb04   : > { %v3864_v27 = vpop.f32.mrf.mxu2 }
 0xb05   : > { %v3865_v12 = vadd.f32 %v5077_v52, %v3864_v27 }
 0xb07   : > { %v3880_v23 = vadd.f32 %v5286_v56, %v3865_v12 }
 0xb09   : > { %v6775_v19 = vmul.f32 %v6757_v22, %v3880_v23 }
 0xb0b   : > { %v3993_v57 = vsel %vm850_vm0, %v6775_v19, 0.0 }
 0xb34   : > { %v3867_v53 = vpop.f32.mrf.mxu2 }
 0xb35   : > { %v3868_v48 = vadd.f32 %v5077_v52, %v3867_v53 }
 0xb37   : > { %v3881_v0 = vadd.f32 %v5284_v60, %v3868_v48 }
 0xb39   : > { %v6760_v37 = vmul.f32 %v6757_v22, %v3881_v0 }
 0xb3b   : > { %v3996_v15 = vsel %vm850_vm0, %v6760_v37, 0.0 }
 0xb3c   : > { %3997 = vadd.xlane.f32.xlu1 %v3996_v15  ;;  %v3870_v13 = vpop.f32.mrf.mxu2 }
 0xb3d   : > { %v3871_v4 = vadd.f32 %v5077_v52, %v3870_v13 }
 0xb3f   : > { %v3882_v25 = vadd.f32 %v5285_v45, %v3871_v4 }
 0xb41   : > { %v6766_v41 = vmul.f32 %v6757_v22, %v3882_v25 }
 0xb43   : > { %v3999_v1 = vsel %vm850_vm0, %v6766_v41, 0.0 }
 0xb44   : > { %4000 = vadd.xlane.f32.xlu0 %v3999_v1 }
 0xb45   : > { %v3873_v43 = vpop.f32.mrf.mxu2 }
 0xb46   : > { %v3874_v34 = vadd.f32 %v5077_v52, %v3873_v43 }
 0xb48   : > { %v3883_v40 = vadd.f32 %v5287_v29, %v3874_v34  ;;  %v3815_v36 = vpop.f32.mrf.mxu1 }
 0xb49   : > { %v3816_v54 = vadd.f32 %v5078_v63, %v3815_v36 }
 0xb4a   : > { %v6779_v62 = vmul.f32 %v6757_v22, %v3883_v40 }
 0xb4b   : > { %v6782_v51 = vadd.f32 %v5288_v10, %v3816_v54 }
 0xb4c   : > { %3994 = vadd.xlane.f32.xlu0 %v3993_v57  ;;  %v4002_v58 = vsel %vm850_vm0, %v6779_v62, 0.0 }
 0xb4d   : > { %4003 = vadd.xlane.f32.xlu2 %v4002_v58  ;;  %v3889_v59 = vsel %vm850_vm0, %v6782_v51, 0.0  ;;  %v4112_v58 = vld [vmem:[#allocation12 + $0x18] sm:$0xff] }
 0xb4e   : > { %3890 = vadd.xlane.f32.xlu1 %v3889_v59  ;;  %4870 = vmatpush.msra.mxu3 %v4112_v58  ;;  %v4111_v59 = vld [vmem:[#allocation12 + $0x10] sm:$0xff] }
 0xb4f   : > { %4177 = vmatpush.msrb.mxu2 %v4112_v58 }
 0xb50   : > { %v3818_v11 = vpop.f32.mrf.mxu1  ;;  %4871 = vmatpush.msra.mxu3 %v4111_v59 }
 0xb51   : > { %v3819_v46 = vadd.f32 %v5078_v63, %v3818_v11  ;;  %4178 = vmatpush.msrb.mxu2 %v4111_v59  ;;  %v4110_v11 = vld [vmem:[#allocation12 + $0x8] sm:$0xff] }
 0xb52   : > { %4872 = vmatpush.msra.mxu3 %v4110_v11 }
 0xb53   : > { %v6791_v24 = vadd.f32 %v5289_v7, %v3819_v46  ;;  %4179 = vmatpush.msrb.mxu2 %v4110_v11  ;;  %v4109_v46 = vld [vmem:[#allocation12] sm:$0xff] }
 0xb54   : > { %4873 = vmatpush.msra.mxu3 %v4109_v46 }
 0xb55   : > { %v3892_v47 = vsel %vm850_vm0, %v6791_v24, 0.0  ;;  %4180 = vmatpush.msrb.mxu2 %v4109_v46 }
 0xb56   : > { %3893 = vadd.xlane.f32.xlu2 %v3892_v47 }
 0xb58   : > { %v3821_v61 = vpop.f32.mrf.mxu1 }
 0xb59   : > { %v3822_v3 = vadd.f32 %v5078_v63, %v3821_v61 }
 0xb5b   : > { %v6796_v26 = vadd.f32 %v5290_v21, %v3822_v3 }
 0xb5d   : > { %v3895_v55 = vsel %vm850_vm0, %v6796_v26, 0.0 }
 0xb5e   : > { %3896 = vadd.xlane.f32.xlu1 %v3895_v55 }
 0xb60   : > { %v3824_v2 = vpop.f32.mrf.mxu1 }
 0xb61   : > { %v3825_v30 = vadd.f32 %v5078_v63, %v3824_v2 }
 0xb63   : > { %v6801_v16 = vadd.f32 %v5291_v5, %v3825_v30 }
 0xb65   : > { %v3898_v42 = vsel %vm850_vm0, %v6801_v16, 0.0 }
 0xb66   : > { %3899 = vadd.xlane.f32.xlu0 %v3898_v42 }
 0xbaf   : > { %v3998_v17 = vpop.xlane.xlu1 %3997 }
 0xbb0   : > { %v4006_v49 = vmul.f32 %v3998_v17, %v5865_v20 }
 0xbb2   : > { %v6807_v38 = vsub.f32 %v6760_v37, %v4006_v49 }
 0xbb4   : > { %v4014_v14 = vmul.f32 %v6807_v38, %v6807_v38 }
 0xbb6   : > { %v4020_v6 = vsel %vm850_vm0, %v4014_v14, 0.0 }
 0xbb7   : > { %v4001_v8 = vpop.xlane.xlu0 %4000  ;;  %4021 = vadd.xlane.f32.xlu2 %v4020_v6 }
 0xbb8   : > { %v4007_v33 = vmul.f32 %v4001_v8, %v5865_v20 }
 0xbba   : > { %v6814_v31 = vsub.f32 %v6766_v41, %v4007_v33 }
 0xbbc   : > { %v4015_v32 = vmul.f32 %v6814_v31, %v6814_v31 }
 0xbbe   : > { %v4023_v50 = vsel %vm850_vm0, %v4015_v32, 0.0 }
 0xbbf   : > { %v3995_v28 = vpop.xlane.xlu0 %3994  ;;  %4024 = vadd.xlane.f32.xlu1 %v4023_v50 }
 0xbc0   : > { %v4005_v44 = vmul.f32 %v3995_v28, %v5865_v20  ;;  %v4004_v18 = vpop.xlane.xlu2 %4003 }
 0xbc1   : > { %v4008_v9 = vmul.f32 %v4004_v18, %v5865_v20  ;;  %v3891_v35 = vpop.xlane.xlu1 %3890 }
 0xbc2   : > { %v6822_v39 = vsub.f32 %v6775_v19, %v4005_v44  ;;  %v3901_v27 = vmul.f32 %v3891_v35, %v5865_v20  ;;  %v6869_v35 = vld [vmem:[%s7184_s13] ss:$0 sm:$0xff] }
 0xbc3   : > { %v6826_v52 = vsub.f32 %v6779_v62, %v4008_v9 }
 0xbc4   : > { %v6829_v53 = vsub.f32 %v6782_v51, %v3901_v27  ;;  %v4013_v48 = vmul.f32 %v6822_v39, %v6822_v39 }
 0xbc5   : > { %v4016_v60 = vmul.f32 %v6826_v52, %v6826_v52 }
 0xbc6   : > { %v4017_v0 = vsel %vm850_vm0, %v4013_v48, 0.0  ;;  %v3909_v15 = vmul.f32 %v6829_v53, %v6829_v53 }
 0xbc7   : > { %4018 = vadd.xlane.f32.xlu1 %v4017_v0  ;;  %v4026_v13 = vsel %vm850_vm0, %v4016_v60, 0.0 }
 0xbc8   : > { %4027 = vadd.xlane.f32.xlu0 %v4026_v13  ;;  %v3913_v4 = vsel %vm850_vm0, %v3909_v15, 0.0  ;;  %v6875_v15 = vld [vmem:[%s7185_s14] ss:$0 sm:$0xff] }
 0xbc9   : > { %3914 = vadd.xlane.f32.xlu2 %v3913_v4  ;;  %v3894_v12 = vpop.xlane.xlu2 %3893 }
 0xbca   : > { %v3902_v45 = vmul.f32 %v3894_v12, %v5865_v20 }
 0xbcc   : > { %v6842_v25 = vsub.f32 %v6791_v24, %v3902_v45 }
 0xbce   : > { %v3910_v56 = vmul.f32 %v6842_v25, %v6842_v25 }
 0xbd0   : > { %v3916_v23 = vsel %vm850_vm0, %v3910_v56, 0.0 }
 0xbd1   : > { %v3897_v1 = vpop.xlane.xlu1 %3896  ;;  %3917 = vadd.xlane.f32.xlu0 %v3916_v23 }
 0xbd2   : > { %v3903_v43 = vmul.f32 %v3897_v1, %v5865_v20 }
 0xbd4   : > { %v6849_v63 = vsub.f32 %v6796_v26, %v3903_v43 }
 0xbd6   : > { %v3911_v34 = vmul.f32 %v6849_v63, %v6849_v63 }
 0xbd8   : > { %v3919_v29 = vsel %vm850_vm0, %v3911_v34, 0.0 }
 0xbd9   : > { %3920 = vadd.xlane.f32.xlu2 %v3919_v29  ;;  %v3900_v40 = vpop.xlane.xlu0 %3899 }
 0xbda   : > { %v3904_v36 = vmul.f32 %v3900_v40, %v5865_v20 }
 0xbdc   : > { %v6856_v54 = vsub.f32 %v6801_v16, %v3904_v36 }
 0xbde   : > { %v3912_v10 = vmul.f32 %v6856_v54, %v6856_v54 }
 0xbe0   : > { %v3922_v57 = vsel %vm850_vm0, %v3912_v10, 0.0 }
 0xbe1   : > { %3923 = vadd.xlane.f32.xlu1 %v3922_v57 }
 0xc2a   : > { %v4022_v7 = vpop.xlane.xlu2 %4021 }
 0xc2b   : > { %v4030_v47 = vmul.f32 %v4022_v7, %v5865_v20 }
 0xc2d   : > { %v4034_v61 = vadd.f32 1e-05, %v4030_v47 }
 0xc2f   : > { %5236 = vrsqrt.f32 %v4034_v61  ;;  %vm4053_vm1 = vweird.f32 %v4034_v61 }
 0xc32   : > { %v4025_v3 = vpop.xlane.xlu1 %4024 }
 0xc33   : > { %v4031_v21 = vmul.f32 %v4025_v3, %v5865_v20 }
 0xc35   : > { %v5237_v55 = vpop.eup %5236  ;;  %v4035_v2 = vadd.f32 1e-05, %v4031_v21 }
 0xc36   : > { %v4048_v30 = vmul.f32 %v5237_v55, %v4034_v61  ;;  %vm4054_vm11 = vweird.f32 %v5237_v55 }
 0xc37   : > { %5238 = vrsqrt.f32 %v4035_v2  ;;  %vm4055_vm2 = vmor %vm4053_vm1, %vm4054_vm11  ;;  %vm4063_vm4 = vweird.f32 %v4035_v2 }
 0xc38   : > { %v4049_v5 = vmul.f32 %v5237_v55, %v4048_v30 }
 0xc3a   : > { %v4050_v42 = vmul.f32 0.5, %v4049_v5  ;;  %v4019_v17 = vpop.xlane.xlu1 %4018 }
 0xc3b   : > { %v4029_v49 = vmul.f32 %v4019_v17, %v5865_v20  ;;  %v4028_v14 = vpop.xlane.xlu0 %4027 }
 0xc3c   : > { %v4051_v6 = vsub.f32 1.5, %v4050_v42  ;;  %v4032_v8 = vmul.f32 %v4028_v14, %v5865_v20  ;;  %v3915_v33 = vpop.xlane.xlu2 %3914 }
 0xc3d   : > { %v5239_v32 = vpop.eup %5238  ;;  %v4033_v50 = vadd.f32 1e-05, %v4029_v49  ;;  %v3925_v28 = vmul.f32 %v3915_v33, %v5865_v20 }
 0xc3e   : > { %v4052_v44 = vmul.f32 %v5237_v55, %v4051_v6  ;;  %v4058_v18 = vmul.f32 %v5239_v32, %v4035_v2  ;;  %v4036_v9 = vadd.f32 1e-05, %v4032_v8  ;;  %vm4064_vm3 = vweird.f32 %v5239_v32 }
 0xc3f   : > { %5240 = vrsqrt.f32 %v4033_v50  ;;  %v3929_v27 = vadd.f32 1e-05, %v3925_v28  ;;  %vm4065_vm5 = vmor %vm4063_vm4, %vm4064_vm3  ;;  %vm4043_vm8 = vweird.f32 %v4033_v50 }
 0xc40   : > { %v4056_v48 = vsel %vm4055_vm2, %v5237_v55, %v4052_v44  ;;  %v4059_v60 = vmul.f32 %v5239_v32, %v4058_v18  ;;  %5242 = vrsqrt.f32 %v4036_v9  ;;  %vm4073_vm12 = vweird.f32 %v4036_v9 }
 0xc41   : > { %v4078_v0 = vmul.f32 %v4056_v48, %v6807_v38  ;;  %5244 = vrsqrt.f32 %v3929_v27  ;;  %vm3939_vm14 = vweird.f32 %v3929_v27  ;;  %v5081_v48 = vld [vmem:[%s7183_s12] ss:$0 sm:$0xff] }
 0xc42   : > { %v4060_v13 = vmul.f32 0.5, %v4059_v60 }
 0xc43   : > { %v4086_v4 = vmul.f32 %v6869_v35, %v4078_v0 }
 0xc44   : > { %v4061_v12 = vsub.f32 1.5, %v4060_v13  ;;  %v3918_v45 = vpop.xlane.xlu0 %3917 }
 0xc45   : > { %v5241_v56 = vpop.eup %5240  ;;  %v3926_v23 = vmul.f32 %v3918_v45, %v5865_v20  ;;  %v6880_v1 = vadd.f32 %v6875_v15, %v4086_v4 }
 0xc46   : > { %v5243_v43 = vpop.eup %5242  ;;  %v4062_v38 = vmul.f32 %v5239_v32, %v4061_v12  ;;  %v4038_v34 = vmul.f32 %v5241_v56, %v4033_v50  ;;  %vm4044_vm6 = vweird.f32 %v5241_v56  ;;  %v5080_v50 = vld [vmem:[%s7182_s11] ss:$0 sm:$0xff] }
 0xc47   : > { %v5245_v29 = vpop.eup %5244  ;;  %v4068_v40 = vmul.f32 %v5243_v43, %v4036_v9  ;;  %v3930_v36 = vadd.f32 1e-05, %v3926_v23  ;;  %4849 = vmatmul.msk.f32.vlgmr.msra.gmra.mxu3 %vm850_vm0, %v6880_v1  ;;  %vm4074_vm7 = vweird.f32 %v5243_v43  ;;  %vm4045_vm10 = vmor %vm4043_vm8, %vm4044_vm6 }
 0xc48   : > { %v4066_v10 = vsel %vm4065_vm5, %v5239_v32, %v4062_v38  ;;  %v4039_v57 = vmul.f32 %v5241_v56, %v4038_v34  ;;  %v3934_v58 = vmul.f32 %v5245_v29, %v3929_v27  ;;  %vm3940_vm9 = vweird.f32 %v5245_v29  ;;  %vm4075_vm13 = vmor %vm4073_vm12, %vm4074_vm7 }
 0xc49   : > { %v4069_v59 = vmul.f32 %v5243_v43, %v4068_v40  ;;  %5246 = vrsqrt.f32 %v3930_v36  ;;  %v4079_v11 = vmul.f32 %v4066_v10, %v6814_v31  ;;  %vm3941_vm15 = vmor %vm3939_vm14, %vm3940_vm9  ;;  %vm3949_vm1 = vweird.f32 %v3930_v36 }
 0xc4a   : > { %v4040_v46 = vmul.f32 0.5, %v4039_v57  ;;  %v3935_v7 = vmul.f32 %v5245_v29, %v3934_v58 }
 0xc4b   : > { %v4070_v47 = vmul.f32 0.5, %v4069_v59  ;;  %v4087_v61 = vmul.f32 %v6869_v35, %v4079_v11 }
 0xc4c   : > { %v4041_v3 = vsub.f32 1.5, %v4040_v46  ;;  %v3936_v21 = vmul.f32 0.5, %v3935_v7  ;;  %v3921_v55 = vpop.xlane.xlu2 %3920 }
 0xc4d   : > { %v4071_v2 = vsub.f32 1.5, %v4070_v47  ;;  %v3927_v30 = vmul.f32 %v3921_v55, %v5865_v20  ;;  %v6888_v5 = vadd.f32 %v6875_v15, %v4087_v61 }
 0xc4e   : > { %v4042_v42 = vmul.f32 %v5241_v56, %v4041_v3  ;;  %v3937_v17 = vsub.f32 1.5, %v3936_v21 }
 0xc4f   : > { %v5247_v31 = vpop.eup %5246  ;;  %v4072_v49 = vmul.f32 %v5243_v43, %v4071_v2  ;;  %v3931_v14 = vadd.f32 1e-05, %v3927_v30  ;;  %4850 = vmatmul.msk.f32.gmra.mxu3 %vm850_vm0, %v6888_v5 }
 0xc50   : > { %v4046_v6 = vsel %vm4045_vm10, %v5241_v56, %v4042_v42  ;;  %v3938_v8 = vmul.f32 %v5245_v29, %v3937_v17  ;;  %v3944_v33 = vmul.f32 %v5247_v31, %v3930_v36  ;;  %vm3950_vm11 = vweird.f32 %v5247_v31 }
 0xc51   : > { %v4076_v32 = vsel %vm4075_vm13, %v5243_v43, %v4072_v49  ;;  %5248 = vrsqrt.f32 %v3931_v14  ;;  %v4077_v28 = vmul.f32 %v4046_v6, %v6822_v39  ;;  %vm3951_vm2 = vmor %vm3949_vm1, %vm3950_vm11  ;;  %vm3959_vm4 = vweird.f32 %v3931_v14  ;;  %v5084_v6 = vld [vmem:[%s7190_s19 + $0x1] ss:$0 sm:$0xff] }
 0xc52   : > { %v3942_v44 = vsel %vm3941_vm15, %v5245_v29, %v3938_v8  ;;  %v3945_v18 = vmul.f32 %v5247_v31, %v3944_v33  ;;  %v4080_v9 = vmul.f32 %v4076_v32, %v6826_v52  ;;  %v4107_v33 = vmul.f32 %v5084_v6, %v6888_v5 }
 0xc53   : > { %v3973_v27 = vmul.f32 %v3942_v44, %v6829_v53  ;;  %v4085_v56 = vmul.f32 %v6869_v35, %v4077_v28  ;;  %v4388_v28 = vld [vmem:[%s7188_s17 + $0x70] sm:$0xff]  ;;  %v4385_v44 = vld [vmem:[%s7188_s17 + $0x58] sm:$0xff] }
 0xc54   : > { %v3946_v60 = vmul.f32 0.5, %v3945_v18  ;;  %v3924_v0 = vpop.xlane.xlu1 %3923  ;;  %v4088_v13 = vmul.f32 %v6869_v35, %v4080_v9  ;;  %v5083_v35 = vld [vmem:[%s7190_s19] ss:$0 sm:$0xff]  ;;  %v4384_v18 = vld [vmem:[%s7188_s17 + $0x50] sm:$0xff]  ;;  %v4383_v9 = vld [vmem:[%s7188_s17 + $0x48] sm:$0xff] }
 0xc55   : > { %v3981_v4 = vmul.f32 %v5080_v50, %v3973_v27  ;;  %v3928_v12 = vmul.f32 %v3924_v0, %v5865_v20  ;;  %v4093_v29 = vadd.f32 %v6875_v15, %v4085_v56  ;;  %v4101_v55 = vmul.f32 %v5083_v35, %v6880_v1  ;;  %v4381_v27 = vld [vmem:[%s7188_s17 + $0x38] sm:$0xff] }
 0xc56   : > { %v3947_v45 = vsub.f32 1.5, %v3946_v60  ;;  %v4096_v39 = vadd.f32 %v6875_v15, %v4088_v13  ;;  %v4380_v60 = vld [vmem:[%s7188_s17 + $0x30] sm:$0xff]  ;;  %v4379_v13 = vld [vmem:[%s7188_s17 + $0x28] sm:$0xff] }
 0xc57   : > { %v5249_v52 = vpop.eup %5248  ;;  %v3989_v23 = vadd.f32 %v5081_v48, %v3981_v4  ;;  %v3932_v43 = vadd.f32 1e-05, %v3928_v12  ;;  %v4100_v58 = vmul.f32 %v5083_v35, %v4093_v29  ;;  %v4105_v8 = vmul.f32 %v5084_v6, %v4093_v29  ;;  %v4378_v4 = vld [vmem:[%s7188_s17 + $0x20] sm:$0xff]  ;;  %v4377_v12 = vld [vmem:[%s7188_s17 + $0x18] sm:$0xff] }
 0xc58   : > { %v3948_v38 = vmul.f32 %v5247_v31, %v3947_v45  ;;  %v3954_v34 = vmul.f32 %v5249_v52, %v3931_v14  ;;  %4851 = vmatmul.msk.f32.gmra.mxu3 %vm850_vm0, %v4096_v39  ;;  %vm3960_vm3 = vweird.f32 %v5249_v52  ;;  %v4103_v14 = vmul.f32 %v5083_v35, %v4096_v39  ;;  %v4376_v45 = vld [vmem:[%s7188_s17 + $0x10] sm:$0xff] }
 0xc59   : > { %5250 = vrsqrt.f32 %v3932_v43  ;;  %4844 = vmatmul.msk.f32.vlgmr.msrb.gmra.mxu2 %vm850_vm0, %v3989_v23  ;;  %vm3961_vm5 = vmor %vm3959_vm4, %vm3960_vm3  ;;  %vm3969_vm7 = vweird.f32 %v3932_v43  ;;  %v4108_v32 = vmul.f32 %v5084_v6, %v4096_v39  ;;  %v4375_v39 = vld [vmem:[%s7188_s17 + $0x8] sm:$0xff]  ;;  %v6986_v23 = vld [vmem:[%s7187_s16] ss:$0 sm:$0xff] }
 0xc5a   : > { %v3952_v53 = vsel %vm3951_vm2, %v5247_v31, %v3948_v38  ;;  %v3955_v20 = vmul.f32 %v5249_v52, %v3954_v34 }
 0xc5b   : > { %v3974_v40 = vmul.f32 %v3952_v53, %v6842_v25 }
 0xc5c   : > { %v3956_v10 = vmul.f32 0.5, %v3955_v20 }
 0xc5d   : > { %v3982_v57 = vmul.f32 %v5080_v50, %v3974_v40 }
 0xc5e   : > { %v3957_v36 = vsub.f32 1.5, %v3956_v10 }
 0xc5f   : > { %v5251_v59 = vpop.eup %5250  ;;  %v3990_v11 = vadd.f32 %v5081_v48, %v3982_v57 }
 0xc60   : > { %v3958_v46 = vmul.f32 %v5249_v52, %v3957_v36  ;;  %v3964_v7 = vmul.f32 %v5251_v59, %v3932_v43  ;;  %4852 = vmatmul.msk.f32.gmra.mxu3 %vm850_vm0, %v4100_v58  ;;  %vm3970_vm6 = vweird.f32 %v5251_v59 }
 0xc61   : > { %4845 = vmatmul.msk.f32.gmra.mxu2 %vm850_vm0, %v3990_v11  ;;  %vm3971_vm8 = vmor %vm3969_vm7, %vm3970_vm6 }
 0xc62   : > { %v3962_v25 = vsel %vm3961_vm5, %v5249_v52, %v3958_v46  ;;  %v3965_v15 = vmul.f32 %v5251_v59, %v3964_v7  ;;  %v4374_v52 = vld [vmem:[%s7188_s17] sm:$0xff] }
 0xc63   : > { %v3975_v47 = vmul.f32 %v3962_v25, %v6849_v63  ;;  %v4102_v63 = vmul.f32 %v5083_v35, %v6888_v5  ;;  %v4386_v5 = vld [vmem:[%s7188_s17 + $0x60] sm:$0xff] }
 0xc64   : > { %v3966_v61 = vmul.f32 0.5, %v3965_v15 }
 0xc65   : > { %v3983_v3 = vmul.f32 %v5080_v50, %v3975_v47 }
 0xc66   : > { %v3967_v21 = vsub.f32 1.5, %v3966_v61 }
 0xc67   : > { %v3991_v2 = vadd.f32 %v5081_v48, %v3983_v3 }
 0xc68   : > { %v3968_v30 = vmul.f32 %v5251_v59, %v3967_v21  ;;  %4853 = vmatmul.msk.f32.gmra.mxu3 %vm850_vm0, %v4101_v55 }
 0xc69   : > { %4846 = vmatmul.msk.f32.gmra.mxu2 %vm850_vm0, %v3991_v2 }
 0xc6a   : > { %v3972_v42 = vsel %vm3971_vm8, %v5251_v59, %v3968_v30 }
 0xc6b   : > { %v3976_v17 = vmul.f32 %v3972_v42, %v6856_v54  ;;  %v4106_v54 = vmul.f32 %v5084_v6, %v6880_v1  ;;  %v4387_v1 = vld [vmem:[%s7188_s17 + $0x68] sm:$0xff] }
 0xc6d   : > { %v3984_v31 = vmul.f32 %v5080_v50, %v3976_v17  ;;  %v4389_v50 = vld [vmem:[%s7188_s17 + $0x78] sm:$0xff] }
 0xc6e   : > { %4394 = vmatpush.msra.mxu0 %v4389_v50  ;;  %4874 = vmatpush.msra.mxu1 %v4389_v50 }
 0xc6f   : > { %v3992_v49 = vadd.f32 %v5081_v48, %v3984_v31  ;;  %v4382_v48 = vld [vmem:[%s7188_s17 + $0x40] sm:$0xff] }
 0xc70   : > { %4854 = vmatmul.msk.f32.gmra.mxu3 %vm850_vm0, %v4102_v63  ;;  %4395 = vmatpush.msra.mxu0 %v4388_v28 }
 0xc71   : > { %4847 = vmatmul.msk.f32.gmra.mxu2 %vm850_vm0, %v3992_v49  ;;  %4875 = vmatpush.msra.mxu1 %v4388_v28 }
 0xc72   : > { %4396 = vmatpush.msra.mxu0 %v4387_v1 }
 0xc73   : > { %4876 = vmatpush.msra.mxu1 %v4387_v1 }
 0xc74   : > { %4397 = vmatpush.msra.mxu0 %v4386_v5 }
 0xc75   : > { %4877 = vmatpush.msra.mxu1 %v4386_v5 }
 0xc76   : > { %4398 = vmatpush.msra.mxu0 %v4385_v44 }
 0xc77   : > { %4878 = vmatpush.msra.mxu1 %v4385_v44 }
 0xc78   : > { %4855 = vmatmul.msk.f32.gmra.mxu3 %vm850_vm0, %v4103_v14  ;;  %4399 = vmatpush.msra.mxu0 %v4384_v18 }
 0xc79   : > { %4848 = vmatmul.msk.f32.gmra.mxu2 %vm850_vm0, %v4093_v29  ;;  %4879 = vmatpush.msra.mxu1 %v4384_v18 }
 0xc7a   : > { %4400 = vmatpush.msra.mxu0 %v4383_v9 }
 0xc7b   : > { %4880 = vmatpush.msra.mxu1 %v4383_v9 }
 0xc7c   : > { %4401 = vmatpush.msra.mxu0 %v4382_v48 }
 0xc7d   : > { %4881 = vmatpush.msra.mxu1 %v4382_v48 }
 0xc7e   : > { %4402 = vmatpush.msra.mxu0 %v4381_v27 }
 0xc7f   : > { %4882 = vmatpush.msra.mxu1 %v4381_v27 }
 0xc80   : > { %4856 = vmatmul.msk.f32.gmra.mxu3 %vm850_vm0, %v4105_v8  ;;  %4403 = vmatpush.msra.mxu0 %v4380_v60 }
 0xc81   : > { %4883 = vmatpush.msra.mxu1 %v4380_v60 }
 0xc82   : > { %4404 = vmatpush.msra.mxu0 %v4379_v13 }
 0xc83   : > { %4884 = vmatpush.msra.mxu1 %v4379_v13 }
 0xc84   : > { %4405 = vmatpush.msra.mxu0 %v4378_v4 }
 0xc85   : > { %4885 = vmatpush.msra.mxu1 %v4378_v4 }
 0xc86   : > { %4406 = vmatpush.msra.mxu0 %v4377_v12 }
 0xc87   : > { %4886 = vmatpush.msra.mxu1 %v4377_v12 }
 0xc88   : > { %4857 = vmatmul.msk.f32.gmra.mxu3 %vm850_vm0, %v4106_v54  ;;  %4407 = vmatpush.msra.mxu0 %v4376_v45 }
 0xc89   : > { %4887 = vmatpush.msra.mxu1 %v4376_v45 }
 0xc8a   : > { %4408 = vmatpush.msra.mxu0 %v4375_v39 }
 0xc8b   : > { %4888 = vmatpush.msra.mxu1 %v4375_v39 }
 0xc8c   : > { %4409 = vmatpush.msra.mxu0 %v4374_v52 }
 0xc8d   : > { %4889 = vmatpush.msra.mxu1 %v4374_v52 }
 0xc90   : > { %4858 = vmatmul.msk.f32.gmra.mxu3 %vm850_vm0, %v4107_v33 }
 0xc98   : > { %4859 = vmatmul.msk.f32.gmra.mxu3 %vm850_vm0, %v4108_v32 }
 0xcca   : > { %v4197_v0 = vpop.f32.mrf.mxu3 }
 0xccb   : > { %v6996_v54 = vadd.f32 %v6986_v23, %v4197_v0 }
 0xccd   : > { %v4251_v0 = vmul.f32 0.044715, %v6996_v54 }
 0xcd2   : > { %v6978_v56 = vpop.f32.mrf.mxu3 }
 0xcdb   : > { %v6988_v43 = vpop.f32.mrf.mxu3 }
 0xcdc   : > { %v4182_v38 = vpop.f32.mrf.mxu2 }
 0xcdd   : > { %v4183_v34 = vadd.f32 %v6986_v23, %v4182_v38 }
 0xcdf   : > { %v4246_v53 = vmul.f32 0.044715, %v4183_v34  ;;  %v4230_v49 = vmul.f32 0.5, %v4183_v34 }
 0xce1   : > { %v4262_v20 = vmul.f32 %v4246_v53, %v4183_v34 }
 0xce3   : > { %v4278_v29 = vmul.f32 %v4262_v20, %v4183_v34  ;;  %v4206_v40 = vpop.f32.mrf.mxu3 }
 0xce4   : > { %v4207_v10 = vadd.f32 %v6986_v23, %v4206_v40  ;;  %v4185_v35 = vpop.f32.mrf.mxu2 }
 0xce5   : > { %v4186_v57 = vadd.f32 %v6986_v23, %v4185_v35  ;;  %v4294_v36 = vadd.f32 %v4278_v29, %v4183_v34  ;;  %v4267_v35 = vmul.f32 %v4251_v0, %v6996_v54 }
 0xce6   : > { %v4254_v58 = vmul.f32 0.044715, %v4207_v10  ;;  %v4238_v4 = vmul.f32 0.5, %v4207_v10 }
 0xce7   : > { %v4310_v59 = vmul.f32 0.7978846, %v4294_v36  ;;  %v4247_v11 = vmul.f32 0.044715, %v4186_v57  ;;  %v4231_v52 = vmul.f32 0.5, %v4186_v57 }
 0xce8   : > { %v4270_v46 = vmul.f32 %v4254_v58, %v4207_v10 }
 0xce9   : > { %5252 = vtanh.f32 %v4310_v59  ;;  %v4263_v7 = vmul.f32 %v4247_v11, %v4186_v57  ;;  %v7018_v11 = vadd.f32 %v6986_v23, %v6978_v56 }
 0xcea   : > { %v4286_v25 = vmul.f32 %v4270_v46, %v4207_v10 }
 0xceb   : > { %v4209_v15 = vpop.f32.mrf.mxu3  ;;  %v4279_v47 = vmul.f32 %v4263_v7, %v4186_v57 }
 0xcec   : > { %v4210_v61 = vadd.f32 %v6986_v23, %v4209_v15  ;;  %v4188_v3 = vpop.f32.mrf.mxu2  ;;  %v4302_v21 = vadd.f32 %v4286_v25, %v4207_v10 }
 0xced   : > { %v4189_v55 = vadd.f32 %v6986_v23, %v4188_v3  ;;  %v4295_v2 = vadd.f32 %v4279_v47, %v4186_v57  ;;  %v4283_v3 = vmul.f32 %v4267_v35, %v6996_v54 }
 0xcee   : > { %v4318_v30 = vmul.f32 0.7978846, %v4302_v21  ;;  %v4255_v42 = vmul.f32 0.044715, %v4210_v61 }
 0xcef   : > { %v5253_v17 = vpop.eup %5252  ;;  %v4311_v31 = vmul.f32 0.7978846, %v4295_v2  ;;  %v4248_v63 = vmul.f32 0.044715, %v4189_v55  ;;  %v4239_v2 = vmul.f32 0.5, %v4210_v61 }
 0xcf0   : > { %v4342_v14 = vadd.f32 1.0, %v5253_v17  ;;  %5254 = vtanh.f32 %v4318_v30  ;;  %v4271_v6 = vmul.f32 %v4255_v42, %v4210_v61 }
 0xcf1   : > { %5256 = vtanh.f32 %v4311_v31  ;;  %v4264_v8 = vmul.f32 %v4248_v63, %v4189_v55  ;;  %v4232_v31 = vmul.f32 0.5, %v4189_v55 }
 0xcf2   : > { %v4358_v33 = vmul.f32 %v4342_v14, %v4230_v49  ;;  %v4287_v32 = vmul.f32 %v4271_v6, %v4210_v61  ;;  %v4252_v6 = vmul.f32 0.044715, %v7018_v11 }
 0xcf3   : > { %v4212_v50 = vpop.f32.mrf.mxu3  ;;  %v4280_v28 = vmul.f32 %v4264_v8, %v4189_v55 }
 0xcf4   : > { %v6999_v1 = vadd.f32 %v6986_v23, %v4212_v50  ;;  %v4191_v5 = vpop.f32.mrf.mxu2  ;;  %4410 = vmatmul.f32.vlgmr.msra.gmra.mxu0 %v4358_v33  ;;  %v4303_v44 = vadd.f32 %v4287_v32, %v4210_v61  ;;  %v4299_v61 = vadd.f32 %v4283_v3, %v6996_v54 }
 0xcf5   : > { %v7002_v18 = vadd.f32 %v6986_v23, %v4191_v5  ;;  %v4296_v9 = vadd.f32 %v4280_v28, %v4189_v55  ;;  %v7032_v5 = vadd.f32 %v6986_v23, %v6988_v43 }
 0xcf6   : > { %v5255_v48 = vpop.eup %5254  ;;  %v4319_v27 = vmul.f32 0.7978846, %v4303_v44  ;;  %v4256_v60 = vmul.f32 0.044715, %v6999_v1 }
 0xcf7   : > { %v5257_v13 = vpop.eup %5256  ;;  %v4350_v12 = vadd.f32 1.0, %v5255_v48  ;;  %v4312_v45 = vmul.f32 0.7978846, %v4296_v9  ;;  %v4249_v39 = vmul.f32 0.044715, %v7002_v18  ;;  %v4268_v9 = vmul.f32 %v4252_v6, %v7018_v11 }
 0xcf8   : > { %v4343_v38 = vadd.f32 1.0, %v5257_v13  ;;  %5258 = vtanh.f32 %v4319_v27  ;;  %v4272_v34 = vmul.f32 %v4256_v60, %v6999_v1  ;;  %v4240_v13 = vmul.f32 0.5, %v6999_v1 }
 0xcf9   : > { %v4366_v53 = vmul.f32 %v4350_v12, %v4238_v4  ;;  %5260 = vtanh.f32 %v4312_v45  ;;  %v4265_v20 = vmul.f32 %v4249_v39, %v7002_v18  ;;  %v4315_v45 = vmul.f32 0.7978846, %v4299_v61 }
 0xcfa   : > { %v4359_v29 = vmul.f32 %v4343_v38, %v4231_v52  ;;  %v4288_v40 = vmul.f32 %v4272_v34, %v6999_v1  ;;  %v4233_v39 = vmul.f32 0.5, %v7002_v18  ;;  %v4253_v43 = vmul.f32 0.044715, %v7032_v5 }
 0xcfb   : > { %v4215_v36 = vpop.f32.mrf.mxu3  ;;  %4434 = vmatmul.f32.vlgmr.msra.gmra.mxu1 %v4366_v53  ;;  %v4281_v10 = vmul.f32 %v4265_v20, %v7002_v18  ;;  %v4284_v53 = vmul.f32 %v4268_v9, %v7018_v11  ;;  %v4235_v61 = vmul.f32 0.5, %v6996_v54 }
 0xcfc   : > { %v7013_v58 = vadd.f32 %v6986_v23, %v4215_v36  ;;  %v4194_v57 = vpop.f32.mrf.mxu2  ;;  %4413 = vmatmul.f32.gmra.mxu0 %v4359_v29  ;;  %v4304_v59 = vadd.f32 %v4288_v40, %v6999_v1  ;;  %v4269_v36 = vmul.f32 %v4253_v43, %v7032_v5 }
 0xcfd   : > { %v4195_v46 = vadd.f32 %v6986_v23, %v4194_v57  ;;  %v4297_v7 = vadd.f32 %v4281_v10, %v7002_v18  ;;  %v4300_v18 = vadd.f32 %v4284_v53, %v7018_v11 }
 0xcfe   : > { %v5259_v25 = vpop.eup %5258  ;;  %v4257_v15 = vmul.f32 0.044715, %v7013_v58  ;;  %v4320_v47 = vmul.f32 0.7978846, %v4304_v59 }
 0xcff   : > { %v5261_v21 = vpop.eup %5260  ;;  %v4351_v30 = vadd.f32 1.0, %v5259_v25  ;;  %v4313_v42 = vmul.f32 0.7978846, %v4297_v7  ;;  %v4250_v17 = vmul.f32 0.044715, %v4195_v46  ;;  %v4241_v25 = vmul.f32 0.5, %v7013_v58 }
 0xd00   : > { %v4344_v63 = vadd.f32 1.0, %v5261_v21  ;;  %5262 = vtanh.f32 %v4320_v47  ;;  %v4273_v56 = vmul.f32 %v4257_v15, %v7013_v58  ;;  %v4234_v47 = vmul.f32 0.5, %v4195_v46 }
 0xd01   : > { %v4367_v49 = vmul.f32 %v4351_v30, %v4239_v2  ;;  %5264 = vtanh.f32 %v4313_v42  ;;  %v4266_v14 = vmul.f32 %v4250_v17, %v4195_v46  ;;  %v4316_v30 = vmul.f32 0.7978846, %v4300_v18 }
 0xd02   : > { %v4360_v8 = vmul.f32 %v4344_v63, %v4232_v31  ;;  %v4289_v33 = vmul.f32 %v4273_v56, %v7013_v58  ;;  %v4285_v42 = vmul.f32 %v4269_v36, %v7032_v5 }
 0xd03   : > { %v4218_v32 = vpop.f32.mrf.mxu3  ;;  %4437 = vmatmul.f32.gmra.mxu1 %v4367_v49  ;;  %v4282_v50 = vmul.f32 %v4266_v14, %v4195_v46 }
 0xd04   : > { %v4219_v28 = vadd.f32 %v6986_v23, %v4218_v32  ;;  %4416 = vmatmul.f32.gmra.mxu0 %v4360_v8  ;;  %v4305_v55 = vadd.f32 %v4289_v33, %v7013_v58  ;;  %v4301_v58 = vadd.f32 %v4285_v42, %v7032_v5 }
 0xd05   : > { %v4298_v44 = vadd.f32 %v4282_v50, %v4195_v46 }
 0xd06   : > { %v5263_v48 = vpop.eup %5262  ;;  %v4258_v27 = vmul.f32 0.044715, %v4219_v28  ;;  %v4321_v60 = vmul.f32 0.7978846, %v4305_v55  ;;  %v4242_v32 = vmul.f32 0.5, %v4219_v28 }
 0xd07   : > { %v5265_v0 = vpop.eup %5264  ;;  %v4352_v4 = vadd.f32 1.0, %v5263_v48  ;;  %v4314_v12 = vmul.f32 0.7978846, %v4298_v44  ;;  %v4317_v9 = vmul.f32 0.7978846, %v4301_v58 }
 0xd08   : > { %v4345_v52 = vadd.f32 1.0, %v5265_v0  ;;  %5266 = vtanh.f32 %v4321_v60  ;;  %v4274_v38 = vmul.f32 %v4258_v27, %v4219_v28 }
 0xd09   : > { %v4368_v34 = vmul.f32 %v4352_v4, %v4240_v13  ;;  %5268 = vtanh.f32 %v4314_v12 }
 0xd0a   : > { %v4361_v20 = vmul.f32 %v4345_v52, %v4233_v39  ;;  %v4290_v29 = vmul.f32 %v4274_v38, %v4219_v28  ;;  %5270 = vtanh.f32 %v4315_v45  ;;  %v4236_v38 = vmul.f32 0.5, %v7018_v11 }
 0xd0b   : > { %v4221_v40 = vpop.f32.mrf.mxu3  ;;  %4440 = vmatmul.f32.gmra.mxu1 %v4368_v34 }
 0xd0c   : > { %v4222_v1 = vadd.f32 %v6986_v23, %v4221_v40  ;;  %4419 = vmatmul.f32.gmra.mxu0 %v4361_v20  ;;  %v4306_v35 = vadd.f32 %v4290_v29, %v4219_v28 }
 0xd0e   : > { %v5267_v10 = vpop.eup %5266  ;;  %v4259_v57 = vmul.f32 0.044715, %v4222_v1  ;;  %v4322_v59 = vmul.f32 0.7978846, %v4306_v35  ;;  %v4243_v52 = vmul.f32 0.5, %v4222_v1 }
 0xd0f   : > { %v5269_v7 = vpop.eup %5268  ;;  %v4353_v15 = vadd.f32 1.0, %v5267_v10 }
 0xd10   : > { %v4346_v3 = vadd.f32 1.0, %v5269_v7  ;;  %5272 = vtanh.f32 %v4322_v59  ;;  %v4275_v21 = vmul.f32 %v4259_v57, %v4222_v1  ;;  %v5271_v63 = vpop.eup %5270 }
 0xd11   : > { %v4369_v2 = vmul.f32 %v4353_v15, %v4241_v25  ;;  %5274 = vtanh.f32 %v4316_v30  ;;  %v4347_v8 = vadd.f32 1.0, %v5271_v63 }
 0xd12   : > { %v4362_v17 = vmul.f32 %v4346_v3, %v4234_v47  ;;  %v4291_v31 = vmul.f32 %v4275_v21, %v4222_v1  ;;  %v7056_v47 = vld [vmem:[%s7251_s4] ss:$0 sm:$0xff] }
 0xd13   : > { %v4224_v56 = vpop.f32.mrf.mxu3  ;;  %4443 = vmatmul.f32.gmra.mxu1 %v4369_v2  ;;  %v4363_v48 = vmul.f32 %v4347_v8, %v4235_v61 }
 0xd14   : > { %v4225_v49 = vadd.f32 %v6986_v23, %v4224_v56  ;;  %4422 = vmatmul.f32.gmra.mxu0 %v4362_v17  ;;  %v4307_v14 = vadd.f32 %v4291_v31, %v4222_v1  ;;  %v4237_v1 = vmul.f32 0.5, %v7032_v5 }
 0xd16   : > { %v5273_v46 = vpop.eup %5272  ;;  %v4260_v6 = vmul.f32 0.044715, %v4225_v49  ;;  %v4323_v33 = vmul.f32 0.7978846, %v4307_v14  ;;  %v4244_v36 = vmul.f32 0.5, %v4225_v49 }
 0xd17   : > { %v4354_v50 = vadd.f32 1.0, %v5273_v46  ;;  %v5275_v60 = vpop.eup %5274 }
 0xd18   : > { %5276 = vtanh.f32 %v4323_v33  ;;  %v4276_v55 = vmul.f32 %v4260_v6, %v4225_v49  ;;  %v4348_v28 = vadd.f32 1.0, %v5275_v60 }
 0xd19   : > { %v4370_v44 = vmul.f32 %v4354_v50, %v4242_v32  ;;  %5278 = vtanh.f32 %v4317_v9 }
 0xd1a   : > { %v4292_v27 = vmul.f32 %v4276_v55, %v4225_v49  ;;  %v4364_v53 = vmul.f32 %v4348_v28, %v4236_v38 }
 0xd1b   : > { %v4227_v0 = vpop.f32.mrf.mxu3  ;;  %4446 = vmatmul.f32.gmra.mxu1 %v4370_v44 }
 0xd1c   : > { %v4228_v13 = vadd.f32 %v6986_v23, %v4227_v0  ;;  %4425 = vmatmul.f32.gmra.mxu0 %v4363_v48  ;;  %v4308_v4 = vadd.f32 %v4292_v27, %v4225_v49 }
 0xd1e   : > { %v5277_v12 = vpop.eup %5276  ;;  %v4261_v45 = vmul.f32 0.044715, %v4228_v13  ;;  %v4324_v39 = vmul.f32 0.7978846, %v4308_v4  ;;  %v4245_v7 = vmul.f32 0.5, %v4228_v13 }
 0xd1f   : > { %v4355_v54 = vadd.f32 1.0, %v5277_v12  ;;  %v5279_v29 = vpop.eup %5278 }
 0xd20   : > { %5280 = vtanh.f32 %v4324_v39  ;;  %v4277_v43 = vmul.f32 %v4261_v45, %v4228_v13  ;;  %v4349_v35 = vadd.f32 1.0, %v5279_v29 }
 0xd21   : > { %v4371_v34 = vmul.f32 %v4355_v54, %v4243_v52 }
 0xd22   : > { %v4293_v20 = vmul.f32 %v4277_v43, %v4228_v13  ;;  %v4365_v11 = vmul.f32 %v4349_v35, %v4237_v1 }
 0xd23   : > { %4449 = vmatmul.f32.gmra.mxu1 %v4371_v34 }
 0xd24   : > { %4428 = vmatmul.f32.gmra.mxu0 %v4364_v53  ;;  %v4309_v23 = vadd.f32 %v4293_v20, %v4228_v13 }
 0xd26   : > { %v5281_v40 = vpop.eup %5280  ;;  %v4325_v18 = vmul.f32 0.7978846, %v4309_v23 }
 0xd27   : > { %v4356_v10 = vadd.f32 1.0, %v5281_v40 }
 0xd28   : > { %5282 = vtanh.f32 %v4325_v18 }
 0xd29   : > { %v4372_v57 = vmul.f32 %v4356_v10, %v4244_v36 }
 0xd2b   : > { %4452 = vmatmul.f32.gmra.mxu1 %v4372_v57 }
 0xd2c   : > { %4431 = vmatmul.f32.gmra.mxu0 %v4365_v11 }
 0xd2e   : > { %v5283_v59 = vpop.eup %5282 }
 0xd2f   : > { %v4357_v25 = vadd.f32 1.0, %v5283_v59 }
 0xd31   : > { %v4373_v15 = vmul.f32 %v4357_v25, %v4245_v7 }
 0xd33   : > { %4455 = vmatmul.f32.gmra.mxu1 %v4373_v15 }
 0xd71   : > { %v4411_v5 = vpop.f32.mrf.mxu0 }
 0xd72   : > { %v4412_v3 = vadd.f32 %v7056_v47, %v4411_v5 }
 0xd74   : > { %v4485_v21 = vadd.f32 %v4412_v3, %v6782_v51 }
 0xd76   : > { %4489 = vst.msk [vmem:[%s819_s23] sm:$0xff] %vm850_vm0, %v4485_v21 }
 0xd78   : > { %v4435_v2 = vpop.f32.mrf.mxu1 }
 0xd79   : > { %v4414_v30 = vpop.f32.mrf.mxu0 }
 0xd7a   : > { %v4415_v42 = vadd.f32 %v7056_v47, %v4414_v30 }
 0xd7c   : > { %v4486_v17 = vadd.f32 %v4415_v42, %v6791_v24 }
 0xd7e   : > { %4490 = vst.msk [vmem:[%s819_s23 + $0x8] sm:$0xff] %vm850_vm0, %v4486_v17 }
 0xd80   : > { %v4438_v31 = vpop.f32.mrf.mxu1 }
 0xd81   : > { %v4417_v63 = vpop.f32.mrf.mxu0 }
 0xd82   : > { %v4418_v56 = vadd.f32 %v7056_v47, %v4417_v63 }
 0xd84   : > { %v4487_v51 = vadd.f32 %v4418_v56, %v6796_v26 }
 0xd86   : > { %4491 = vst.msk [vmem:[%s819_s23 + $0x10] sm:$0xff] %vm850_vm0, %v4487_v51 }
 0xd88   : > { %v4441_v24 = vpop.f32.mrf.mxu1 }
 0xd89   : > { %v4420_v49 = vpop.f32.mrf.mxu0 }
 0xd8a   : > { %v4421_v14 = vadd.f32 %v7056_v47, %v4420_v49 }
 0xd8c   : > { %v4488_v58 = vadd.f32 %v4421_v14, %v6801_v16 }
 0xd8e   : > { %4492 = vst.msk [vmem:[%s819_s23 + $0x18] sm:$0xff] %vm850_vm0, %v4488_v58 }
 0xd8f   : > { %5499 = shalt.err (!%p5496_p8)
}
 0xd90   : > { %s7208_s23 = smov 128   ;;  %v4444_v26 = vpop.f32.mrf.mxu1  ;;  %s7254_s7 = sld [smem:[#allocation39_spill]]  ;;  %v4436_v8 = vadd.f32 %v7056_v47, %v4435_v2  ;;  %v4439_v0 = vadd.f32 %v7056_v47, %v4438_v31 }
 0xd91   : > { %4914 = dma.vmem_to_hbm [thread:$0]  (%p5769_p5), %s4524_s3, 512, %s4526_s30, %s4506_s6, %s7208_s23, %s7208_s23, %s5604_s18   ;;  %v4423_v16 = vpop.f32.mrf.mxu0  ;;  %v4445_v11 = vadd.f32 %v7056_v47, %v4444_v26 }
 0xd92   : > { %v4424_v46 = vadd.f32 %v7056_v47, %v4423_v16  ;;  %s7112_s3 = scalar_lea.vmem [#allocation15], %s4726_s5  ;;  %s7255_s5 = sshll.u32 %s5752_s21, 5 }
 0xd93   : > { %s7256_s24 = sld [smem:[#allocation41_spill]]  ;;  %s4540_s26 = sshll.u32 %s7112_s3, 4  ;;  %s4541_s26 = int_to_ptr.vmem [resolvable:$true] %s4540_s26 }
 0xd94   : > { %s4511_s22 = scalar_lea.sflag [#allocation16], %s7051_s27 }
 0xd96   : > { %v5088_v6 = vld [vmem:[%s7254_s7] ss:$0 sm:$0xff]  ;;  %v5087_v33 = vld [vmem:[%s7254_s7 + $0x1] ss:$0 sm:$0xff]  ;;  %v5089_v50 = vld [vmem:[%s7254_s7 + $0x2] ss:$0 sm:$0xff] }
 0xd97   : > { %v4461_v32 = vmul.f32 %v5088_v6, %v4424_v46  ;;  %v4467_v55 = vmul.f32 %v5087_v33, %v4436_v8  ;;  %v4468_v28 = vmul.f32 %v5087_v33, %v4439_v0  ;;  %v4470_v15 = vmul.f32 %v5087_v33, %v4445_v11 }
 0xd98   : > { %v4447_v61 = vpop.f32.mrf.mxu1 }
 0xd99   : > { %v4448_v44 = vadd.f32 %v7056_v47, %v4447_v61  ;;  %v4426_v9 = vpop.f32.mrf.mxu0  ;;  %v4471_v48 = vadd.f32 %v4467_v55, %v4461_v32  ;;  %s7257_s0 = smov %s7256_s24  ;;  %s4539_s4 = scalar_lea.hbm %s7256_s24, %s7255_s5 }
 0xd9a   : > { %v4427_v60 = vadd.f32 %v7056_v47, %v4426_v9  ;;  %s4542_s29 = sshll.u32 %s4539_s4, 4  ;;  %s5520_s30 = scalar_lea.hbm %s7257_s0, 64  ;;  %s4543_s29 = int_to_ptr.hbm [resolvable:$true] %s4542_s29 }
 0xd9b   : > { %v4477_v27 = vmul.f32 %v5089_v50, %v4448_v44  ;;  %s5514_s28 = sshra.s32 %s4543_s29, 4  ;;  %s5515_s28 = int_to_ptr.hbm [resolvable:$true] %s5514_s28 }
 0xd9c   : > { %v4462_v12 = vmul.f32 %v5088_v6, %v4427_v60  ;;  %s5516_s23 = scalar_lea.hbm %s5515_s28, 32  ;;  %p5521_p12 = scmp.lt.s32.totalorder %s5515_s28, %s7257_s0 }
 0xd9d   : > { %v4481_v13 = vadd.f32 %v4477_v27, %v4471_v48  ;;  %p5517_p9 = scmp.ne.s32.totalorder %s5515_s28, %s5516_s23  ;;  %p5522_p13 = scmp.lt.s32.totalorder %s5520_s30, %s5516_s23 }
 0xd9e   : > { %v4472_v38 = vadd.f32 %v4468_v28, %v4462_v12 }
 0xd9f   : > { %v4493_v4 = vadd.f32 %v4481_v13, %v6775_v19  ;;  %v4442_v19 = vadd.f32 %v7056_v47, %v4441_v24  ;;  %p5518_p10 = pnand %p5517_p9, %p5769_p5  ;;  %p5523_p0 = por %p5522_p13, %p5521_p12 }
 0xda0   : > { %v4450_v45 = vpop.f32.mrf.mxu1 }
 0xda1   : > { %v4497_v39 = vmul.f32 %v4493_v4, %v6757_v22  ;;  %v4451_v52 = vadd.f32 %v7056_v47, %v4450_v45  ;;  %v4429_v54 = vpop.f32.mrf.mxu0  ;;  %v4469_v40 = vmul.f32 %v5087_v33, %v4442_v19  ;;  %p5519_p11 = pneg %p5518_p10 }
 0xda2   : > { %v4430_v34 = vadd.f32 %v7056_v47, %v4429_v54 }
 0xda3   : > { %4501 = vst.msk [vmem:[%s7112_s3] sm:$0xff] %vm850_vm0, %v4497_v39  ;;  %v4478_v43 = vmul.f32 %v5089_v50, %v4451_v52  ;;  %p5524_p1 = pnand %p5523_p0, %p5519_p11 }
 0xda4   : > { %v4463_v29 = vmul.f32 %v5088_v6, %v4430_v34 }
 0xda5   : > { %v4482_v53 = vadd.f32 %v4478_v43, %v4472_v38 }
 0xda6   : > { %v4473_v10 = vadd.f32 %v4469_v40, %v4463_v29 }
 0xda7   : > { %v4494_v20 = vadd.f32 %v4482_v53, %v6760_v37 }
 0xda8   : > { %v4453_v23 = vpop.f32.mrf.mxu1 }
 0xda9   : > { %v4498_v35 = vmul.f32 %v4494_v20, %v6757_v22  ;;  %v4454_v18 = vadd.f32 %v7056_v47, %v4453_v23  ;;  %v4432_v36 = vpop.f32.mrf.mxu0 }
 0xdaa   : > { %v4433_v57 = vadd.f32 %v7056_v47, %v4432_v36 }
 0xdab   : > { %4502 = vst.msk [vmem:[%s7112_s3 + $0x8] sm:$0xff] %vm850_vm0, %v4498_v35  ;;  %v4479_v1 = vmul.f32 %v5089_v50, %v4454_v18 }
 0xdac   : > { %v4464_v7 = vmul.f32 %v5088_v6, %v4433_v57 }
 0xdad   : > { %v4483_v37 = vadd.f32 %v4479_v1, %v4473_v10 }
 0xdae   : > { %v4474_v21 = vadd.f32 %v4470_v15, %v4464_v7 }
 0xdaf   : > { %v4495_v59 = vadd.f32 %v4483_v37, %v6766_v41 }
 0xdb0   : > { %v4456_v25 = vpop.f32.mrf.mxu1 }
 0xdb1   : > { %v4499_v5 = vmul.f32 %v4495_v59, %v6757_v22  ;;  %v4457_v3 = vadd.f32 %v7056_v47, %v4456_v25 }
 0xdb3   : > { %4503 = vst.msk [vmem:[%s7112_s3 + $0x10] sm:$0xff] %vm850_vm0, %v4499_v5  ;;  %v4480_v2 = vmul.f32 %v5089_v50, %v4457_v3 }
 0xdb5   : > { %v4484_v41 = vadd.f32 %v4480_v2, %v4474_v21 }
 0xdb7   : > { %v4496_v30 = vadd.f32 %v4484_v41, %v6779_v62 }
 0xdb9   : > { %v4500_v42 = vmul.f32 %v4496_v30, %v6757_v22 }
 0xdbb   : > { %4504 = vst.msk [vmem:[%s7112_s3 + $0x18] sm:$0xff] %vm850_vm0, %v4500_v42 }
 0xdbc   : > { %5527 = shalt.err (!%p5524_p1)
}
 0xdbd   : > { %s7258_s27 = smov 128  }
 0xdbe   : > { %4915 = dma.vmem_to_hbm [thread:$0]  (%p5769_p5), %s4541_s26, 512, %s4543_s29, %s4511_s22, %s7258_s27, %s7258_s27, %s5604_s18  }
 0xdbf PF: > { %s7259_s3 = sld [smem:[#allocation25_spill]] }
 0xdc0   : > { %s7260_s4 = sld [smem:[#allocation23_spill]] }
 0xdc5   : > { %p4956_p2 = scmp.ge.s32.totalorder %s7259_s3, 2 }
 0xdc6   : > { %s4557_s21 = sand.u32 1, %s7260_s4  }
 0xdc7   : > { %p4938_p3 = pnand %p4956_p2, %p5773_p6  ;;  %s4558_s28 = scalar_lea.sflag [#allocation5], %s4557_s21 }
 0xdc9   : > { %p4939_p4 = pneg %p4938_p3 }
 0xdcb   : > { %5561 = dma.done.wait (%p4939_p4), %s4558_s28, 512  }
 0xdcc   : > { %5563 = vsyncadd (%p4939_p4), %s4558_s28, 4294966784  ;;  %s4568_s23 = scalar_lea.sflag [#allocation16], %s4557_s21 }
 0xdcd   : > { %5565 = dma.done.wait (%p4939_p4), %s4568_s23, 512  }
 0xdce   : > { %5567 = vsyncadd (%p4939_p4), %s4568_s23, 4294966784  ;;  %s7262_s1 = sld [smem:[#allocation26_spill]]  ;;  %s7265_s24 = smov %s5574_s25 }
 0xdcf   : > { %s7263_s5 = sld [smem:[#allocation24_spill]] }
 0xdd0   : > { %s7264_s30 = sld [smem:[#allocation27_spill]] }
 0xdd4   : > { %p42_p5 = scmp.ge.s32.totalorder %s7262_s1, 4  }
 0xdd5   : > { %s7266_s25 = smov %s7263_s5 }
 0xdd6   : > { %s7267_s5 = smov %s7264_s30  ;;  %44 = sbr.rel (!%p42_p5) target bundleno = 23 (0x17), region = 188 }
 0xddb   :  { %4574 = vsyncpa [#allocation4], 1 }
 0xddc   :  { %4576 = vsyncpa [#allocation4 + $0x1], 1 }
 0xddd   :  { %4577 = vsyncpa [#allocation7], 1 }
 0xdde   :  { %4578 = vsyncpa [#allocation10], 1 }
 0xddf   :  { %4579 = vsyncpa [#allocation13], 1 }
 0xde0   :  { %4580 = vsyncpa [#allocation5], 1 }
 0xde1   :  { %4582 = vsyncpa [#allocation5 + $0x1], 1 }
 0xde2   :  { %4583 = vsyncpa [#allocation16], 1 }
 0xde3   :  { %4585 = vsyncpa [#allocation16 + $0x1], 1 }

</bundles_post_ra>
